<compile_context>
chip_gen: v5e
topology: v5e:2x2
jax: 0.10.0
libtpu: 0.0.40
codegen_flags: <defaults>
</compile_context>

<pallas_src>
import math
from functools import partial

import jax
import jax.numpy as jnp
from jax.experimental import pallas as pl
from jax.experimental.pallas import tpu as pltpu

HIDDEN = 64          # Net1037.hidden_size
MFCC_LEN = 20        # Net1037.mfcc_length
T_LEN = 4            # Net1037.TLength
H_LEN = 2            # Net1037.HLength
NUM_LAYERS = 3
GATES = 4 * HIDDEN   # PyTorch gate order [i, f, g, o]
HEAD_PAD = 128       # lane-dense head output width (>= 20 + max(T_LEN, H_LEN))


# ---------------------------------------------------------------------------
# Fused Pallas kernel: wavefront-pipelined 3-layer LSTM + sigmoid head.
# ---------------------------------------------------------------------------
def _net1037_kernel(x_ref,
                    wih0_ref, whh0_ref, b0_ref,
                    w1_ref, b1_ref,
                    w2_ref, b2_ref,
                    whead_ref, bhead_ref,
                    head_ref,
                    hseq_ref):
    """x_ref:    (T, B, C)     time-major input
    wih0:     (C, 4H)  whh0: (H, 4H)     layer-0 weights (transposed)
    w1, w2:   (2H, 4H)                   fused [W_ih ; W_hh] for layers 1-2
    b*:       (1, 4H)                    b_ih + b_hh
    whead:    (H, 128)  bhead: (1, 128)  [fc1 | fc_k | 0-pad], lane-dense
    head_ref: (T*BP, 128)                sigmoid(h_last @ whead + bhead)
    hseq_ref: (T*BP, H) scratch, BP = batch rounded up to 8 (one tile per timestep)
    """
    T, B, _ = x_ref.shape
    H = HIDDEN
    BP = hseq_ref.shape[0] // T

    # Tiny biases hoisted once (2 vregs each); big weights stay as refs.
    b_l = (b0_ref[...], b1_ref[...], b2_ref[...])
    w_fused = (None, w1_ref, w2_ref)

    # Zero the padded scratch once so the discarded pad rows of the head matmul
    # stay well-defined.  One dense store, off the recurrence path.
    hseq_ref[...] = jnp.zeros(hseq_ref.shape, hseq_ref.dtype)

    zeros = jnp.zeros((B, H), jnp.float32)
    h = [zeros] * NUM_LAYERS
    c = [zeros] * NUM_LAYERS
    # layer_out[l][t]: hidden of layer l at time t; consumed by layer l+1 exactly
    # one wave step later (lives briefly in vregs, never round-trips via memory).
    layer_out = [[None] * T for _ in range(NUM_LAYERS - 1)]

    # Wavefront schedule: wave step s -> layer l works on timestep t = s - l.
    for s in range(T + NUM_LAYERS - 1):
        new_h = list(h)
        new_c = list(c)
        for l in range(NUM_LAYERS):
            t = s - l
            if not (0 <= t < T):
                continue
            if l == 0:
                # x_t projection is independent of the recurrence -> schedules early.
                gates = (jnp.dot(x_ref[t], wih0_ref[...],
                                 preferred_element_type=jnp.float32)
                         + jnp.dot(h[0], whh0_ref[...],
                                   preferred_element_type=jnp.float32)
                         + b_l[0])
            else:
                # Fused [h_{l-1,t} , h_{l,t-1}] @ [W_ih ; W_hh]: one K=128 MXU push.
                lhs = jnp.concatenate([layer_out[l - 1][t], h[l]], axis=1)
                gates = (jnp.dot(lhs, w_fused[l][...],
                                 preferred_element_type=jnp.float32)
                         + b_l[l])

            # Gate order [i, f, g, o]: activations per exact 128-lane vreg.
            g_if = gates[:, :2 * H]          # lanes   0:128  -> i | f
            g_go = gates[:, 2 * H:]          # lanes 128:256  -> g | o
            sig_if = jax.nn.sigmoid(g_if)
            sig_go = jax.nn.sigmoid(g_go)    # extra EUP pass rides the idle EUP slot
            tanh_go = jnp.tanh(g_go)
            i_g = sig_if[:, :H]
            f_g = sig_if[:, H:]
            g_g = tanh_go[:, :H]
            o_g = sig_go[:, H:]

            c_new = f_g * c[l] + i_g * g_g
            h_new = o_g * jnp.tanh(c_new)
            new_h[l] = h_new
            new_c[l] = c_new
            if l < NUM_LAYERS - 1:
                layer_out[l][t] = h_new          # stays in vregs
            else:
                # Each timestep owns a full 8-sublane tile: aligned, hazard-free.
                hseq_ref[pl.ds(t * BP, B), :] = h_new
        h, c = new_h, new_c

    # Fused heads: one matmul + one sigmoid over a lane-dense 128-wide slab, stored
    # once.  Scaling/splitting of mfcc vs label happens in the jitted wrapper.
    seq = hseq_ref[...]                                            # (T*BP, H)
    head_ref[...] = jax.nn.sigmoid(
        jnp.dot(seq, whead_ref[...], preferred_element_type=jnp.float32)
        + bhead_ref[...])


# ---------------------------------------------------------------------------
# Wrapper
# ---------------------------------------------------------------------------
@partial(jax.jit, static_argnames=("type",))
def net1037_forward(x, kparams, type):
    """x: (T, B, C) float32 time-major (the PyTorch input *before* .transpose(0,1)).
    Returns (mfcc (T, B, 20), label (B, T, K)) — matches the PyTorch forward."""
    T, B, C = x.shape
    if type == "NMED-T":
        whead, bhead = kparams["head_T"]
        k_out = T_LEN
    elif type == "NMED-H":
        whead, bhead = kparams["head_H"]
        k_out = H_LEN
    else:
        raise Exception("Not Implemented!")

    (wih0, whh0, b0), (w1, b1), (w2, b2) = kparams["lstm"]
    BP = ((B + 7) // 8) * 8        # pad batch rows to a full sublane tile per step

    head = pl.pallas_call(
        _net1037_kernel,
        out_shape=jax.ShapeDtypeStruct((T * BP, HEAD_PAD), jnp.float32),
        scratch_shapes=[pltpu.VMEM((T * BP, HIDDEN), jnp.float32)],
    )(x, wih0, whh0, b0, w1, b1, w2, b2, whead, bhead)

    head = head.reshape(T, BP, HEAD_PAD)[:, :B, :]                 # (T, B, 128)
    mfcc = head[:, :, :MFCC_LEN] * 1000.0                          # (T, B, 20)
    label = (head[:, :, MFCC_LEN:MFCC_LEN + k_out] * 10.0).transpose(1, 0, 2)
    return mfcc, label


# ---------------------------------------------------------------------------
# Parameter init (canonical PyTorch layout) + one-time conversion to kernel layout
# ---------------------------------------------------------------------------
def init_params(key, channels):
    """Canonical PyTorch-layout params (gate order i, f, g, o)."""
    scale = 1.0 / math.sqrt(HIDDEN)
    keys = iter(jax.random.split(key, 32))

    def u(shape):
        return jax.random.uniform(next(keys), shape, jnp.float32, -scale, scale)

    lstm = []
    in_sz = channels
    for _ in range(NUM_LAYERS):
        lstm.append((u((GATES, in_sz)),   # W_ih (4H, Cin)
                     u((GATES, HIDDEN)),  # W_hh (4H, H)
                     u((GATES,)),         # b_ih
                     u((GATES,))))        # b_hh
        in_sz = HIDDEN

    fc = {name: (u((out, HIDDEN)), u((out,)))
          for name, out in (("fc1", MFCC_LEN), ("fc2", T_LEN), ("fc3", H_LEN))}
    return {"lstm": lstm, "fc": fc}


def prepare_params(params):
    """One-time conversion: transpose, fuse b_ih+b_hh, fuse [W_ih;W_hh] for layers
    1-2, concat + zero-pad head weights to a lane-dense 128 columns."""
    wih0, whh0, bih0, bhh0 = params["lstm"][0]
    lstm = [(wih0.T, whh0.T, (bih0 + bhh0)[None, :])]              # layer 0 split
    for w_ih, w_hh, b_ih, b_hh in params["lstm"][1:]:
        w = jnp.concatenate([w_ih.T, w_hh.T], axis=0)              # (2H, 4H) fused
        lstm.append((w, (b_ih + b_hh)[None, :]))

    w1, b1 = params["fc"]["fc1"]

    def head(name):
        wk, bk = params["fc"][name]
        w = jnp.concatenate([w1, wk], axis=0).T                    # (H, 20+K)
        b = jnp.concatenate([b1, bk])[None, :]                     # (1, 20+K)
        pad = HEAD_PAD - w.shape[1]
        return (jnp.pad(w, ((0, 0), (0, pad))),                    # (H, 128)
                jnp.pad(b, ((0, 0), (0, pad))))                    # (1, 128)

    return {"lstm": lstm, "head_T": head("fc2"), "head_H": head("fc3")}


# ---------------------------------------------------------------------------
# Pure-JAX reference (uses canonical params, PyTorch gate order)
# ---------------------------------------------------------------------------
def _ref_forward(x, params, type):
    T, B, _ = x.shape
    h_seq = x
    for w_ih, w_hh, b_ih, b_hh in params["lstm"]:
        def step(carry, x_t):
            h, c = carry
            gates = x_t @ w_ih.T + b_ih + h @ w_hh.T + b_hh
            i = jax.nn.sigmoid(gates[:, 0 * HIDDEN:1 * HIDDEN])
            f = jax.nn.sigmoid(gates[:, 1 * HIDDEN:2 * HIDDEN])
            g = jnp.tanh(gates[:, 2 * HIDDEN:3 * HIDDEN])
            o = jax.nn.sigmoid(gates[:, 3 * HIDDEN:4 * HIDDEN])
            c = f * c + i * g
            h = o * jnp.tanh(c)
            return (h, c), h

        init = (jnp.zeros((B, HIDDEN), jnp.float32),
                jnp.zeros((B, HIDDEN), jnp.float32))
        _, h_seq = jax.lax.scan(step, init, h_seq)

    w1, b1 = params["fc"]["fc1"]
    mfcc = jax.nn.sigmoid(h_seq @ w1.T + b1) * 1000.0                  # (T, B, 20)
    wk, bk = params["fc"]["fc2" if type == "NMED-T" else "fc3"]
    label = (jax.nn.sigmoid(h_seq @ wk.T + bk) * 10.0).transpose(1, 0, 2)
    return mfcc, label


# ---------------------------------------------------------------------------
if __name__ == "__main__":
    key = jax.random.PRNGKey(0)
    k_param, k_x = jax.random.split(key)

    T, B, C = 8, 2, 8            # small shapes: seq=8, batch=2, channels=8
    params = init_params(k_param, C)
    kparams = prepare_params(params)
    x = jax.random.normal(k_x, (T, B, C), jnp.float32)

    ok = True
    for dset in ("NMED-T", "NMED-H"):
        mfcc, label = net1037_forward(x, kparams, type=dset)
        jax.block_until_ready((mfcc, label))
        mfcc_r, label_r = _ref_forward(x, params, dset)
        ok &= bool(jnp.allclose(mfcc, mfcc_r, atol=1e-3, rtol=1e-4))
        ok &= bool(jnp.allclose(label, label_r, atol=1e-4, rtol=1e-4))

    print("KERNEL_OK" if ok else "KERNEL_MISMATCH")
</pallas_src>

<mosaic_0001>
module attributes {stable_mosaic.version = 11 : i64} {
  func.func @_net1037_kernel(%arg0: memref<8x2x8xf32, #tpu.memory_space<vmem>>, %arg1: memref<8x256xf32, #tpu.memory_space<vmem>>, %arg2: memref<64x256xf32, #tpu.memory_space<vmem>>, %arg3: memref<1x256xf32, #tpu.memory_space<vmem>>, %arg4: memref<128x256xf32, #tpu.memory_space<vmem>>, %arg5: memref<1x256xf32, #tpu.memory_space<vmem>>, %arg6: memref<128x256xf32, #tpu.memory_space<vmem>>, %arg7: memref<1x256xf32, #tpu.memory_space<vmem>>, %arg8: memref<64x128xf32, #tpu.memory_space<vmem>>, %arg9: memref<1x128xf32, #tpu.memory_space<vmem>>, %arg10: memref<64x128xf32, #tpu.memory_space<vmem>>, %arg11: memref<64x64xf32, #tpu.memory_space<vmem>>) attributes {dimension_semantics = [], scalar_prefetch = 0 : i64, scratch_operands = 1 : i64, tpu.core_type = #tpu.core_type<tc>} {
    %c0 = arith.constant 0 : index
    %c0_0 = arith.constant 0 : index
    %0 = vector.load %arg3[%c0, %c0_0] : memref<1x256xf32, #tpu.memory_space<vmem>>, vector<1x256xf32>
    %c0_1 = arith.constant 0 : index
    %c0_2 = arith.constant 0 : index
    %1 = vector.load %arg5[%c0_1, %c0_2] : memref<1x256xf32, #tpu.memory_space<vmem>>, vector<1x256xf32>
    %c0_3 = arith.constant 0 : index
    %c0_4 = arith.constant 0 : index
    %2 = vector.load %arg7[%c0_3, %c0_4] : memref<1x256xf32, #tpu.memory_space<vmem>>, vector<1x256xf32>
    %cst = arith.constant 0.000000e+00 : f32
    %3 = vector.broadcast %cst : f32 to vector<64x64xf32>
    %c0_5 = arith.constant 0 : index
    %c0_6 = arith.constant 0 : index
    %4 = vector.load %arg11[%c0_5, %c0_6] : memref<64x64xf32, #tpu.memory_space<vmem>>, vector<64x64xf32>
    tpu.vector_store %arg11[%c0_5, %c0_6], %3 {strides = array<i32>} : memref<64x64xf32, #tpu.memory_space<vmem>>, vector<64x64xf32>,
    %cst_7 = arith.constant 0.000000e+00 : f32
    %5 = vector.broadcast %cst_7 : f32 to vector<2x64xf32>
    %c0_8 = arith.constant 0 : index
    %c0_9 = arith.constant 0 : index
    %c0_10 = arith.constant 0 : index
    %6 = vector.load %arg0[%c0_8, %c0_9, %c0_10] : memref<8x2x8xf32, #tpu.memory_space<vmem>>, vector<1x2x8xf32>
    %7 = vector.shape_cast %6 : vector<1x2x8xf32> to vector<2x8xf32>
    %c0_11 = arith.constant 0 : index
    %c0_12 = arith.constant 0 : index
    %8 = vector.load %arg1[%c0_11, %c0_12] : memref<8x256xf32, #tpu.memory_space<vmem>>, vector<8x256xf32>
    %cst_13 = arith.constant dense<0.000000e+00> : vector<2x256xf32>
    %9 = tpu.matmul %7, %8, %cst_13 {dimension_numbers = #tpu.dot_dimension_numbers<[1], [0], [0], [1], [0, 0, 1, 1], [], []>} : vector<2x8xf32>, vector<8x256xf32>, vector<2x256xf32> -> vector<2x256xf32>
    %c0_14 = arith.constant 0 : index
    %c0_15 = arith.constant 0 : index
    %10 = vector.load %arg2[%c0_14, %c0_15] : memref<64x256xf32, #tpu.memory_space<vmem>>, vector<64x256xf32>
    %cst_16 = arith.constant dense<0.000000e+00> : vector<2x256xf32>
    %11 = tpu.matmul %5, %10, %cst_16 {dimension_numbers = #tpu.dot_dimension_numbers<[1], [0], [0], [1], [0, 0, 1, 1], [], []>} : vector<2x64xf32>, vector<64x256xf32>, vector<2x256xf32> -> vector<2x256xf32>
    %12 = arith.addf %9, %11 : vector<2x256xf32>
    %13 = vector.broadcast %0 : vector<1x256xf32> to vector<2x256xf32>
    %14 = arith.addf %12, %13 : vector<2x256xf32>
    %15 = vector.extract_strided_slice %14 {offsets = [0, 0], sizes = [2, 128], strides = [1, 1]} : vector<2x256xf32> to vector<2x128xf32>
    %16 = vector.extract_strided_slice %14 {offsets = [0, 128], sizes = [2, 128], strides = [1, 1]} : vector<2x256xf32> to vector<2x128xf32>
    %17 = arith.negf %15 : vector<2x128xf32>
    %18 = math.exp %17 : vector<2x128xf32>
    %cst_17 = arith.constant 1.000000e+00 : f32
    %19 = vector.broadcast %cst_17 : f32 to vector<2x128xf32>
    %20 = arith.addf %19, %18 : vector<2x128xf32>
    %21 = arith.divf %19, %20 : vector<2x128xf32>
    %22 = arith.negf %16 : vector<2x128xf32>
    %23 = math.exp %22 : vector<2x128xf32>
    %cst_18 = arith.constant 1.000000e+00 : f32
    %24 = vector.broadcast %cst_18 : f32 to vector<2x128xf32>
    %25 = arith.addf %24, %23 : vector<2x128xf32>
    %26 = arith.divf %24, %25 : vector<2x128xf32>
    %27 = math.tanh %16 : vector<2x128xf32>
    %28 = vector.extract_strided_slice %21 {offsets = [0, 0], sizes = [2, 64], strides = [1, 1]} : vector<2x128xf32> to vector<2x64xf32>
    %29 = vector.extract_strided_slice %21 {offsets = [0, 64], sizes = [2, 64], strides = [1, 1]} : vector<2x128xf32> to vector<2x64xf32>
    %30 = vector.extract_strided_slice %27 {offsets = [0, 0], sizes = [2, 64], strides = [1, 1]} : vector<2x128xf32> to vector<2x64xf32>
    %31 = vector.extract_strided_slice %26 {offsets = [0, 64], sizes = [2, 64], strides = [1, 1]} : vector<2x128xf32> to vector<2x64xf32>
    %32 = arith.mulf %29, %5 : vector<2x64xf32>
    %33 = arith.mulf %28, %30 : vector<2x64xf32>
    %34 = arith.addf %32, %33 : vector<2x64xf32>
    %35 = math.tanh %34 : vector<2x64xf32>
    %36 = arith.mulf %31, %35 : vector<2x64xf32>
    %c1 = arith.constant 1 : index
    %c0_19 = arith.constant 0 : index
    %c0_20 = arith.constant 0 : index
    %37 = vector.load %arg0[%c1, %c0_19, %c0_20] : memref<8x2x8xf32, #tpu.memory_space<vmem>>, vector<1x2x8xf32>
    %38 = vector.shape_cast %37 : vector<1x2x8xf32> to vector<2x8xf32>
    %c0_21 = arith.constant 0 : index
    %c0_22 = arith.constant 0 : index
    %39 = vector.load %arg1[%c0_21, %c0_22] : memref<8x256xf32, #tpu.memory_space<vmem>>, vector<8x256xf32>
    %cst_23 = arith.constant dense<0.000000e+00> : vector<2x256xf32>
    %40 = tpu.matmul %38, %39, %cst_23 {dimension_numbers = #tpu.dot_dimension_numbers<[1], [0], [0], [1], [0, 0, 1, 1], [], []>} : vector<2x8xf32>, vector<8x256xf32>, vector<2x256xf32> -> vector<2x256xf32>
    %c0_24 = arith.constant 0 : index
    %c0_25 = arith.constant 0 : index
    %41 = vector.load %arg2[%c0_24, %c0_25] : memref<64x256xf32, #tpu.memory_space<vmem>>, vector<64x256xf32>
    %cst_26 = arith.constant dense<0.000000e+00> : vector<2x256xf32>
    %42 = tpu.matmul %36, %41, %cst_26 {dimension_numbers = #tpu.dot_dimension_numbers<[1], [0], [0], [1], [0, 0, 1, 1], [], []>} : vector<2x64xf32>, vector<64x256xf32>, vector<2x256xf32> -> vector<2x256xf32>
    %43 = arith.addf %40, %42 : vector<2x256xf32>
    %44 = vector.broadcast %0 : vector<1x256xf32> to vector<2x256xf32>
    %45 = arith.addf %43, %44 : vector<2x256xf32>
    %46 = vector.extract_strided_slice %45 {offsets = [0, 0], sizes = [2, 128], strides = [1, 1]} : vector<2x256xf32> to vector<2x128xf32>
    %47 = vector.extract_strided_slice %45 {offsets = [0, 128], sizes = [2, 128], strides = [1, 1]} : vector<2x256xf32> to vector<2x128xf32>
    %48 = arith.negf %46 : vector<2x128xf32>
    %49 = math.exp %48 : vector<2x128xf32>
    %cst_27 = arith.constant 1.000000e+00 : f32
    %50 = vector.broadcast %cst_27 : f32 to vector<2x128xf32>
    %51 = arith.addf %50, %49 : vector<2x128xf32>
    %52 = arith.divf %50, %51 : vector<2x128xf32>
    %53 = arith.negf %47 : vector<2x128xf32>
    %54 = math.exp %53 : vector<2x128xf32>
    %cst_28 = arith.constant 1.000000e+00 : f32
    %55 = vector.broadcast %cst_28 : f32 to vector<2x128xf32>
    %56 = arith.addf %55, %54 : vector<2x128xf32>
    %57 = arith.divf %55, %56 : vector<2x128xf32>
    %58 = math.tanh %47 : vector<2x128xf32>
    %59 = vector.extract_strided_slice %52 {offsets = [0, 0], sizes = [2, 64], strides = [1, 1]} : vector<2x128xf32> to vector<2x64xf32>
    %60 = vector.extract_strided_slice %52 {offsets = [0, 64], sizes = [2, 64], strides = [1, 1]} : vector<2x128xf32> to vector<2x64xf32>
    %61 = vector.extract_strided_slice %58 {offsets = [0, 0], sizes = [2, 64], strides = [1, 1]} : vector<2x128xf32> to vector<2x64xf32>
    %62 = vector.extract_strided_slice %57 {offsets = [0, 64], sizes = [2, 64], strides = [1, 1]} : vector<2x128xf32> to vector<2x64xf32>
    %63 = arith.mulf %60, %34 : vector<2x64xf32>
    %64 = arith.mulf %59, %61 : vector<2x64xf32>
    %65 = arith.addf %63, %64 : vector<2x64xf32>
    %66 = math.tanh %65 : vector<2x64xf32>
    %67 = arith.mulf %62, %66 : vector<2x64xf32>
    %68 = tpu.concatenate %36, %5 in 1 : vector<2x64xf32>, vector<2x64xf32> -> vector<2x128xf32>
    %c0_29 = arith.constant 0 : index
    %c0_30 = arith.constant 0 : index
    %69 = vector.load %arg4[%c0_29, %c0_30] : memref<128x256xf32, #tpu.memory_space<vmem>>, vector<128x256xf32>
    %cst_31 = arith.constant dense<0.000000e+00> : vector<2x256xf32>
    %70 = tpu.matmul %68, %69, %cst_31 {dimension_numbers = #tpu.dot_dimension_numbers<[1], [0], [0], [1], [0, 0, 1, 1], [], []>} : vector<2x128xf32>, vector<128x256xf32>, vector<2x256xf32> -> vector<2x256xf32>
    %71 = vector.broadcast %1 : vector<1x256xf32> to vector<2x256xf32>
    %72 = arith.addf %70, %71 : vector<2x256xf32>
    %73 = vector.extract_strided_slice %72 {offsets = [0, 0], sizes = [2, 128], strides = [1, 1]} : vector<2x256xf32> to vector<2x128xf32>
    %74 = vector.extract_strided_slice %72 {offsets = [0, 128], sizes = [2, 128], strides = [1, 1]} : vector<2x256xf32> to vector<2x128xf32>
    %75 = arith.negf %73 : vector<2x128xf32>
    %76 = math.exp %75 : vector<2x128xf32>
    %cst_32 = arith.constant 1.000000e+00 : f32
    %77 = vector.broadcast %cst_32 : f32 to vector<2x128xf32>
    %78 = arith.addf %77, %76 : vector<2x128xf32>
    %79 = arith.divf %77, %78 : vector<2x128xf32>
    %80 = arith.negf %74 : vector<2x128xf32>
    %81 = math.exp %80 : vector<2x128xf32>
    %cst_33 = arith.constant 1.000000e+00 : f32
    %82 = vector.broadcast %cst_33 : f32 to vector<2x128xf32>
    %83 = arith.addf %82, %81 : vector<2x128xf32>
    %84 = arith.divf %82, %83 : vector<2x128xf32>
    %85 = math.tanh %74 : vector<2x128xf32>
    %86 = vector.extract_strided_slice %79 {offsets = [0, 0], sizes = [2, 64], strides = [1, 1]} : vector<2x128xf32> to vector<2x64xf32>
    %87 = vector.extract_strided_slice %79 {offsets = [0, 64], sizes = [2, 64], strides = [1, 1]} : vector<2x128xf32> to vector<2x64xf32>
    %88 = vector.extract_strided_slice %85 {offsets = [0, 0], sizes = [2, 64], strides = [1, 1]} : vector<2x128xf32> to vector<2x64xf32>
    %89 = vector.extract_strided_slice %84 {offsets = [0, 64], sizes = [2, 64], strides = [1, 1]} : vector<2x128xf32> to vector<2x64xf32>
    %90 = arith.mulf %87, %5 : vector<2x64xf32>
    %91 = arith.mulf %86, %88 : vector<2x64xf32>
    %92 = arith.addf %90, %91 : vector<2x64xf32>
    %93 = math.tanh %92 : vector<2x64xf32>
    %94 = arith.mulf %89, %93 : vector<2x64xf32>
    %c2 = arith.constant 2 : index
    %c0_34 = arith.constant 0 : index
    %c0_35 = arith.constant 0 : index
    %95 = vector.load %arg0[%c2, %c0_34, %c0_35] : memref<8x2x8xf32, #tpu.memory_space<vmem>>, vector<1x2x8xf32>
    %96 = vector.shape_cast %95 : vector<1x2x8xf32> to vector<2x8xf32>
    %c0_36 = arith.constant 0 : index
    %c0_37 = arith.constant 0 : index
    %97 = vector.load %arg1[%c0_36, %c0_37] : memref<8x256xf32, #tpu.memory_space<vmem>>, vector<8x256xf32>
    %cst_38 = arith.constant dense<0.000000e+00> : vector<2x256xf32>
    %98 = tpu.matmul %96, %97, %cst_38 {dimension_numbers = #tpu.dot_dimension_numbers<[1], [0], [0], [1], [0, 0, 1, 1], [], []>} : vector<2x8xf32>, vector<8x256xf32>, vector<2x256xf32> -> vector<2x256xf32>
    %c0_39 = arith.constant 0 : index
    %c0_40 = arith.constant 0 : index
    %99 = vector.load %arg2[%c0_39, %c0_40] : memref<64x256xf32, #tpu.memory_space<vmem>>, vector<64x256xf32>
    %cst_41 = arith.constant dense<0.000000e+00> : vector<2x256xf32>
    %100 = tpu.matmul %67, %99, %cst_41 {dimension_numbers = #tpu.dot_dimension_numbers<[1], [0], [0], [1], [0, 0, 1, 1], [], []>} : vector<2x64xf32>, vector<64x256xf32>, vector<2x256xf32> -> vector<2x256xf32>
    %101 = arith.addf %98, %100 : vector<2x256xf32>
    %102 = vector.broadcast %0 : vector<1x256xf32> to vector<2x256xf32>
    %103 = arith.addf %101, %102 : vector<2x256xf32>
    %104 = vector.extract_strided_slice %103 {offsets = [0, 0], sizes = [2, 128], strides = [1, 1]} : vector<2x256xf32> to vector<2x128xf32>
    %105 = vector.extract_strided_slice %103 {offsets = [0, 128], sizes = [2, 128], strides = [1, 1]} : vector<2x256xf32> to vector<2x128xf32>
    %106 = arith.negf %104 : vector<2x128xf32>
    %107 = math.exp %106 : vector<2x128xf32>
    %cst_42 = arith.constant 1.000000e+00 : f32
    %108 = vector.broadcast %cst_42 : f32 to vector<2x128xf32>
    %109 = arith.addf %108, %107 : vector<2x128xf32>
    %110 = arith.divf %108, %109 : vector<2x128xf32>
    %111 = arith.negf %105 : vector<2x128xf32>
    %112 = math.exp %111 : vector<2x128xf32>
    %cst_43 = arith.constant 1.000000e+00 : f32
    %113 = vector.broadcast %cst_43 : f32 to vector<2x128xf32>
    %114 = arith.addf %113, %112 : vector<2x128xf32>
    %115 = arith.divf %113, %114 : vector<2x128xf32>
    %116 = math.tanh %105 : vector<2x128xf32>
    %117 = vector.extract_strided_slice %110 {offsets = [0, 0], sizes = [2, 64], strides = [1, 1]} : vector<2x128xf32> to vector<2x64xf32>
    %118 = vector.extract_strided_slice %110 {offsets = [0, 64], sizes = [2, 64], strides = [1, 1]} : vector<2x128xf32> to vector<2x64xf32>
    %119 = vector.extract_strided_slice %116 {offsets = [0, 0], sizes = [2, 64], strides = [1, 1]} : vector<2x128xf32> to vector<2x64xf32>
    %120 = vector.extract_strided_slice %115 {offsets = [0, 64], sizes = [2, 64], strides = [1, 1]} : vector<2x128xf32> to vector<2x64xf32>
    %121 = arith.mulf %118, %65 : vector<2x64xf32>
    %122 = arith.mulf %117, %119 : vector<2x64xf32>
    %123 = arith.addf %121, %122 : vector<2x64xf32>
    %124 = math.tanh %123 : vector<2x64xf32>
    %125 = arith.mulf %120, %124 : vector<2x64xf32>
    %126 = tpu.concatenate %67, %94 in 1 : vector<2x64xf32>, vector<2x64xf32> -> vector<2x128xf32>
    %c0_44 = arith.constant 0 : index
    %c0_45 = arith.constant 0 : index
    %127 = vector.load %arg4[%c0_44, %c0_45] : memref<128x256xf32, #tpu.memory_space<vmem>>, vector<128x256xf32>
    %cst_46 = arith.constant dense<0.000000e+00> : vector<2x256xf32>
    %128 = tpu.matmul %126, %127, %cst_46 {dimension_numbers = #tpu.dot_dimension_numbers<[1], [0], [0], [1], [0, 0, 1, 1], [], []>} : vector<2x128xf32>, vector<128x256xf32>, vector<2x256xf32> -> vector<2x256xf32>
    %129 = vector.broadcast %1 : vector<1x256xf32> to vector<2x256xf32>
    %130 = arith.addf %128, %129 : vector<2x256xf32>
    %131 = vector.extract_strided_slice %130 {offsets = [0, 0], sizes = [2, 128], strides = [1, 1]} : vector<2x256xf32> to vector<2x128xf32>
    %132 = vector.extract_strided_slice %130 {offsets = [0, 128], sizes = [2, 128], strides = [1, 1]} : vector<2x256xf32> to vector<2x128xf32>
    %133 = arith.negf %131 : vector<2x128xf32>
    %134 = math.exp %133 : vector<2x128xf32>
    %cst_47 = arith.constant 1.000000e+00 : f32
    %135 = vector.broadcast %cst_47 : f32 to vector<2x128xf32>
    %136 = arith.addf %135, %134 : vector<2x128xf32>
    %137 = arith.divf %135, %136 : vector<2x128xf32>
    %138 = arith.negf %132 : vector<2x128xf32>
    %139 = math.exp %138 : vector<2x128xf32>
    %cst_48 = arith.constant 1.000000e+00 : f32
    %140 = vector.broadcast %cst_48 : f32 to vector<2x128xf32>
    %141 = arith.addf %140, %139 : vector<2x128xf32>
    %142 = arith.divf %140, %141 : vector<2x128xf32>
    %143 = math.tanh %132 : vector<2x128xf32>
    %144 = vector.extract_strided_slice %137 {offsets = [0, 0], sizes = [2, 64], strides = [1, 1]} : vector<2x128xf32> to vector<2x64xf32>
    %145 = vector.extract_strided_slice %137 {offsets = [0, 64], sizes = [2, 64], strides = [1, 1]} : vector<2x128xf32> to vector<2x64xf32>
    %146 = vector.extract_strided_slice %143 {offsets = [0, 0], sizes = [2, 64], strides = [1, 1]} : vector<2x128xf32> to vector<2x64xf32>
    %147 = vector.extract_strided_slice %142 {offsets = [0, 64], sizes = [2, 64], strides = [1, 1]} : vector<2x128xf32> to vector<2x64xf32>
    %148 = arith.mulf %145, %92 : vector<2x64xf32>
    %149 = arith.mulf %144, %146 : vector<2x64xf32>
    %150 = arith.addf %148, %149 : vector<2x64xf32>
    %151 = math.tanh %150 : vector<2x64xf32>
    %152 = arith.mulf %147, %151 : vector<2x64xf32>
    %153 = tpu.concatenate %94, %5 in 1 : vector<2x64xf32>, vector<2x64xf32> -> vector<2x128xf32>
    %c0_49 = arith.constant 0 : index
    %c0_50 = arith.constant 0 : index
    %154 = vector.load %arg6[%c0_49, %c0_50] : memref<128x256xf32, #tpu.memory_space<vmem>>, vector<128x256xf32>
    %cst_51 = arith.constant dense<0.000000e+00> : vector<2x256xf32>
    %155 = tpu.matmul %153, %154, %cst_51 {dimension_numbers = #tpu.dot_dimension_numbers<[1], [0], [0], [1], [0, 0, 1, 1], [], []>} : vector<2x128xf32>, vector<128x256xf32>, vector<2x256xf32> -> vector<2x256xf32>
    %156 = vector.broadcast %2 : vector<1x256xf32> to vector<2x256xf32>
    %157 = arith.addf %155, %156 : vector<2x256xf32>
    %158 = vector.extract_strided_slice %157 {offsets = [0, 0], sizes = [2, 128], strides = [1, 1]} : vector<2x256xf32> to vector<2x128xf32>
    %159 = vector.extract_strided_slice %157 {offsets = [0, 128], sizes = [2, 128], strides = [1, 1]} : vector<2x256xf32> to vector<2x128xf32>
    %160 = arith.negf %158 : vector<2x128xf32>
    %161 = math.exp %160 : vector<2x128xf32>
    %cst_52 = arith.constant 1.000000e+00 : f32
    %162 = vector.broadcast %cst_52 : f32 to vector<2x128xf32>
    %163 = arith.addf %162, %161 : vector<2x128xf32>
    %164 = arith.divf %162, %163 : vector<2x128xf32>
    %165 = arith.negf %159 : vector<2x128xf32>
    %166 = math.exp %165 : vector<2x128xf32>
    %cst_53 = arith.constant 1.000000e+00 : f32
    %167 = vector.broadcast %cst_53 : f32 to vector<2x128xf32>
    %168 = arith.addf %167, %166 : vector<2x128xf32>
    %169 = arith.divf %167, %168 : vector<2x128xf32>
    %170 = math.tanh %159 : vector<2x128xf32>
    %171 = vector.extract_strided_slice %164 {offsets = [0, 0], sizes = [2, 64], strides = [1, 1]} : vector<2x128xf32> to vector<2x64xf32>
    %172 = vector.extract_strided_slice %164 {offsets = [0, 64], sizes = [2, 64], strides = [1, 1]} : vector<2x128xf32> to vector<2x64xf32>
    %173 = vector.extract_strided_slice %170 {offsets = [0, 0], sizes = [2, 64], strides = [1, 1]} : vector<2x128xf32> to vector<2x64xf32>
    %174 = vector.extract_strided_slice %169 {offsets = [0, 64], sizes = [2, 64], strides = [1, 1]} : vector<2x128xf32> to vector<2x64xf32>
    %175 = arith.mulf %172, %5 : vector<2x64xf32>
    %176 = arith.mulf %171, %173 : vector<2x64xf32>
    %177 = arith.addf %175, %176 : vector<2x64xf32>
    %178 = math.tanh %177 : vector<2x64xf32>
    %179 = arith.mulf %174, %178 : vector<2x64xf32>
    %c0_54 = arith.constant 0 : index
    %c0_55 = arith.constant 0 : index
    %180 = vector.load %arg11[%c0_54, %c0_55] : memref<64x64xf32, #tpu.memory_space<vmem>>, vector<2x64xf32>
    tpu.vector_store %arg11[%c0_54, %c0_55], %179 {strides = array<i32>} : memref<64x64xf32, #tpu.memory_space<vmem>>, vector<2x64xf32>,
    %c3 = arith.constant 3 : index
    %c0_56 = arith.constant 0 : index
    %c0_57 = arith.constant 0 : index
    %181 = vector.load %arg0[%c3, %c0_56, %c0_57] : memref<8x2x8xf32, #tpu.memory_space<vmem>>, vector<1x2x8xf32>
    %182 = vector.shape_cast %181 : vector<1x2x8xf32> to vector<2x8xf32>
    %c0_58 = arith.constant 0 : index
    %c0_59 = arith.constant 0 : index
    %183 = vector.load %arg1[%c0_58, %c0_59] : memref<8x256xf32, #tpu.memory_space<vmem>>, vector<8x256xf32>
    %cst_60 = arith.constant dense<0.000000e+00> : vector<2x256xf32>
    %184 = tpu.matmul %182, %183, %cst_60 {dimension_numbers = #tpu.dot_dimension_numbers<[1], [0], [0], [1], [0, 0, 1, 1], [], []>} : vector<2x8xf32>, vector<8x256xf32>, vector<2x256xf32> -> vector<2x256xf32>
    %c0_61 = arith.constant 0 : index
    %c0_62 = arith.constant 0 : index
    %185 = vector.load %arg2[%c0_61, %c0_62] : memref<64x256xf32, #tpu.memory_space<vmem>>, vector<64x256xf32>
    %cst_63 = arith.constant dense<0.000000e+00> : vector<2x256xf32>
    %186 = tpu.matmul %125, %185, %cst_63 {dimension_numbers = #tpu.dot_dimension_numbers<[1], [0], [0], [1], [0, 0, 1, 1], [], []>} : vector<2x64xf32>, vector<64x256xf32>, vector<2x256xf32> -> vector<2x256xf32>
    %187 = arith.addf %184, %186 : vector<2x256xf32>
    %188 = vector.broadcast %0 : vector<1x256xf32> to vector<2x256xf32>
    %189 = arith.addf %187, %188 : vector<2x256xf32>
    %190 = vector.extract_strided_slice %189 {offsets = [0, 0], sizes = [2, 128], strides = [1, 1]} : vector<2x256xf32> to vector<2x128xf32>
    %191 = vector.extract_strided_slice %189 {offsets = [0, 128], sizes = [2, 128], strides = [1, 1]} : vector<2x256xf32> to vector<2x128xf32>
    %192 = arith.negf %190 : vector<2x128xf32>
    %193 = math.exp %192 : vector<2x128xf32>
    %cst_64 = arith.constant 1.000000e+00 : f32
    %194 = vector.broadcast %cst_64 : f32 to vector<2x128xf32>
    %195 = arith.addf %194, %193 : vector<2x128xf32>
    %196 = arith.divf %194, %195 : vector<2x128xf32>
    %197 = arith.negf %191 : vector<2x128xf32>
    %198 = math.exp %197 : vector<2x128xf32>
    %cst_65 = arith.constant 1.000000e+00 : f32
    %199 = vector.broadcast %cst_65 : f32 to vector<2x128xf32>
    %200 = arith.addf %199, %198 : vector<2x128xf32>
    %201 = arith.divf %199, %200 : vector<2x128xf32>
    %202 = math.tanh %191 : vector<2x128xf32>
    %203 = vector.extract_strided_slice %196 {offsets = [0, 0], sizes = [2, 64], strides = [1, 1]} : vector<2x128xf32> to vector<2x64xf32>
    %204 = vector.extract_strided_slice %196 {offsets = [0, 64], sizes = [2, 64], strides = [1, 1]} : vector<2x128xf32> to vector<2x64xf32>
    %205 = vector.extract_strided_slice %202 {offsets = [0, 0], sizes = [2, 64], strides = [1, 1]} : vector<2x128xf32> to vector<2x64xf32>
    %206 = vector.extract_strided_slice %201 {offsets = [0, 64], sizes = [2, 64], strides = [1, 1]} : vector<2x128xf32> to vector<2x64xf32>
    %207 = arith.mulf %204, %123 : vector<2x64xf32>
    %208 = arith.mulf %203, %205 : vector<2x64xf32>
    %209 = arith.addf %207, %208 : vector<2x64xf32>
    %210 = math.tanh %209 : vector<2x64xf32>
    %211 = arith.mulf %206, %210 : vector<2x64xf32>
    %212 = tpu.concatenate %125, %152 in 1 : vector<2x64xf32>, vector<2x64xf32> -> vector<2x128xf32>
    %c0_66 = arith.constant 0 : index
    %c0_67 = arith.constant 0 : index
    %213 = vector.load %arg4[%c0_66, %c0_67] : memref<128x256xf32, #tpu.memory_space<vmem>>, vector<128x256xf32>
    %cst_68 = arith.constant dense<0.000000e+00> : vector<2x256xf32>
    %214 = tpu.matmul %212, %213, %cst_68 {dimension_numbers = #tpu.dot_dimension_numbers<[1], [0], [0], [1], [0, 0, 1, 1], [], []>} : vector<2x128xf32>, vector<128x256xf32>, vector<2x256xf32> -> vector<2x256xf32>
    %215 = vector.broadcast %1 : vector<1x256xf32> to vector<2x256xf32>
    %216 = arith.addf %214, %215 : vector<2x256xf32>
    %217 = vector.extract_strided_slice %216 {offsets = [0, 0], sizes = [2, 128], strides = [1, 1]} : vector<2x256xf32> to vector<2x128xf32>
    %218 = vector.extract_strided_slice %216 {offsets = [0, 128], sizes = [2, 128], strides = [1, 1]} : vector<2x256xf32> to vector<2x128xf32>
    %219 = arith.negf %217 : vector<2x128xf32>
    %220 = math.exp %219 : vector<2x128xf32>
    %cst_69 = arith.constant 1.000000e+00 : f32
    %221 = vector.broadcast %cst_69 : f32 to vector<2x128xf32>
    %222 = arith.addf %221, %220 : vector<2x128xf32>
    %223 = arith.divf %221, %222 : vector<2x128xf32>
    %224 = arith.negf %218 : vector<2x128xf32>
    %225 = math.exp %224 : vector<2x128xf32>
    %cst_70 = arith.constant 1.000000e+00 : f32
    %226 = vector.broadcast %cst_70 : f32 to vector<2x128xf32>
    %227 = arith.addf %226, %225 : vector<2x128xf32>
    %228 = arith.divf %226, %227 : vector<2x128xf32>
    %229 = math.tanh %218 : vector<2x128xf32>
    %230 = vector.extract_strided_slice %223 {offsets = [0, 0], sizes = [2, 64], strides = [1, 1]} : vector<2x128xf32> to vector<2x64xf32>
    %231 = vector.extract_strided_slice %223 {offsets = [0, 64], sizes = [2, 64], strides = [1, 1]} : vector<2x128xf32> to vector<2x64xf32>
    %232 = vector.extract_strided_slice %229 {offsets = [0, 0], sizes = [2, 64], strides = [1, 1]} : vector<2x128xf32> to vector<2x64xf32>
    %233 = vector.extract_strided_slice %228 {offsets = [0, 64], sizes = [2, 64], strides = [1, 1]} : vector<2x128xf32> to vector<2x64xf32>
    %234 = arith.mulf %231, %150 : vector<2x64xf32>
    %235 = arith.mulf %230, %232 : vector<2x64xf32>
    %236 = arith.addf %234, %235 : vector<2x64xf32>
    %237 = math.tanh %236 : vector<2x64xf32>
    %238 = arith.mulf %233, %237 : vector<2x64xf32>
    %239 = tpu.concatenate %152, %179 in 1 : vector<2x64xf32>, vector<2x64xf32> -> vector<2x128xf32>
    %c0_71 = arith.constant 0 : index
    %c0_72 = arith.constant 0 : index
    %240 = vector.load %arg6[%c0_71, %c0_72] : memref<128x256xf32, #tpu.memory_space<vmem>>, vector<128x256xf32>
    %cst_73 = arith.constant dense<0.000000e+00> : vector<2x256xf32>
    %241 = tpu.matmul %239, %240, %cst_73 {dimension_numbers = #tpu.dot_dimension_numbers<[1], [0], [0], [1], [0, 0, 1, 1], [], []>} : vector<2x128xf32>, vector<128x256xf32>, vector<2x256xf32> -> vector<2x256xf32>
    %242 = vector.broadcast %2 : vector<1x256xf32> to vector<2x256xf32>
    %243 = arith.addf %241, %242 : vector<2x256xf32>
    %244 = vector.extract_strided_slice %243 {offsets = [0, 0], sizes = [2, 128], strides = [1, 1]} : vector<2x256xf32> to vector<2x128xf32>
    %245 = vector.extract_strided_slice %243 {offsets = [0, 128], sizes = [2, 128], strides = [1, 1]} : vector<2x256xf32> to vector<2x128xf32>
    %246 = arith.negf %244 : vector<2x128xf32>
    %247 = math.exp %246 : vector<2x128xf32>
    %cst_74 = arith.constant 1.000000e+00 : f32
    %248 = vector.broadcast %cst_74 : f32 to vector<2x128xf32>
    %249 = arith.addf %248, %247 : vector<2x128xf32>
    %250 = arith.divf %248, %249 : vector<2x128xf32>
    %251 = arith.negf %245 : vector<2x128xf32>
    %252 = math.exp %251 : vector<2x128xf32>
    %cst_75 = arith.constant 1.000000e+00 : f32
    %253 = vector.broadcast %cst_75 : f32 to vector<2x128xf32>
    %254 = arith.addf %253, %252 : vector<2x128xf32>
    %255 = arith.divf %253, %254 : vector<2x128xf32>
    %256 = math.tanh %245 : vector<2x128xf32>
    %257 = vector.extract_strided_slice %250 {offsets = [0, 0], sizes = [2, 64], strides = [1, 1]} : vector<2x128xf32> to vector<2x64xf32>
    %258 = vector.extract_strided_slice %250 {offsets = [0, 64], sizes = [2, 64], strides = [1, 1]} : vector<2x128xf32> to vector<2x64xf32>
    %259 = vector.extract_strided_slice %256 {offsets = [0, 0], sizes = [2, 64], strides = [1, 1]} : vector<2x128xf32> to vector<2x64xf32>
    %260 = vector.extract_strided_slice %255 {offsets = [0, 64], sizes = [2, 64], strides = [1, 1]} : vector<2x128xf32> to vector<2x64xf32>
    %261 = arith.mulf %258, %177 : vector<2x64xf32>
    %262 = arith.mulf %257, %259 : vector<2x64xf32>
    %263 = arith.addf %261, %262 : vector<2x64xf32>
    %264 = math.tanh %263 : vector<2x64xf32>
    %265 = arith.mulf %260, %264 : vector<2x64xf32>
    %c8 = arith.constant 8 : index
    %c0_76 = arith.constant 0 : index
    %266 = vector.load %arg11[%c8, %c0_76] : memref<64x64xf32, #tpu.memory_space<vmem>>, vector<2x64xf32>
    tpu.vector_store %arg11[%c8, %c0_76], %265 {strides = array<i32>} : memref<64x64xf32, #tpu.memory_space<vmem>>, vector<2x64xf32>,
    %c4 = arith.constant 4 : index
    %c0_77 = arith.constant 0 : index
    %c0_78 = arith.constant 0 : index
    %267 = vector.load %arg0[%c4, %c0_77, %c0_78] : memref<8x2x8xf32, #tpu.memory_space<vmem>>, vector<1x2x8xf32>
    %268 = vector.shape_cast %267 : vector<1x2x8xf32> to vector<2x8xf32>
    %c0_79 = arith.constant 0 : index
    %c0_80 = arith.constant 0 : index
    %269 = vector.load %arg1[%c0_79, %c0_80] : memref<8x256xf32, #tpu.memory_space<vmem>>, vector<8x256xf32>
    %cst_81 = arith.constant dense<0.000000e+00> : vector<2x256xf32>
    %270 = tpu.matmul %268, %269, %cst_81 {dimension_numbers = #tpu.dot_dimension_numbers<[1], [0], [0], [1], [0, 0, 1, 1], [], []>} : vector<2x8xf32>, vector<8x256xf32>, vector<2x256xf32> -> vector<2x256xf32>
    %c0_82 = arith.constant 0 : index
    %c0_83 = arith.constant 0 : index
    %271 = vector.load %arg2[%c0_82, %c0_83] : memref<64x256xf32, #tpu.memory_space<vmem>>, vector<64x256xf32>
    %cst_84 = arith.constant dense<0.000000e+00> : vector<2x256xf32>
    %272 = tpu.matmul %211, %271, %cst_84 {dimension_numbers = #tpu.dot_dimension_numbers<[1], [0], [0], [1], [0, 0, 1, 1], [], []>} : vector<2x64xf32>, vector<64x256xf32>, vector<2x256xf32> -> vector<2x256xf32>
    %273 = arith.addf %270, %272 : vector<2x256xf32>
    %274 = vector.broadcast %0 : vector<1x256xf32> to vector<2x256xf32>
    %275 = arith.addf %273, %274 : vector<2x256xf32>
    %276 = vector.extract_strided_slice %275 {offsets = [0, 0], sizes = [2, 128], strides = [1, 1]} : vector<2x256xf32> to vector<2x128xf32>
    %277 = vector.extract_strided_slice %275 {offsets = [0, 128], sizes = [2, 128], strides = [1, 1]} : vector<2x256xf32> to vector<2x128xf32>
    %278 = arith.negf %276 : vector<2x128xf32>
    %279 = math.exp %278 : vector<2x128xf32>
    %cst_85 = arith.constant 1.000000e+00 : f32
    %280 = vector.broadcast %cst_85 : f32 to vector<2x128xf32>
    %281 = arith.addf %280, %279 : vector<2x128xf32>
    %282 = arith.divf %280, %281 : vector<2x128xf32>
    %283 = arith.negf %277 : vector<2x128xf32>
    %284 = math.exp %283 : vector<2x128xf32>
    %cst_86 = arith.constant 1.000000e+00 : f32
    %285 = vector.broadcast %cst_86 : f32 to vector<2x128xf32>
    %286 = arith.addf %285, %284 : vector<2x128xf32>
    %287 = arith.divf %285, %286 : vector<2x128xf32>
    %288 = math.tanh %277 : vector<2x128xf32>
    %289 = vector.extract_strided_slice %282 {offsets = [0, 0], sizes = [2, 64], strides = [1, 1]} : vector<2x128xf32> to vector<2x64xf32>
    %290 = vector.extract_strided_slice %282 {offsets = [0, 64], sizes = [2, 64], strides = [1, 1]} : vector<2x128xf32> to vector<2x64xf32>
    %291 = vector.extract_strided_slice %288 {offsets = [0, 0], sizes = [2, 64], strides = [1, 1]} : vector<2x128xf32> to vector<2x64xf32>
    %292 = vector.extract_strided_slice %287 {offsets = [0, 64], sizes = [2, 64], strides = [1, 1]} : vector<2x128xf32> to vector<2x64xf32>
    %293 = arith.mulf %290, %209 : vector<2x64xf32>
    %294 = arith.mulf %289, %291 : vector<2x64xf32>
    %295 = arith.addf %293, %294 : vector<2x64xf32>
    %296 = math.tanh %295 : vector<2x64xf32>
    %297 = arith.mulf %292, %296 : vector<2x64xf32>
    %298 = tpu.concatenate %211, %238 in 1 : vector<2x64xf32>, vector<2x64xf32> -> vector<2x128xf32>
    %c0_87 = arith.constant 0 : index
    %c0_88 = arith.constant 0 : index
    %299 = vector.load %arg4[%c0_87, %c0_88] : memref<128x256xf32, #tpu.memory_space<vmem>>, vector<128x256xf32>
    %cst_89 = arith.constant dense<0.000000e+00> : vector<2x256xf32>
    %300 = tpu.matmul %298, %299, %cst_89 {dimension_numbers = #tpu.dot_dimension_numbers<[1], [0], [0], [1], [0, 0, 1, 1], [], []>} : vector<2x128xf32>, vector<128x256xf32>, vector<2x256xf32> -> vector<2x256xf32>
    %301 = vector.broadcast %1 : vector<1x256xf32> to vector<2x256xf32>
    %302 = arith.addf %300, %301 : vector<2x256xf32>
    %303 = vector.extract_strided_slice %302 {offsets = [0, 0], sizes = [2, 128], strides = [1, 1]} : vector<2x256xf32> to vector<2x128xf32>
    %304 = vector.extract_strided_slice %302 {offsets = [0, 128], sizes = [2, 128], strides = [1, 1]} : vector<2x256xf32> to vector<2x128xf32>
    %305 = arith.negf %303 : vector<2x128xf32>
    %306 = math.exp %305 : vector<2x128xf32>
    %cst_90 = arith.constant 1.000000e+00 : f32
    %307 = vector.broadcast %cst_90 : f32 to vector<2x128xf32>
    %308 = arith.addf %307, %306 : vector<2x128xf32>
    %309 = arith.divf %307, %308 : vector<2x128xf32>
    %310 = arith.negf %304 : vector<2x128xf32>
    %311 = math.exp %310 : vector<2x128xf32>
    %cst_91 = arith.constant 1.000000e+00 : f32
    %312 = vector.broadcast %cst_91 : f32 to vector<2x128xf32>
    %313 = arith.addf %312, %311 : vector<2x128xf32>
    %314 = arith.divf %312, %313 : vector<2x128xf32>
    %315 = math.tanh %304 : vector<2x128xf32>
    %316 = vector.extract_strided_slice %309 {offsets = [0, 0], sizes = [2, 64], strides = [1, 1]} : vector<2x128xf32> to vector<2x64xf32>
    %317 = vector.extract_strided_slice %309 {offsets = [0, 64], sizes = [2, 64], strides = [1, 1]} : vector<2x128xf32> to vector<2x64xf32>
    %318 = vector.extract_strided_slice %315 {offsets = [0, 0], sizes = [2, 64], strides = [1, 1]} : vector<2x128xf32> to vector<2x64xf32>
    %319 = vector.extract_strided_slice %314 {offsets = [0, 64], sizes = [2, 64], strides = [1, 1]} : vector<2x128xf32> to vector<2x64xf32>
    %320 = arith.mulf %317, %236 : vector<2x64xf32>
    %321 = arith.mulf %316, %318 : vector<2x64xf32>
    %322 = arith.addf %320, %321 : vector<2x64xf32>
    %323 = math.tanh %322 : vector<2x64xf32>
    %324 = arith.mulf %319, %323 : vector<2x64xf32>
    %325 = tpu.concatenate %238, %265 in 1 : vector<2x64xf32>, vector<2x64xf32> -> vector<2x128xf32>
    %c0_92 = arith.constant 0 : index
    %c0_93 = arith.constant 0 : index
    %326 = vector.load %arg6[%c0_92, %c0_93] : memref<128x256xf32, #tpu.memory_space<vmem>>, vector<128x256xf32>
    %cst_94 = arith.constant dense<0.000000e+00> : vector<2x256xf32>
    %327 = tpu.matmul %325, %326, %cst_94 {dimension_numbers = #tpu.dot_dimension_numbers<[1], [0], [0], [1], [0, 0, 1, 1], [], []>} : vector<2x128xf32>, vector<128x256xf32>, vector<2x256xf32> -> vector<2x256xf32>
    %328 = vector.broadcast %2 : vector<1x256xf32> to vector<2x256xf32>
    %329 = arith.addf %327, %328 : vector<2x256xf32>
    %330 = vector.extract_strided_slice %329 {offsets = [0, 0], sizes = [2, 128], strides = [1, 1]} : vector<2x256xf32> to vector<2x128xf32>
    %331 = vector.extract_strided_slice %329 {offsets = [0, 128], sizes = [2, 128], strides = [1, 1]} : vector<2x256xf32> to vector<2x128xf32>
    %332 = arith.negf %330 : vector<2x128xf32>
    %333 = math.exp %332 : vector<2x128xf32>
    %cst_95 = arith.constant 1.000000e+00 : f32
    %334 = vector.broadcast %cst_95 : f32 to vector<2x128xf32>
    %335 = arith.addf %334, %333 : vector<2x128xf32>
    %336 = arith.divf %334, %335 : vector<2x128xf32>
    %337 = arith.negf %331 : vector<2x128xf32>
    %338 = math.exp %337 : vector<2x128xf32>
    %cst_96 = arith.constant 1.000000e+00 : f32
    %339 = vector.broadcast %cst_96 : f32 to vector<2x128xf32>
    %340 = arith.addf %339, %338 : vector<2x128xf32>
    %341 = arith.divf %339, %340 : vector<2x128xf32>
    %342 = math.tanh %331 : vector<2x128xf32>
    %343 = vector.extract_strided_slice %336 {offsets = [0, 0], sizes = [2, 64], strides = [1, 1]} : vector<2x128xf32> to vector<2x64xf32>
    %344 = vector.extract_strided_slice %336 {offsets = [0, 64], sizes = [2, 64], strides = [1, 1]} : vector<2x128xf32> to vector<2x64xf32>
    %345 = vector.extract_strided_slice %342 {offsets = [0, 0], sizes = [2, 64], strides = [1, 1]} : vector<2x128xf32> to vector<2x64xf32>
    %346 = vector.extract_strided_slice %341 {offsets = [0, 64], sizes = [2, 64], strides = [1, 1]} : vector<2x128xf32> to vector<2x64xf32>
    %347 = arith.mulf %344, %263 : vector<2x64xf32>
    %348 = arith.mulf %343, %345 : vector<2x64xf32>
    %349 = arith.addf %347, %348 : vector<2x64xf32>
    %350 = math.tanh %349 : vector<2x64xf32>
    %351 = arith.mulf %346, %350 : vector<2x64xf32>
    %c16 = arith.constant 16 : index
    %c0_97 = arith.constant 0 : index
    %352 = vector.load %arg11[%c16, %c0_97] : memref<64x64xf32, #tpu.memory_space<vmem>>, vector<2x64xf32>
    tpu.vector_store %arg11[%c16, %c0_97], %351 {strides = array<i32>} : memref<64x64xf32, #tpu.memory_space<vmem>>, vector<2x64xf32>,
    %c5 = arith.constant 5 : index
    %c0_98 = arith.constant 0 : index
    %c0_99 = arith.constant 0 : index
    %353 = vector.load %arg0[%c5, %c0_98, %c0_99] : memref<8x2x8xf32, #tpu.memory_space<vmem>>, vector<1x2x8xf32>
    %354 = vector.shape_cast %353 : vector<1x2x8xf32> to vector<2x8xf32>
    %c0_100 = arith.constant 0 : index
    %c0_101 = arith.constant 0 : index
    %355 = vector.load %arg1[%c0_100, %c0_101] : memref<8x256xf32, #tpu.memory_space<vmem>>, vector<8x256xf32>
    %cst_102 = arith.constant dense<0.000000e+00> : vector<2x256xf32>
    %356 = tpu.matmul %354, %355, %cst_102 {dimension_numbers = #tpu.dot_dimension_numbers<[1], [0], [0], [1], [0, 0, 1, 1], [], []>} : vector<2x8xf32>, vector<8x256xf32>, vector<2x256xf32> -> vector<2x256xf32>
    %c0_103 = arith.constant 0 : index
    %c0_104 = arith.constant 0 : index
    %357 = vector.load %arg2[%c0_103, %c0_104] : memref<64x256xf32, #tpu.memory_space<vmem>>, vector<64x256xf32>
    %cst_105 = arith.constant dense<0.000000e+00> : vector<2x256xf32>
    %358 = tpu.matmul %297, %357, %cst_105 {dimension_numbers = #tpu.dot_dimension_numbers<[1], [0], [0], [1], [0, 0, 1, 1], [], []>} : vector<2x64xf32>, vector<64x256xf32>, vector<2x256xf32> -> vector<2x256xf32>
    %359 = arith.addf %356, %358 : vector<2x256xf32>
    %360 = vector.broadcast %0 : vector<1x256xf32> to vector<2x256xf32>
    %361 = arith.addf %359, %360 : vector<2x256xf32>
    %362 = vector.extract_strided_slice %361 {offsets = [0, 0], sizes = [2, 128], strides = [1, 1]} : vector<2x256xf32> to vector<2x128xf32>
    %363 = vector.extract_strided_slice %361 {offsets = [0, 128], sizes = [2, 128], strides = [1, 1]} : vector<2x256xf32> to vector<2x128xf32>
    %364 = arith.negf %362 : vector<2x128xf32>
    %365 = math.exp %364 : vector<2x128xf32>
    %cst_106 = arith.constant 1.000000e+00 : f32
    %366 = vector.broadcast %cst_106 : f32 to vector<2x128xf32>
    %367 = arith.addf %366, %365 : vector<2x128xf32>
    %368 = arith.divf %366, %367 : vector<2x128xf32>
    %369 = arith.negf %363 : vector<2x128xf32>
    %370 = math.exp %369 : vector<2x128xf32>
    %cst_107 = arith.constant 1.000000e+00 : f32
    %371 = vector.broadcast %cst_107 : f32 to vector<2x128xf32>
    %372 = arith.addf %371, %370 : vector<2x128xf32>
    %373 = arith.divf %371, %372 : vector<2x128xf32>
    %374 = math.tanh %363 : vector<2x128xf32>
    %375 = vector.extract_strided_slice %368 {offsets = [0, 0], sizes = [2, 64], strides = [1, 1]} : vector<2x128xf32> to vector<2x64xf32>
    %376 = vector.extract_strided_slice %368 {offsets = [0, 64], sizes = [2, 64], strides = [1, 1]} : vector<2x128xf32> to vector<2x64xf32>
    %377 = vector.extract_strided_slice %374 {offsets = [0, 0], sizes = [2, 64], strides = [1, 1]} : vector<2x128xf32> to vector<2x64xf32>
    %378 = vector.extract_strided_slice %373 {offsets = [0, 64], sizes = [2, 64], strides = [1, 1]} : vector<2x128xf32> to vector<2x64xf32>
    %379 = arith.mulf %376, %295 : vector<2x64xf32>
    %380 = arith.mulf %375, %377 : vector<2x64xf32>
    %381 = arith.addf %379, %380 : vector<2x64xf32>
    %382 = math.tanh %381 : vector<2x64xf32>
    %383 = arith.mulf %378, %382 : vector<2x64xf32>
    %384 = tpu.concatenate %297, %324 in 1 : vector<2x64xf32>, vector<2x64xf32> -> vector<2x128xf32>
    %c0_108 = arith.constant 0 : index
    %c0_109 = arith.constant 0 : index
    %385 = vector.load %arg4[%c0_108, %c0_109] : memref<128x256xf32, #tpu.memory_space<vmem>>, vector<128x256xf32>
    %cst_110 = arith.constant dense<0.000000e+00> : vector<2x256xf32>
    %386 = tpu.matmul %384, %385, %cst_110 {dimension_numbers = #tpu.dot_dimension_numbers<[1], [0], [0], [1], [0, 0, 1, 1], [], []>} : vector<2x128xf32>, vector<128x256xf32>, vector<2x256xf32> -> vector<2x256xf32>
    %387 = vector.broadcast %1 : vector<1x256xf32> to vector<2x256xf32>
    %388 = arith.addf %386, %387 : vector<2x256xf32>
    %389 = vector.extract_strided_slice %388 {offsets = [0, 0], sizes = [2, 128], strides = [1, 1]} : vector<2x256xf32> to vector<2x128xf32>
    %390 = vector.extract_strided_slice %388 {offsets = [0, 128], sizes = [2, 128], strides = [1, 1]} : vector<2x256xf32> to vector<2x128xf32>
    %391 = arith.negf %389 : vector<2x128xf32>
    %392 = math.exp %391 : vector<2x128xf32>
    %cst_111 = arith.constant 1.000000e+00 : f32
    %393 = vector.broadcast %cst_111 : f32 to vector<2x128xf32>
    %394 = arith.addf %393, %392 : vector<2x128xf32>
    %395 = arith.divf %393, %394 : vector<2x128xf32>
    %396 = arith.negf %390 : vector<2x128xf32>
    %397 = math.exp %396 : vector<2x128xf32>
    %cst_112 = arith.constant 1.000000e+00 : f32
    %398 = vector.broadcast %cst_112 : f32 to vector<2x128xf32>
    %399 = arith.addf %398, %397 : vector<2x128xf32>
    %400 = arith.divf %398, %399 : vector<2x128xf32>
    %401 = math.tanh %390 : vector<2x128xf32>
    %402 = vector.extract_strided_slice %395 {offsets = [0, 0], sizes = [2, 64], strides = [1, 1]} : vector<2x128xf32> to vector<2x64xf32>
    %403 = vector.extract_strided_slice %395 {offsets = [0, 64], sizes = [2, 64], strides = [1, 1]} : vector<2x128xf32> to vector<2x64xf32>
    %404 = vector.extract_strided_slice %401 {offsets = [0, 0], sizes = [2, 64], strides = [1, 1]} : vector<2x128xf32> to vector<2x64xf32>
    %405 = vector.extract_strided_slice %400 {offsets = [0, 64], sizes = [2, 64], strides = [1, 1]} : vector<2x128xf32> to vector<2x64xf32>
    %406 = arith.mulf %403, %322 : vector<2x64xf32>
    %407 = arith.mulf %402, %404 : vector<2x64xf32>
    %408 = arith.addf %406, %407 : vector<2x64xf32>
    %409 = math.tanh %408 : vector<2x64xf32>
    %410 = arith.mulf %405, %409 : vector<2x64xf32>
    %411 = tpu.concatenate %324, %351 in 1 : vector<2x64xf32>, vector<2x64xf32> -> vector<2x128xf32>
    %c0_113 = arith.constant 0 : index
    %c0_114 = arith.constant 0 : index
    %412 = vector.load %arg6[%c0_113, %c0_114] : memref<128x256xf32, #tpu.memory_space<vmem>>, vector<128x256xf32>
    %cst_115 = arith.constant dense<0.000000e+00> : vector<2x256xf32>
    %413 = tpu.matmul %411, %412, %cst_115 {dimension_numbers = #tpu.dot_dimension_numbers<[1], [0], [0], [1], [0, 0, 1, 1], [], []>} : vector<2x128xf32>, vector<128x256xf32>, vector<2x256xf32> -> vector<2x256xf32>
    %414 = vector.broadcast %2 : vector<1x256xf32> to vector<2x256xf32>
    %415 = arith.addf %413, %414 : vector<2x256xf32>
    %416 = vector.extract_strided_slice %415 {offsets = [0, 0], sizes = [2, 128], strides = [1, 1]} : vector<2x256xf32> to vector<2x128xf32>
    %417 = vector.extract_strided_slice %415 {offsets = [0, 128], sizes = [2, 128], strides = [1, 1]} : vector<2x256xf32> to vector<2x128xf32>
    %418 = arith.negf %416 : vector<2x128xf32>
    %419 = math.exp %418 : vector<2x128xf32>
    %cst_116 = arith.constant 1.000000e+00 : f32
    %420 = vector.broadcast %cst_116 : f32 to vector<2x128xf32>
    %421 = arith.addf %420, %419 : vector<2x128xf32>
    %422 = arith.divf %420, %421 : vector<2x128xf32>
    %423 = arith.negf %417 : vector<2x128xf32>
    %424 = math.exp %423 : vector<2x128xf32>
    %cst_117 = arith.constant 1.000000e+00 : f32
    %425 = vector.broadcast %cst_117 : f32 to vector<2x128xf32>
    %426 = arith.addf %425, %424 : vector<2x128xf32>
    %427 = arith.divf %425, %426 : vector<2x128xf32>
    %428 = math.tanh %417 : vector<2x128xf32>
    %429 = vector.extract_strided_slice %422 {offsets = [0, 0], sizes = [2, 64], strides = [1, 1]} : vector<2x128xf32> to vector<2x64xf32>
    %430 = vector.extract_strided_slice %422 {offsets = [0, 64], sizes = [2, 64], strides = [1, 1]} : vector<2x128xf32> to vector<2x64xf32>
    %431 = vector.extract_strided_slice %428 {offsets = [0, 0], sizes = [2, 64], strides = [1, 1]} : vector<2x128xf32> to vector<2x64xf32>
    %432 = vector.extract_strided_slice %427 {offsets = [0, 64], sizes = [2, 64], strides = [1, 1]} : vector<2x128xf32> to vector<2x64xf32>
    %433 = arith.mulf %430, %349 : vector<2x64xf32>
    %434 = arith.mulf %429, %431 : vector<2x64xf32>
    %435 = arith.addf %433, %434 : vector<2x64xf32>
    %436 = math.tanh %435 : vector<2x64xf32>
    %437 = arith.mulf %432, %436 : vector<2x64xf32>
    %c24 = arith.constant 24 : index
    %c0_118 = arith.constant 0 : index
    %438 = vector.load %arg11[%c24, %c0_118] : memref<64x64xf32, #tpu.memory_space<vmem>>, vector<2x64xf32>
    tpu.vector_store %arg11[%c24, %c0_118], %437 {strides = array<i32>} : memref<64x64xf32, #tpu.memory_space<vmem>>, vector<2x64xf32>,
    %c6 = arith.constant 6 : index
    %c0_119 = arith.constant 0 : index
    %c0_120 = arith.constant 0 : index
    %439 = vector.load %arg0[%c6, %c0_119, %c0_120] : memref<8x2x8xf32, #tpu.memory_space<vmem>>, vector<1x2x8xf32>
    %440 = vector.shape_cast %439 : vector<1x2x8xf32> to vector<2x8xf32>
    %c0_121 = arith.constant 0 : index
    %c0_122 = arith.constant 0 : index
    %441 = vector.load %arg1[%c0_121, %c0_122] : memref<8x256xf32, #tpu.memory_space<vmem>>, vector<8x256xf32>
    %cst_123 = arith.constant dense<0.000000e+00> : vector<2x256xf32>
    %442 = tpu.matmul %440, %441, %cst_123 {dimension_numbers = #tpu.dot_dimension_numbers<[1], [0], [0], [1], [0, 0, 1, 1], [], []>} : vector<2x8xf32>, vector<8x256xf32>, vector<2x256xf32> -> vector<2x256xf32>
    %c0_124 = arith.constant 0 : index
    %c0_125 = arith.constant 0 : index
    %443 = vector.load %arg2[%c0_124, %c0_125] : memref<64x256xf32, #tpu.memory_space<vmem>>, vector<64x256xf32>
    %cst_126 = arith.constant dense<0.000000e+00> : vector<2x256xf32>
    %444 = tpu.matmul %383, %443, %cst_126 {dimension_numbers = #tpu.dot_dimension_numbers<[1], [0], [0], [1], [0, 0, 1, 1], [], []>} : vector<2x64xf32>, vector<64x256xf32>, vector<2x256xf32> -> vector<2x256xf32>
    %445 = arith.addf %442, %444 : vector<2x256xf32>
    %446 = vector.broadcast %0 : vector<1x256xf32> to vector<2x256xf32>
    %447 = arith.addf %445, %446 : vector<2x256xf32>
    %448 = vector.extract_strided_slice %447 {offsets = [0, 0], sizes = [2, 128], strides = [1, 1]} : vector<2x256xf32> to vector<2x128xf32>
    %449 = vector.extract_strided_slice %447 {offsets = [0, 128], sizes = [2, 128], strides = [1, 1]} : vector<2x256xf32> to vector<2x128xf32>
    %450 = arith.negf %448 : vector<2x128xf32>
    %451 = math.exp %450 : vector<2x128xf32>
    %cst_127 = arith.constant 1.000000e+00 : f32
    %452 = vector.broadcast %cst_127 : f32 to vector<2x128xf32>
    %453 = arith.addf %452, %451 : vector<2x128xf32>
    %454 = arith.divf %452, %453 : vector<2x128xf32>
    %455 = arith.negf %449 : vector<2x128xf32>
    %456 = math.exp %455 : vector<2x128xf32>
    %cst_128 = arith.constant 1.000000e+00 : f32
    %457 = vector.broadcast %cst_128 : f32 to vector<2x128xf32>
    %458 = arith.addf %457, %456 : vector<2x128xf32>
    %459 = arith.divf %457, %458 : vector<2x128xf32>
    %460 = math.tanh %449 : vector<2x128xf32>
    %461 = vector.extract_strided_slice %454 {offsets = [0, 0], sizes = [2, 64], strides = [1, 1]} : vector<2x128xf32> to vector<2x64xf32>
    %462 = vector.extract_strided_slice %454 {offsets = [0, 64], sizes = [2, 64], strides = [1, 1]} : vector<2x128xf32> to vector<2x64xf32>
    %463 = vector.extract_strided_slice %460 {offsets = [0, 0], sizes = [2, 64], strides = [1, 1]} : vector<2x128xf32> to vector<2x64xf32>
    %464 = vector.extract_strided_slice %459 {offsets = [0, 64], sizes = [2, 64], strides = [1, 1]} : vector<2x128xf32> to vector<2x64xf32>
    %465 = arith.mulf %462, %381 : vector<2x64xf32>
    %466 = arith.mulf %461, %463 : vector<2x64xf32>
    %467 = arith.addf %465, %466 : vector<2x64xf32>
    %468 = math.tanh %467 : vector<2x64xf32>
    %469 = arith.mulf %464, %468 : vector<2x64xf32>
    %470 = tpu.concatenate %383, %410 in 1 : vector<2x64xf32>, vector<2x64xf32> -> vector<2x128xf32>
    %c0_129 = arith.constant 0 : index
    %c0_130 = arith.constant 0 : index
    %471 = vector.load %arg4[%c0_129, %c0_130] : memref<128x256xf32, #tpu.memory_space<vmem>>, vector<128x256xf32>
    %cst_131 = arith.constant dense<0.000000e+00> : vector<2x256xf32>
    %472 = tpu.matmul %470, %471, %cst_131 {dimension_numbers = #tpu.dot_dimension_numbers<[1], [0], [0], [1], [0, 0, 1, 1], [], []>} : vector<2x128xf32>, vector<128x256xf32>, vector<2x256xf32> -> vector<2x256xf32>
    %473 = vector.broadcast %1 : vector<1x256xf32> to vector<2x256xf32>
    %474 = arith.addf %472, %473 : vector<2x256xf32>
    %475 = vector.extract_strided_slice %474 {offsets = [0, 0], sizes = [2, 128], strides = [1, 1]} : vector<2x256xf32> to vector<2x128xf32>
    %476 = vector.extract_strided_slice %474 {offsets = [0, 128], sizes = [2, 128], strides = [1, 1]} : vector<2x256xf32> to vector<2x128xf32>
    %477 = arith.negf %475 : vector<2x128xf32>
    %478 = math.exp %477 : vector<2x128xf32>
    %cst_132 = arith.constant 1.000000e+00 : f32
    %479 = vector.broadcast %cst_132 : f32 to vector<2x128xf32>
    %480 = arith.addf %479, %478 : vector<2x128xf32>
    %481 = arith.divf %479, %480 : vector<2x128xf32>
    %482 = arith.negf %476 : vector<2x128xf32>
    %483 = math.exp %482 : vector<2x128xf32>
    %cst_133 = arith.constant 1.000000e+00 : f32
    %484 = vector.broadcast %cst_133 : f32 to vector<2x128xf32>
    %485 = arith.addf %484, %483 : vector<2x128xf32>
    %486 = arith.divf %484, %485 : vector<2x128xf32>
    %487 = math.tanh %476 : vector<2x128xf32>
    %488 = vector.extract_strided_slice %481 {offsets = [0, 0], sizes = [2, 64], strides = [1, 1]} : vector<2x128xf32> to vector<2x64xf32>
    %489 = vector.extract_strided_slice %481 {offsets = [0, 64], sizes = [2, 64], strides = [1, 1]} : vector<2x128xf32> to vector<2x64xf32>
    %490 = vector.extract_strided_slice %487 {offsets = [0, 0], sizes = [2, 64], strides = [1, 1]} : vector<2x128xf32> to vector<2x64xf32>
    %491 = vector.extract_strided_slice %486 {offsets = [0, 64], sizes = [2, 64], strides = [1, 1]} : vector<2x128xf32> to vector<2x64xf32>
    %492 = arith.mulf %489, %408 : vector<2x64xf32>
    %493 = arith.mulf %488, %490 : vector<2x64xf32>
    %494 = arith.addf %492, %493 : vector<2x64xf32>
    %495 = math.tanh %494 : vector<2x64xf32>
    %496 = arith.mulf %491, %495 : vector<2x64xf32>
    %497 = tpu.concatenate %410, %437 in 1 : vector<2x64xf32>, vector<2x64xf32> -> vector<2x128xf32>
    %c0_134 = arith.constant 0 : index
    %c0_135 = arith.constant 0 : index
    %498 = vector.load %arg6[%c0_134, %c0_135] : memref<128x256xf32, #tpu.memory_space<vmem>>, vector<128x256xf32>
    %cst_136 = arith.constant dense<0.000000e+00> : vector<2x256xf32>
    %499 = tpu.matmul %497, %498, %cst_136 {dimension_numbers = #tpu.dot_dimension_numbers<[1], [0], [0], [1], [0, 0, 1, 1], [], []>} : vector<2x128xf32>, vector<128x256xf32>, vector<2x256xf32> -> vector<2x256xf32>
    %500 = vector.broadcast %2 : vector<1x256xf32> to vector<2x256xf32>
    %501 = arith.addf %499, %500 : vector<2x256xf32>
    %502 = vector.extract_strided_slice %501 {offsets = [0, 0], sizes = [2, 128], strides = [1, 1]} : vector<2x256xf32> to vector<2x128xf32>
    %503 = vector.extract_strided_slice %501 {offsets = [0, 128], sizes = [2, 128], strides = [1, 1]} : vector<2x256xf32> to vector<2x128xf32>
    %504 = arith.negf %502 : vector<2x128xf32>
    %505 = math.exp %504 : vector<2x128xf32>
    %cst_137 = arith.constant 1.000000e+00 : f32
    %506 = vector.broadcast %cst_137 : f32 to vector<2x128xf32>
    %507 = arith.addf %506, %505 : vector<2x128xf32>
    %508 = arith.divf %506, %507 : vector<2x128xf32>
    %509 = arith.negf %503 : vector<2x128xf32>
    %510 = math.exp %509 : vector<2x128xf32>
    %cst_138 = arith.constant 1.000000e+00 : f32
    %511 = vector.broadcast %cst_138 : f32 to vector<2x128xf32>
    %512 = arith.addf %511, %510 : vector<2x128xf32>
    %513 = arith.divf %511, %512 : vector<2x128xf32>
    %514 = math.tanh %503 : vector<2x128xf32>
    %515 = vector.extract_strided_slice %508 {offsets = [0, 0], sizes = [2, 64], strides = [1, 1]} : vector<2x128xf32> to vector<2x64xf32>
    %516 = vector.extract_strided_slice %508 {offsets = [0, 64], sizes = [2, 64], strides = [1, 1]} : vector<2x128xf32> to vector<2x64xf32>
    %517 = vector.extract_strided_slice %514 {offsets = [0, 0], sizes = [2, 64], strides = [1, 1]} : vector<2x128xf32> to vector<2x64xf32>
    %518 = vector.extract_strided_slice %513 {offsets = [0, 64], sizes = [2, 64], strides = [1, 1]} : vector<2x128xf32> to vector<2x64xf32>
    %519 = arith.mulf %516, %435 : vector<2x64xf32>
    %520 = arith.mulf %515, %517 : vector<2x64xf32>
    %521 = arith.addf %519, %520 : vector<2x64xf32>
    %522 = math.tanh %521 : vector<2x64xf32>
    %523 = arith.mulf %518, %522 : vector<2x64xf32>
    %c32 = arith.constant 32 : index
    %c0_139 = arith.constant 0 : index
    %524 = vector.load %arg11[%c32, %c0_139] : memref<64x64xf32, #tpu.memory_space<vmem>>, vector<2x64xf32>
    tpu.vector_store %arg11[%c32, %c0_139], %523 {strides = array<i32>} : memref<64x64xf32, #tpu.memory_space<vmem>>, vector<2x64xf32>,
    %c7 = arith.constant 7 : index
    %c0_140 = arith.constant 0 : index
    %c0_141 = arith.constant 0 : index
    %525 = vector.load %arg0[%c7, %c0_140, %c0_141] : memref<8x2x8xf32, #tpu.memory_space<vmem>>, vector<1x2x8xf32>
    %526 = vector.shape_cast %525 : vector<1x2x8xf32> to vector<2x8xf32>
    %c0_142 = arith.constant 0 : index
    %c0_143 = arith.constant 0 : index
    %527 = vector.load %arg1[%c0_142, %c0_143] : memref<8x256xf32, #tpu.memory_space<vmem>>, vector<8x256xf32>
    %cst_144 = arith.constant dense<0.000000e+00> : vector<2x256xf32>
    %528 = tpu.matmul %526, %527, %cst_144 {dimension_numbers = #tpu.dot_dimension_numbers<[1], [0], [0], [1], [0, 0, 1, 1], [], []>} : vector<2x8xf32>, vector<8x256xf32>, vector<2x256xf32> -> vector<2x256xf32>
    %c0_145 = arith.constant 0 : index
    %c0_146 = arith.constant 0 : index
    %529 = vector.load %arg2[%c0_145, %c0_146] : memref<64x256xf32, #tpu.memory_space<vmem>>, vector<64x256xf32>
    %cst_147 = arith.constant dense<0.000000e+00> : vector<2x256xf32>
    %530 = tpu.matmul %469, %529, %cst_147 {dimension_numbers = #tpu.dot_dimension_numbers<[1], [0], [0], [1], [0, 0, 1, 1], [], []>} : vector<2x64xf32>, vector<64x256xf32>, vector<2x256xf32> -> vector<2x256xf32>
    %531 = arith.addf %528, %530 : vector<2x256xf32>
    %532 = vector.broadcast %0 : vector<1x256xf32> to vector<2x256xf32>
    %533 = arith.addf %531, %532 : vector<2x256xf32>
    %534 = vector.extract_strided_slice %533 {offsets = [0, 0], sizes = [2, 128], strides = [1, 1]} : vector<2x256xf32> to vector<2x128xf32>
    %535 = vector.extract_strided_slice %533 {offsets = [0, 128], sizes = [2, 128], strides = [1, 1]} : vector<2x256xf32> to vector<2x128xf32>
    %536 = arith.negf %534 : vector<2x128xf32>
    %537 = math.exp %536 : vector<2x128xf32>
    %cst_148 = arith.constant 1.000000e+00 : f32
    %538 = vector.broadcast %cst_148 : f32 to vector<2x128xf32>
    %539 = arith.addf %538, %537 : vector<2x128xf32>
    %540 = arith.divf %538, %539 : vector<2x128xf32>
    %541 = arith.negf %535 : vector<2x128xf32>
    %542 = math.exp %541 : vector<2x128xf32>
    %cst_149 = arith.constant 1.000000e+00 : f32
    %543 = vector.broadcast %cst_149 : f32 to vector<2x128xf32>
    %544 = arith.addf %543, %542 : vector<2x128xf32>
    %545 = arith.divf %543, %544 : vector<2x128xf32>
    %546 = math.tanh %535 : vector<2x128xf32>
    %547 = vector.extract_strided_slice %540 {offsets = [0, 0], sizes = [2, 64], strides = [1, 1]} : vector<2x128xf32> to vector<2x64xf32>
    %548 = vector.extract_strided_slice %540 {offsets = [0, 64], sizes = [2, 64], strides = [1, 1]} : vector<2x128xf32> to vector<2x64xf32>
    %549 = vector.extract_strided_slice %546 {offsets = [0, 0], sizes = [2, 64], strides = [1, 1]} : vector<2x128xf32> to vector<2x64xf32>
    %550 = vector.extract_strided_slice %545 {offsets = [0, 64], sizes = [2, 64], strides = [1, 1]} : vector<2x128xf32> to vector<2x64xf32>
    %551 = arith.mulf %548, %467 : vector<2x64xf32>
    %552 = arith.mulf %547, %549 : vector<2x64xf32>
    %553 = arith.addf %551, %552 : vector<2x64xf32>
    %554 = math.tanh %553 : vector<2x64xf32>
    %555 = arith.mulf %550, %554 : vector<2x64xf32>
    %556 = tpu.concatenate %469, %496 in 1 : vector<2x64xf32>, vector<2x64xf32> -> vector<2x128xf32>
    %c0_150 = arith.constant 0 : index
    %c0_151 = arith.constant 0 : index
    %557 = vector.load %arg4[%c0_150, %c0_151] : memref<128x256xf32, #tpu.memory_space<vmem>>, vector<128x256xf32>
    %cst_152 = arith.constant dense<0.000000e+00> : vector<2x256xf32>
    %558 = tpu.matmul %556, %557, %cst_152 {dimension_numbers = #tpu.dot_dimension_numbers<[1], [0], [0], [1], [0, 0, 1, 1], [], []>} : vector<2x128xf32>, vector<128x256xf32>, vector<2x256xf32> -> vector<2x256xf32>
    %559 = vector.broadcast %1 : vector<1x256xf32> to vector<2x256xf32>
    %560 = arith.addf %558, %559 : vector<2x256xf32>
    %561 = vector.extract_strided_slice %560 {offsets = [0, 0], sizes = [2, 128], strides = [1, 1]} : vector<2x256xf32> to vector<2x128xf32>
    %562 = vector.extract_strided_slice %560 {offsets = [0, 128], sizes = [2, 128], strides = [1, 1]} : vector<2x256xf32> to vector<2x128xf32>
    %563 = arith.negf %561 : vector<2x128xf32>
    %564 = math.exp %563 : vector<2x128xf32>
    %cst_153 = arith.constant 1.000000e+00 : f32
    %565 = vector.broadcast %cst_153 : f32 to vector<2x128xf32>
    %566 = arith.addf %565, %564 : vector<2x128xf32>
    %567 = arith.divf %565, %566 : vector<2x128xf32>
    %568 = arith.negf %562 : vector<2x128xf32>
    %569 = math.exp %568 : vector<2x128xf32>
    %cst_154 = arith.constant 1.000000e+00 : f32
    %570 = vector.broadcast %cst_154 : f32 to vector<2x128xf32>
    %571 = arith.addf %570, %569 : vector<2x128xf32>
    %572 = arith.divf %570, %571 : vector<2x128xf32>
    %573 = math.tanh %562 : vector<2x128xf32>
    %574 = vector.extract_strided_slice %567 {offsets = [0, 0], sizes = [2, 64], strides = [1, 1]} : vector<2x128xf32> to vector<2x64xf32>
    %575 = vector.extract_strided_slice %567 {offsets = [0, 64], sizes = [2, 64], strides = [1, 1]} : vector<2x128xf32> to vector<2x64xf32>
    %576 = vector.extract_strided_slice %573 {offsets = [0, 0], sizes = [2, 64], strides = [1, 1]} : vector<2x128xf32> to vector<2x64xf32>
    %577 = vector.extract_strided_slice %572 {offsets = [0, 64], sizes = [2, 64], strides = [1, 1]} : vector<2x128xf32> to vector<2x64xf32>
    %578 = arith.mulf %575, %494 : vector<2x64xf32>
    %579 = arith.mulf %574, %576 : vector<2x64xf32>
    %580 = arith.addf %578, %579 : vector<2x64xf32>
    %581 = math.tanh %580 : vector<2x64xf32>
    %582 = arith.mulf %577, %581 : vector<2x64xf32>
    %583 = tpu.concatenate %496, %523 in 1 : vector<2x64xf32>, vector<2x64xf32> -> vector<2x128xf32>
    %c0_155 = arith.constant 0 : index
    %c0_156 = arith.constant 0 : index
    %584 = vector.load %arg6[%c0_155, %c0_156] : memref<128x256xf32, #tpu.memory_space<vmem>>, vector<128x256xf32>
    %cst_157 = arith.constant dense<0.000000e+00> : vector<2x256xf32>
    %585 = tpu.matmul %583, %584, %cst_157 {dimension_numbers = #tpu.dot_dimension_numbers<[1], [0], [0], [1], [0, 0, 1, 1], [], []>} : vector<2x128xf32>, vector<128x256xf32>, vector<2x256xf32> -> vector<2x256xf32>
    %586 = vector.broadcast %2 : vector<1x256xf32> to vector<2x256xf32>
    %587 = arith.addf %585, %586 : vector<2x256xf32>
    %588 = vector.extract_strided_slice %587 {offsets = [0, 0], sizes = [2, 128], strides = [1, 1]} : vector<2x256xf32> to vector<2x128xf32>
    %589 = vector.extract_strided_slice %587 {offsets = [0, 128], sizes = [2, 128], strides = [1, 1]} : vector<2x256xf32> to vector<2x128xf32>
    %590 = arith.negf %588 : vector<2x128xf32>
    %591 = math.exp %590 : vector<2x128xf32>
    %cst_158 = arith.constant 1.000000e+00 : f32
    %592 = vector.broadcast %cst_158 : f32 to vector<2x128xf32>
    %593 = arith.addf %592, %591 : vector<2x128xf32>
    %594 = arith.divf %592, %593 : vector<2x128xf32>
    %595 = arith.negf %589 : vector<2x128xf32>
    %596 = math.exp %595 : vector<2x128xf32>
    %cst_159 = arith.constant 1.000000e+00 : f32
    %597 = vector.broadcast %cst_159 : f32 to vector<2x128xf32>
    %598 = arith.addf %597, %596 : vector<2x128xf32>
    %599 = arith.divf %597, %598 : vector<2x128xf32>
    %600 = math.tanh %589 : vector<2x128xf32>
    %601 = vector.extract_strided_slice %594 {offsets = [0, 0], sizes = [2, 64], strides = [1, 1]} : vector<2x128xf32> to vector<2x64xf32>
    %602 = vector.extract_strided_slice %594 {offsets = [0, 64], sizes = [2, 64], strides = [1, 1]} : vector<2x128xf32> to vector<2x64xf32>
    %603 = vector.extract_strided_slice %600 {offsets = [0, 0], sizes = [2, 64], strides = [1, 1]} : vector<2x128xf32> to vector<2x64xf32>
    %604 = vector.extract_strided_slice %599 {offsets = [0, 64], sizes = [2, 64], strides = [1, 1]} : vector<2x128xf32> to vector<2x64xf32>
    %605 = arith.mulf %602, %521 : vector<2x64xf32>
    %606 = arith.mulf %601, %603 : vector<2x64xf32>
    %607 = arith.addf %605, %606 : vector<2x64xf32>
    %608 = math.tanh %607 : vector<2x64xf32>
    %609 = arith.mulf %604, %608 : vector<2x64xf32>
    %c40 = arith.constant 40 : index
    %c0_160 = arith.constant 0 : index
    %610 = vector.load %arg11[%c40, %c0_160] : memref<64x64xf32, #tpu.memory_space<vmem>>, vector<2x64xf32>
    tpu.vector_store %arg11[%c40, %c0_160], %609 {strides = array<i32>} : memref<64x64xf32, #tpu.memory_space<vmem>>, vector<2x64xf32>,
    %611 = tpu.concatenate %555, %582 in 1 : vector<2x64xf32>, vector<2x64xf32> -> vector<2x128xf32>
    %c0_161 = arith.constant 0 : index
    %c0_162 = arith.constant 0 : index
    %612 = vector.load %arg4[%c0_161, %c0_162] : memref<128x256xf32, #tpu.memory_space<vmem>>, vector<128x256xf32>
    %cst_163 = arith.constant dense<0.000000e+00> : vector<2x256xf32>
    %613 = tpu.matmul %611, %612, %cst_163 {dimension_numbers = #tpu.dot_dimension_numbers<[1], [0], [0], [1], [0, 0, 1, 1], [], []>} : vector<2x128xf32>, vector<128x256xf32>, vector<2x256xf32> -> vector<2x256xf32>
    %614 = vector.broadcast %1 : vector<1x256xf32> to vector<2x256xf32>
    %615 = arith.addf %613, %614 : vector<2x256xf32>
    %616 = vector.extract_strided_slice %615 {offsets = [0, 0], sizes = [2, 128], strides = [1, 1]} : vector<2x256xf32> to vector<2x128xf32>
    %617 = vector.extract_strided_slice %615 {offsets = [0, 128], sizes = [2, 128], strides = [1, 1]} : vector<2x256xf32> to vector<2x128xf32>
    %618 = arith.negf %616 : vector<2x128xf32>
    %619 = math.exp %618 : vector<2x128xf32>
    %cst_164 = arith.constant 1.000000e+00 : f32
    %620 = vector.broadcast %cst_164 : f32 to vector<2x128xf32>
    %621 = arith.addf %620, %619 : vector<2x128xf32>
    %622 = arith.divf %620, %621 : vector<2x128xf32>
    %623 = arith.negf %617 : vector<2x128xf32>
    %624 = math.exp %623 : vector<2x128xf32>
    %cst_165 = arith.constant 1.000000e+00 : f32
    %625 = vector.broadcast %cst_165 : f32 to vector<2x128xf32>
    %626 = arith.addf %625, %624 : vector<2x128xf32>
    %627 = arith.divf %625, %626 : vector<2x128xf32>
    %628 = math.tanh %617 : vector<2x128xf32>
    %629 = vector.extract_strided_slice %622 {offsets = [0, 0], sizes = [2, 64], strides = [1, 1]} : vector<2x128xf32> to vector<2x64xf32>
    %630 = vector.extract_strided_slice %622 {offsets = [0, 64], sizes = [2, 64], strides = [1, 1]} : vector<2x128xf32> to vector<2x64xf32>
    %631 = vector.extract_strided_slice %628 {offsets = [0, 0], sizes = [2, 64], strides = [1, 1]} : vector<2x128xf32> to vector<2x64xf32>
    %632 = vector.extract_strided_slice %627 {offsets = [0, 64], sizes = [2, 64], strides = [1, 1]} : vector<2x128xf32> to vector<2x64xf32>
    %633 = arith.mulf %630, %580 : vector<2x64xf32>
    %634 = arith.mulf %629, %631 : vector<2x64xf32>
    %635 = arith.addf %633, %634 : vector<2x64xf32>
    %636 = math.tanh %635 : vector<2x64xf32>
    %637 = arith.mulf %632, %636 : vector<2x64xf32>
    %638 = tpu.concatenate %582, %609 in 1 : vector<2x64xf32>, vector<2x64xf32> -> vector<2x128xf32>
    %c0_166 = arith.constant 0 : index
    %c0_167 = arith.constant 0 : index
    %639 = vector.load %arg6[%c0_166, %c0_167] : memref<128x256xf32, #tpu.memory_space<vmem>>, vector<128x256xf32>
    %cst_168 = arith.constant dense<0.000000e+00> : vector<2x256xf32>
    %640 = tpu.matmul %638, %639, %cst_168 {dimension_numbers = #tpu.dot_dimension_numbers<[1], [0], [0], [1], [0, 0, 1, 1], [], []>} : vector<2x128xf32>, vector<128x256xf32>, vector<2x256xf32> -> vector<2x256xf32>
    %641 = vector.broadcast %2 : vector<1x256xf32> to vector<2x256xf32>
    %642 = arith.addf %640, %641 : vector<2x256xf32>
    %643 = vector.extract_strided_slice %642 {offsets = [0, 0], sizes = [2, 128], strides = [1, 1]} : vector<2x256xf32> to vector<2x128xf32>
    %644 = vector.extract_strided_slice %642 {offsets = [0, 128], sizes = [2, 128], strides = [1, 1]} : vector<2x256xf32> to vector<2x128xf32>
    %645 = arith.negf %643 : vector<2x128xf32>
    %646 = math.exp %645 : vector<2x128xf32>
    %cst_169 = arith.constant 1.000000e+00 : f32
    %647 = vector.broadcast %cst_169 : f32 to vector<2x128xf32>
    %648 = arith.addf %647, %646 : vector<2x128xf32>
    %649 = arith.divf %647, %648 : vector<2x128xf32>
    %650 = arith.negf %644 : vector<2x128xf32>
    %651 = math.exp %650 : vector<2x128xf32>
    %cst_170 = arith.constant 1.000000e+00 : f32
    %652 = vector.broadcast %cst_170 : f32 to vector<2x128xf32>
    %653 = arith.addf %652, %651 : vector<2x128xf32>
    %654 = arith.divf %652, %653 : vector<2x128xf32>
    %655 = math.tanh %644 : vector<2x128xf32>
    %656 = vector.extract_strided_slice %649 {offsets = [0, 0], sizes = [2, 64], strides = [1, 1]} : vector<2x128xf32> to vector<2x64xf32>
    %657 = vector.extract_strided_slice %649 {offsets = [0, 64], sizes = [2, 64], strides = [1, 1]} : vector<2x128xf32> to vector<2x64xf32>
    %658 = vector.extract_strided_slice %655 {offsets = [0, 0], sizes = [2, 64], strides = [1, 1]} : vector<2x128xf32> to vector<2x64xf32>
    %659 = vector.extract_strided_slice %654 {offsets = [0, 64], sizes = [2, 64], strides = [1, 1]} : vector<2x128xf32> to vector<2x64xf32>
    %660 = arith.mulf %657, %607 : vector<2x64xf32>
    %661 = arith.mulf %656, %658 : vector<2x64xf32>
    %662 = arith.addf %660, %661 : vector<2x64xf32>
    %663 = math.tanh %662 : vector<2x64xf32>
    %664 = arith.mulf %659, %663 : vector<2x64xf32>
    %c48 = arith.constant 48 : index
    %c0_171 = arith.constant 0 : index
    %665 = vector.load %arg11[%c48, %c0_171] : memref<64x64xf32, #tpu.memory_space<vmem>>, vector<2x64xf32>
    tpu.vector_store %arg11[%c48, %c0_171], %664 {strides = array<i32>} : memref<64x64xf32, #tpu.memory_space<vmem>>, vector<2x64xf32>,
    %666 = tpu.concatenate %637, %664 in 1 : vector<2x64xf32>, vector<2x64xf32> -> vector<2x128xf32>
    %c0_172 = arith.constant 0 : index
    %c0_173 = arith.constant 0 : index
    %667 = vector.load %arg6[%c0_172, %c0_173] : memref<128x256xf32, #tpu.memory_space<vmem>>, vector<128x256xf32>
    %cst_174 = arith.constant dense<0.000000e+00> : vector<2x256xf32>
    %668 = tpu.matmul %666, %667, %cst_174 {dimension_numbers = #tpu.dot_dimension_numbers<[1], [0], [0], [1], [0, 0, 1, 1], [], []>} : vector<2x128xf32>, vector<128x256xf32>, vector<2x256xf32> -> vector<2x256xf32>
    %669 = vector.broadcast %2 : vector<1x256xf32> to vector<2x256xf32>
    %670 = arith.addf %668, %669 : vector<2x256xf32>
    %671 = vector.extract_strided_slice %670 {offsets = [0, 0], sizes = [2, 128], strides = [1, 1]} : vector<2x256xf32> to vector<2x128xf32>
    %672 = vector.extract_strided_slice %670 {offsets = [0, 128], sizes = [2, 128], strides = [1, 1]} : vector<2x256xf32> to vector<2x128xf32>
    %673 = arith.negf %671 : vector<2x128xf32>
    %674 = math.exp %673 : vector<2x128xf32>
    %cst_175 = arith.constant 1.000000e+00 : f32
    %675 = vector.broadcast %cst_175 : f32 to vector<2x128xf32>
    %676 = arith.addf %675, %674 : vector<2x128xf32>
    %677 = arith.divf %675, %676 : vector<2x128xf32>
    %678 = arith.negf %672 : vector<2x128xf32>
    %679 = math.exp %678 : vector<2x128xf32>
    %cst_176 = arith.constant 1.000000e+00 : f32
    %680 = vector.broadcast %cst_176 : f32 to vector<2x128xf32>
    %681 = arith.addf %680, %679 : vector<2x128xf32>
    %682 = arith.divf %680, %681 : vector<2x128xf32>
    %683 = math.tanh %672 : vector<2x128xf32>
    %684 = vector.extract_strided_slice %677 {offsets = [0, 0], sizes = [2, 64], strides = [1, 1]} : vector<2x128xf32> to vector<2x64xf32>
    %685 = vector.extract_strided_slice %677 {offsets = [0, 64], sizes = [2, 64], strides = [1, 1]} : vector<2x128xf32> to vector<2x64xf32>
    %686 = vector.extract_strided_slice %683 {offsets = [0, 0], sizes = [2, 64], strides = [1, 1]} : vector<2x128xf32> to vector<2x64xf32>
    %687 = vector.extract_strided_slice %682 {offsets = [0, 64], sizes = [2, 64], strides = [1, 1]} : vector<2x128xf32> to vector<2x64xf32>
    %688 = arith.mulf %685, %662 : vector<2x64xf32>
    %689 = arith.mulf %684, %686 : vector<2x64xf32>
    %690 = arith.addf %688, %689 : vector<2x64xf32>
    %691 = math.tanh %690 : vector<2x64xf32>
    %692 = arith.mulf %687, %691 : vector<2x64xf32>
    %c56 = arith.constant 56 : index
    %c0_177 = arith.constant 0 : index
    %693 = vector.load %arg11[%c56, %c0_177] : memref<64x64xf32, #tpu.memory_space<vmem>>, vector<2x64xf32>
    tpu.vector_store %arg11[%c56, %c0_177], %692 {strides = array<i32>} : memref<64x64xf32, #tpu.memory_space<vmem>>, vector<2x64xf32>,
    %c0_178 = arith.constant 0 : index
    %c0_179 = arith.constant 0 : index
    %694 = vector.load %arg11[%c0_178, %c0_179] : memref<64x64xf32, #tpu.memory_space<vmem>>, vector<64x64xf32>
    %c0_180 = arith.constant 0 : index
    %c0_181 = arith.constant 0 : index
    %695 = vector.load %arg8[%c0_180, %c0_181] : memref<64x128xf32, #tpu.memory_space<vmem>>, vector<64x128xf32>
    %cst_182 = arith.constant dense<0.000000e+00> : vector<64x128xf32>
    %696 = tpu.matmul %694, %695, %cst_182 {dimension_numbers = #tpu.dot_dimension_numbers<[1], [0], [0], [1], [0, 0, 1, 1], [], []>} : vector<64x64xf32>, vector<64x128xf32>, vector<64x128xf32> -> vector<64x128xf32>
    %c0_183 = arith.constant 0 : index
    %c0_184 = arith.constant 0 : index
    %697 = vector.load %arg9[%c0_183, %c0_184] : memref<1x128xf32, #tpu.memory_space<vmem>>, vector<1x128xf32>
    %698 = vector.broadcast %697 : vector<1x128xf32> to vector<64x128xf32>
    %699 = arith.addf %696, %698 : vector<64x128xf32>
    %700 = arith.negf %699 : vector<64x128xf32>
    %701 = math.exp %700 : vector<64x128xf32>
    %cst_185 = arith.constant 1.000000e+00 : f32
    %702 = vector.broadcast %cst_185 : f32 to vector<64x128xf32>
    %703 = arith.addf %702, %701 : vector<64x128xf32>
    %704 = arith.divf %702, %703 : vector<64x128xf32>
    %c0_186 = arith.constant 0 : index
    %c0_187 = arith.constant 0 : index
    %705 = vector.load %arg10[%c0_186, %c0_187] : memref<64x128xf32, #tpu.memory_space<vmem>>, vector<64x128xf32>
    tpu.vector_store %arg10[%c0_186, %c0_187], %704 {strides = array<i32>} : memref<64x128xf32, #tpu.memory_space<vmem>>, vector<64x128xf32>,
    return
  }
}

</mosaic_0001>

<bundles_post_ra>
// kernel: net1037_forward.1
= control target key start
LH: loop header
LB: loop body
LE: loop exit
PB: predicated region body
PF: predicated region fallthrough
CT: control target
= control target key end

     0   :  { %15 = vsyncpa [#allocation4], 0  ;;  %s6156_s0 = inlined_call_operand.hbm [shape: f32[8,2,8], index: 0, kind: input, shape index: {}]   ;;  %s6157_s1 = inlined_call_operand.hbm [shape: f32[8,256], index: 1, kind: input, shape index: {}]   ;;  %s6158_s2 = inlined_call_operand.hbm [shape: f32[64,256], index: 2, kind: input, shape index: {}]   ;;  %s6159_s3 = inlined_call_operand.vmem [shape: f32[1,256], index: 3, kind: input, shape index: {}]   ;;  %s6160_s4 = inlined_call_operand.hbm [shape: f32[128,256], index: 4, kind: input, shape index: {}]   ;;  %s6161_s5 = inlined_call_operand.hbm [shape: f32[1,256], index: 5, kind: input, shape index: {}]   ;;  %s6162_s6 = inlined_call_operand.hbm [shape: f32[128,256], index: 6, kind: input, shape index: {}]   ;;  %s6163_s7 = inlined_call_operand.hbm [shape: f32[1,256], index: 7, kind: input, shape index: {}]   ;;  %s6164_s8 = inlined_call_operand.hbm [shape: f32[64,128], index: 8, kind: input, shape index: {}]   ;;  %s6165_s9 = inlined_call_operand.vmem [shape: f32[1,128], index: 9, kind: input, shape index: {}]   ;;  %s6166_s10 = inlined_call_operand.vmem [shape: f32[64,128], index: 10, kind: output, shape index: {}]  }
   0x1   :  { %16 = vsyncpa [#allocation6], 0 }
   0x2   :  { %17 = vsyncpa [#allocation9], 0 }
   0x3   :  { %18 = vsyncpa [#allocation12], 0  ;;  %s38_s15 = sshll.u32 %s6157_s1, 4  ;;  %s39_s15 = int_to_ptr.hbm [resolvable:$true] %s38_s15 }
   0x4   :  { %19 = vsyncpa [#allocation15], 0  ;;  %s4286_s16 = smov [#allocation5]   ;;  %s63_s20 = sshll.u32 %s6160_s4, 4  ;;  %s64_s20 = int_to_ptr.hbm [resolvable:$true] %s63_s20 }
   0x5   :  { %s40_s17 = sshll.u32 %s4286_s16, 4  ;;  %s4287_s21 = smov [#allocation8]   ;;  %s41_s17 = int_to_ptr.vmem [resolvable:$true] %s40_s17 }
   0x6   :  { %43 = dma.hbm_to_vmem [thread:$0]  %s39_s15, 256, %s41_s17, [#allocation6]  }
   0x7   :  { %s65_s22 = sshll.u32 %s4287_s21, 4  ;;  %s87_s25 = sshll.u32 %s6162_s6, 4  ;;  %s66_s22 = int_to_ptr.vmem [resolvable:$true] %s65_s22  ;;  %s88_s25 = int_to_ptr.hbm [resolvable:$true] %s87_s25 }
   0x8   :  { %s4288_s1 = smov 256   ;;  %s4289_s26 = smov 16  }
   0x9   :  { %71 = dma.hbm_to_vmem [thread:$0]  %s64_s20, 4096, %s66_s22, [#allocation9], %s4288_s1, %s4288_s1, %s4289_s26  }
   0xa   :  { %s24_s29 = sshll.u32 %s6156_s0, 4  ;;  %s4290_s30 = smov [#allocation11]   ;;  %s25_s29 = int_to_ptr.hbm [resolvable:$true] %s24_s29 }
   0xb   :  { %s89_s11 = sshll.u32 %s4290_s30, 4  ;;  %s4291_s4 = smov [#allocation3]   ;;  %s90_s11 = int_to_ptr.vmem [resolvable:$true] %s89_s11 }
   0xc   :  { %95 = dma.hbm_to_vmem [thread:$0]  %s88_s25, 4096, %s90_s11, [#allocation12], %s4288_s1, %s4288_s1, %s4289_s26  }
   0xd   :  { %s26_s12 = sshll.u32 %s4291_s4, 4  ;;  %s4292_s13 = smov 32   ;;  %s27_s12 = int_to_ptr.vmem [resolvable:$true] %s26_s12 }
   0xe   :  { %s4293_s14 = smov 2   ;;  %s48_s16 = sshll.u32 %s6158_s2, 4  ;;  %s49_s16 = int_to_ptr.hbm [resolvable:$true] %s48_s16 }
   0xf   :  { %32 = dma.hbm_to_vmem [thread:$0]  %s25_s29, 256, %s27_s12, [#allocation4], %s4292_s13, %s4292_s13, %s4293_s14  }
  0x10   :  { %s4294_s17 = smov [#allocation7]   ;;  %s77_s20 = sshll.u32 %s6161_s5, 4  ;;  %s78_s20 = int_to_ptr.hbm [resolvable:$true] %s77_s20 }
  0x11   :  { %s50_s18 = sshll.u32 %s4294_s17, 4  ;;  %s4295_s21 = smov [#allocation10]   ;;  %s51_s18 = int_to_ptr.vmem [resolvable:$true] %s50_s18 }
  0x12   :  { %56 = dma.hbm_to_vmem [thread:$0]  %s49_s16, 2048, %s51_s18, [#allocation6], %s4288_s1, %s4288_s1, %s4289_s26  }
  0x13   :  { %s79_s22 = sshll.u32 %s4295_s21, 4  ;;  %s101_s25 = sshll.u32 %s6163_s7, 4  ;;  %s80_s22 = int_to_ptr.vmem [resolvable:$true] %s79_s22  ;;  %s102_s25 = int_to_ptr.hbm [resolvable:$true] %s101_s25 }
  0x14   :  { %82 = dma.hbm_to_vmem [thread:$0]  %s78_s20, 32, %s80_s22, [#allocation9]  }
  0x15   :  { %s111_s28 = sshll.u32 %s6164_s8, 4  ;;  %s4296_s29 = smov [#allocation13]   ;;  %s112_s28 = int_to_ptr.hbm [resolvable:$true] %s111_s28 }
  0x16   :  { %s103_s30 = sshll.u32 %s4296_s29, 4  ;;  %s4297_s5 = smov [#allocation14]   ;;  %s104_s30 = int_to_ptr.vmem [resolvable:$true] %s103_s30 }
  0x17   :  { %106 = dma.hbm_to_vmem [thread:$0]  %s102_s25, 32, %s104_s30, [#allocation12]  }
  0x18   :  { %s113_s1 = sshll.u32 %s4297_s5, 4  ;;  %s4298_s26 = smov 128   ;;  %s114_s1 = int_to_ptr.vmem [resolvable:$true] %s113_s1 }
  0x19   :  { %s4299_s11 = smov 8  }
  0x1a   :  { %119 = dma.hbm_to_vmem [thread:$0]  %s112_s28, 1024, %s114_s1, [#allocation15], %s4298_s26, %s4298_s26, %s4299_s11  }
  0x1b   :  { %4276 = dma.done.wait [#allocation4], 256  }
  0x1c   :  { %4277 = vsyncadd [#allocation4], 4294967040 }
  0x1d   :  { %4278 = dma.done.wait [#allocation6], 2304  }
  0x1e   :  { %4279 = vsyncadd [#allocation6], 4294964992 }
  0x1f   :  { %4280 = dma.done.wait [#allocation9], 4128  }
  0x20   :  { %4281 = vsyncadd [#allocation9], 4294963168 }
  0x21   :  { %4282 = dma.done.wait [#allocation12], 4128  }
  0x22   :  { %4283 = vsyncadd [#allocation12], 4294963168 }
  0x23   :  { %4284 = dma.done.wait [#allocation15], 1024  }
  0x24   :  { %4285 = vsyncadd [#allocation15], 4294966272  ;;  %v183_v0 = vld [vmem:[#allocation7 + $0x70] sm:$0xff]  ;;  %v181_v1 = vld [vmem:[#allocation7 + $0x60] sm:$0xff]  ;;  %vm228_vm0 = vcmask 64512   ;;  %v4300_v19 = vmov 0.0  }
  0x25   :  { %196 = vmatpush.msra.mxu0 %v183_v0  ;;  %v184_v2 = vld [vmem:[#allocation7 + $0x78] sm:$0xff]  ;;  %v179_v3 = vld [vmem:[#allocation7 + $0x50] sm:$0xff]  ;;  %v166_v5 = vld [vmem:[#allocation3] sm:$0x3]  ;;  %vm157_vm9 = vcmask 523264  }
  0x26   :  { %216 = vmatpush.msra.mxu1 %v184_v2  ;;  %v4381_v4 = vld [vmem:[#allocation5] sm:$0xff]  ;;  %v182_v6 = vld [vmem:[#allocation7 + $0x68] sm:$0xff]  ;;  %v180_v7 = vld [vmem:[#allocation7 + $0x58] sm:$0xff]  ;;  %158 = vst.msk [vmem:[#allocation2] sm:$0xff] %vm157_vm9, %v4300_v19 }
  0x27   :  { %197 = vmatpush.msra.mxu0 %v181_v1  ;;  %247 = vmatpush.msra.mxu2 %v4381_v4  ;;  %v177_v8 = vld [vmem:[#allocation7 + $0x40] sm:$0xff]  ;;  %v178_v9 = vld [vmem:[#allocation7 + $0x48] sm:$0xff]  ;;  %v4385_v10 = vld [vmem:[#allocation5 + $0x8] sm:$0xff]  ;;  %159 = vst.msk [vmem:[#allocation2 + $0x8] sm:$0xff] %vm157_vm9, %v4300_v19 }
  0x28   :  { %3649 = vmatmul.msk.f32.vlgmr.msra.gmra.mxu2 %vm228_vm0, %v166_v5  ;;  %217 = vmatpush.msra.mxu1 %v182_v6  ;;  %v175_v11 = vld [vmem:[#allocation7 + $0x30] sm:$0xff]  ;;  %v176_v12 = vld [vmem:[#allocation7 + $0x38] sm:$0xff]  ;;  %v173_v13 = vld [vmem:[#allocation7 + $0x20] sm:$0xff]  ;;  %160 = vst.msk [vmem:[#allocation2 + $0x10] sm:$0xff] %vm157_vm9, %v4300_v19 }
  0x29   :  { %198 = vmatpush.msra.mxu0 %v179_v3  ;;  %342 = vmatpush.msrb.mxu2 %v183_v0  ;;  %v174_v14 = vld [vmem:[#allocation7 + $0x28] sm:$0xff]  ;;  %v171_v15 = vld [vmem:[#allocation7 + $0x10] sm:$0xff]  ;;  %v172_v16 = vld [vmem:[#allocation7 + $0x18] sm:$0xff]  ;;  %161 = vst.msk [vmem:[#allocation2 + $0x18] sm:$0xff] %vm157_vm9, %v4300_v19 }
  0x2a   :  { %218 = vmatpush.msra.mxu1 %v180_v7  ;;  %267 = vmatpush.msra.mxu3 %v4385_v10  ;;  %v169_v17 = vld [vmem:[#allocation7] sm:$0xff]  ;;  %v170_v18 = vld [vmem:[#allocation7 + $0x8] sm:$0xff]  ;;  %v4404_v49 = vld [vmem:[#allocation8 + $0xf8] sm:$0xff]  ;;  %162 = vst.msk [vmem:[#allocation2 + $0x20] sm:$0xff] %vm157_vm9, %v4300_v19 }
  0x2b   :  { %199 = vmatpush.msra.mxu0 %v177_v8  ;;  %3650 = vmatmul.msk.f32.vlgmr.msra.gmra.mxu3 %vm228_vm0, %v166_v5  ;;  %v154_v20 = vld [vmem:[%s6159_s3] sm:$0x3]  ;;  %s4301_s3 = smov 64   ;;  %v4406_v50 = vld [vmem:[#allocation8 + $0xe8] sm:$0xff]  ;;  %v4409_v51 = vld [vmem:[#allocation8 + $0xd8] sm:$0xff]  ;;  %163 = vst.msk [vmem:[#allocation2 + $0x28] sm:$0xff] %vm157_vm9, %v4300_v19 }
  0x2c   :  { %219 = vmatpush.msra.mxu1 %v178_v9  ;;  %362 = vmatpush.msrb.mxu3 %v184_v2  ;;  %v4397_v22 = vperm.slane %v154_v20, 0  ;;  %v4400_v32 = vperm.slane %v154_v20, 1  ;;  %v4412_v52 = vld [vmem:[#allocation8 + $0xc8] sm:$0xff]  ;;  %v4415_v53 = vld [vmem:[#allocation8 + $0xb8] sm:$0xff]  ;;  %164 = vst.msk [vmem:[#allocation2 + $0x30] sm:$0xff] %vm157_vm9, %v4300_v19 }
  0x2d   :  { %200 = vmatpush.msra.mxu0 %v175_v11  ;;  %343 = vmatpush.msrb.mxu2 %v181_v1  ;;  %v4418_v55 = vld [vmem:[#allocation8 + $0xa8] sm:$0xff]  ;;  %v4421_v57 = vld [vmem:[#allocation8 + $0x98] sm:$0xff]  ;;  %165 = vst.msk [vmem:[#allocation2 + $0x38] sm:$0xff] %vm157_vm9, %v4300_v19 }
  0x2e   :  { %220 = vmatpush.msra.mxu1 %v176_v12  ;;  %363 = vmatpush.msrb.mxu3 %v182_v6  ;;  %6270 = vst [vmem:[#allocation21_spill] sm:$0xff] %v4397_v22  ;;  %v4424_v58 = vld [vmem:[#allocation8 + $0x88] sm:$0xff]  ;;  %v4427_v60 = vld [vmem:[#allocation8 + $0x78] sm:$0xff] }
  0x2f   :  { %201 = vmatpush.msra.mxu0 %v173_v13  ;;  %344 = vmatpush.msrb.mxu2 %v179_v3  ;;  %6271 = vst [vmem:[#allocation22_spill] sm:$0xff] %v4400_v32  ;;  %v4430_v61 = vld [vmem:[#allocation8 + $0x68] sm:$0xff]  ;;  %v4433_v63 = vld [vmem:[#allocation8 + $0x58] sm:$0xff] }
  0x30   :  { %221 = vmatpush.msra.mxu1 %v174_v14  ;;  %364 = vmatpush.msrb.mxu3 %v180_v7 }
  0x31   :  { %202 = vmatpush.msra.mxu0 %v171_v15  ;;  %345 = vmatpush.msrb.mxu2 %v177_v8 }
  0x32   :  { %222 = vmatpush.msra.mxu1 %v172_v16  ;;  %365 = vmatpush.msrb.mxu3 %v178_v9 }
  0x33   :  { %203 = vmatpush.msra.mxu0 %v169_v17  ;;  %346 = vmatpush.msrb.mxu2 %v175_v11 }
  0x34   :  { %204 = vmatmul.f32.vlgmr.msra.gmra.mxu0 %v4300_v19  ;;  %223 = vmatpush.msra.mxu1 %v170_v18 }
  0x35   :  { %224 = vmatmul.f32.vlgmr.msra.gmra.mxu1 %v4300_v19  ;;  %366 = vmatpush.msrb.mxu3 %v176_v12  ;;  %v4484_v19 = vld [vmem:[#allocation8 + $0xc0] sm:$0xff] }
  0x36   :  { %347 = vmatpush.msrb.mxu2 %v173_v13  ;;  %412 = vmatpush.msrb.mxu1 %v4385_v10 }
  0x37   :  { %367 = vmatpush.msrb.mxu3 %v174_v14  ;;  %609 = vmatpush.msrb.mxu0 %v183_v0 }
  0x38   :  { %629 = vmatpush.msra.mxu1 %v184_v2  ;;  %348 = vmatpush.msrb.mxu2 %v171_v15  ;;  %v4436_v2 = vld [vmem:[#allocation8 + $0x48] sm:$0xff] }
  0x39   :  { %368 = vmatpush.msrb.mxu3 %v172_v16  ;;  %610 = vmatpush.msrb.mxu0 %v181_v1 }
  0x3a   :  { %630 = vmatpush.msra.mxu1 %v182_v6  ;;  %349 = vmatpush.msrb.mxu2 %v169_v17 }
  0x3b   :  { %369 = vmatpush.msrb.mxu3 %v170_v18  ;;  %611 = vmatpush.msrb.mxu0 %v179_v3 }
  0x3c   :  { %392 = vmatpush.msra.mxu2 %v4381_v4  ;;  %631 = vmatpush.msra.mxu1 %v180_v7 }
  0x3d   :  { %612 = vmatpush.msrb.mxu0 %v177_v8  ;;  %526 = vmatpush.msra.mxu3 %v4404_v49 }
  0x3e   :  { %632 = vmatpush.msra.mxu1 %v178_v9 }
  0x3f   :  { %613 = vmatpush.msrb.mxu0 %v175_v11  ;;  %527 = vmatpush.msra.mxu3 %v4406_v50 }
  0x40   :  { %633 = vmatpush.msra.mxu1 %v176_v12 }
  0x41   :  { %614 = vmatpush.msrb.mxu0 %v173_v13  ;;  %528 = vmatpush.msra.mxu3 %v4409_v51  ;;  %v4448_v13 = vld [vmem:[#allocation8 + $0x38] sm:$0xff] }
  0x42   :  { %634 = vmatpush.msra.mxu1 %v174_v14  ;;  %v4455_v14 = vld [vmem:[#allocation8 + $0x28] sm:$0xff] }
  0x43   :  { %615 = vmatpush.msrb.mxu0 %v171_v15  ;;  %529 = vmatpush.msra.mxu3 %v4412_v52  ;;  %v4462_v15 = vld [vmem:[#allocation8 + $0x18] sm:$0xff] }
  0x44   :  { %635 = vmatpush.msra.mxu1 %v172_v16  ;;  %v328_v16 = vld [vmem:[#allocation3 + $0x2] sm:$0x3] }
  0x45   :  { %616 = vmatpush.msrb.mxu0 %v169_v17  ;;  %530 = vmatpush.msra.mxu3 %v4415_v53  ;;  %v4470_v17 = vld [vmem:[#allocation8 + $0x8] sm:$0xff] }
  0x46   :  { %636 = vmatpush.msra.mxu1 %v170_v18  ;;  %v4474_v18 = vld [vmem:[#allocation8 + $0xf0] sm:$0xff] }
  0x47   :  { %659 = vmatpush.msra.mxu0 %v4381_v4  ;;  %531 = vmatpush.msra.mxu3 %v4418_v55 }
  0x48   :  { %3656 = vmatmul.msk.f32.vlgmr.msrb.gmra.mxu1 %vm228_vm0, %v328_v16 }
  0x49   :  { %532 = vmatpush.msra.mxu3 %v4421_v57  ;;  %679 = vmatpush.msrb.mxu1 %v4385_v10  ;;  %v4487_v10 = vld [vmem:[#allocation8 + $0xb0] sm:$0xff] }
  0x4b   :  { %533 = vmatpush.msra.mxu3 %v4424_v58 }
  0x4d   :  { %534 = vmatpush.msra.mxu3 %v4427_v60 }
  0x4f   :  { %535 = vmatpush.msra.mxu3 %v4430_v61 }
  0x51   :  { %536 = vmatpush.msra.mxu3 %v4433_v63 }
  0x53   :  { %537 = vmatpush.msra.mxu3 %v4436_v2 }
  0x55   :  { %538 = vmatpush.msra.mxu3 %v4448_v13 }
  0x57   :  { %539 = vmatpush.msra.mxu3 %v4455_v14 }
  0x59   :  { %540 = vmatpush.msra.mxu3 %v4462_v15 }
  0x5b   :  { %541 = vmatpush.msra.mxu3 %v4470_v17 }
  0xab   :  { %v249_v21 = vpop.f32.mrf.mxu2 }
  0xae   :  { %v269_v30 = vpop.f32.mrf.mxu3 }
  0xb1   :  { %v205_v23 = vpop.f32.mrf.mxu0 }
  0xb2   :  { %v250_v24 = vadd.f32 %v249_v21, %v205_v23  ;;  %v225_v29 = vpop.f32.mrf.mxu1  ;;  %v4478_v21 = vld [vmem:[#allocation8 + $0xe0] sm:$0xff]  ;;  %v4481_v23 = vld [vmem:[#allocation8 + $0xd0] sm:$0xff] }
  0xb3   :  { %v270_v31 = vadd.f32 %v269_v30, %v225_v29  ;;  %v4507_v29 = vld [vmem:[#allocation8 + $0x50] sm:$0xff]  ;;  %v4510_v30 = vld [vmem:[#allocation8 + $0x40] sm:$0xff] }
  0xb4   :  { %v277_v25 = vadd.f32 %v4397_v22, %v250_v24  ;;  %v4492_v24 = vld [vmem:[#allocation8 + $0xa0] sm:$0xff] }
  0xb5   :  { %v278_v34 = vadd.f32 %v4400_v32, %v270_v31  ;;  %v4513_v31 = vld [vmem:[#allocation8 + $0x30] sm:$0xff] }
  0xb6   :  { %v3651_v26 = vmul.f32 -1.442695, %v277_v25  ;;  %v4495_v25 = vld [vmem:[#allocation8 + $0x90] sm:$0xff] }
  0xb7   :  { %v3652_v46 = vmul.f32 -1.442695, %v278_v34 }
  0xb8   :  { %3764 = vpow2.f32 %v3651_v26  ;;  %v4498_v26 = vld [vmem:[#allocation8 + $0x80] sm:$0xff] }
  0xbe   :  { %v3765_v27 = vpop.eup %3764 }
  0xbf   :  { %v282_v28 = vadd.f32 1.0, %v3765_v27  ;;  %v4501_v27 = vld [vmem:[#allocation8 + $0x70] sm:$0xff] }
  0xc1   :  { %3766 = vrcp.f32 %v282_v28  ;;  %v294_v37 = vand.u32 2147483648, %v282_v28  ;;  %v292_v39 = vand.u32 2147483647, %v282_v28  ;;  %vm288_vm2 = vweird.f32 %v282_v28 }
  0xc2   :  { %3768 = vtanh.f32 %v278_v34  ;;  %v4519_v34 = vld [vmem:[#allocation8 + $0x10] sm:$0xff] }
  0xc3   :  { %v295_v42 = vor.u32 1.1754944e-38, %v294_v37  ;;  %vm293_vm4 = vcmp.eq.f32.partialorder %v292_v39, 8.507059e+37  ;;  %3770 = vpow2.f32 %v3652_v46  ;;  %v155_v46 = vld [vmem:[#allocation10] sm:$0x3] }
  0xc7   :  { %v3767_v33 = vpop.eup %3766 }
  0xc8   :  { %v284_v35 = vmul.f32 %v3767_v33, %v282_v28  ;;  %vm289_vm1 = vweird.f32 %v3767_v33  ;;  %v3769_v41 = vpop.eup %3768  ;;  %v4504_v28 = vld [vmem:[#allocation8 + $0x60] sm:$0xff] }
  0xc9   :  { %vm290_vm3 = vmor %vm288_vm2, %vm289_vm1  ;;  %v3771_v47 = vpop.eup %3770 }
  0xca   :  { %v285_v36 = vsub.f32 1.0, %v284_v35  ;;  %v301_v48 = vadd.f32 1.0, %v3771_v47  ;;  %v4522_v35 = vld [vmem:[#allocation8] sm:$0xff]  ;;  %v4528_v47 = vperm.slane %v155_v46, 0 }
  0xcc   :  { %v286_v38 = vmul.f32 %v3767_v33, %v285_v36  ;;  %3772 = vrcp.f32 %v301_v48  ;;  %vm307_vm5 = vweird.f32 %v301_v48  ;;  %v313_v4 = vand.u32 2147483648, %v301_v48  ;;  %6272 = vst [vmem:[#allocation23_spill] sm:$0xff] %v4528_v47 }
  0xcd   :  { %v311_v6 = vand.u32 2147483647, %v301_v48 }
  0xce   :  { %v287_v40 = vadd.f32 %v3767_v33, %v286_v38  ;;  %v314_v7 = vor.u32 1.1754944e-38, %v313_v4 }
  0xcf   :  { %vm312_vm8 = vcmp.eq.f32.partialorder %v311_v6, 8.507059e+37 }
  0xd0   :  { %v291_v43 = vsel %vm290_vm3, %v3767_v33, %v287_v40  ;;  %v4516_v33 = vld [vmem:[#allocation8 + $0x20] sm:$0xff] }
  0xd1   :  { %v296_v44 = vsel %vm293_vm4, %v295_v42, %v291_v43 }
  0xd2   :  { %v319_v45 = vmul.f32 %v3769_v41, %v296_v44  ;;  %v3773_v54 = vpop.eup %3772  ;;  %v318_v0 = vmul.f32 0.0, %v296_v44  ;;  %v414_v44 = vpop.f32.mrf.mxu1 }
  0xd3   :  { %v303_v56 = vmul.f32 %v3773_v54, %v301_v48  ;;  %vm308_vm6 = vweird.f32 %v3773_v54 }
  0xd4   :  { %321 = vrot.lane.b32.xlu0 %v319_v45, %s4301_s3  ;;  %vm309_vm7 = vmor %vm307_vm5, %vm308_vm6 }
  0xd5   :  { %v304_v59 = vsub.f32 1.0, %v303_v56 }
  0xd7   :  { %v305_v62 = vmul.f32 %v3773_v54, %v304_v59 }
  0xd9   :  { %v306_v5 = vadd.f32 %v3773_v54, %v305_v62 }
  0xdb   :  { %v310_v8 = vsel %vm309_vm7, %v3773_v54, %v306_v5 }
  0xdc   :  { %v315_v11 = vsel %vm312_vm8, %v314_v7, %v310_v8 }
 0x146   :  { %v322_v1 = vpop.permute.xlu0 %321 }
 0x147   :  { %v4438_v3 = vadd.f32 %v322_v1, %v318_v0 }
 0x149   :  { %3774 = vtanh.f32 %v4438_v3 }
 0x14f   :  { %v3775_v9 = vpop.eup %3774 }
 0x150   :  { %v326_v12 = vmul.f32 %v3775_v9, %v315_v11 }
 0x152   :  { %330 = vrot.lane.b32.xlu0 %v326_v12, %s4301_s3 }
 0x1c4   :  { %v331_v20 = vpop.permute.xlu0 %330 }
 0x1c5   :  { %3653 = vmatmul.msk.f32.vlgmr.msrb.gmra.mxu2 %vm157_vm9, %v331_v20  ;;  %3654 = vmatmul.msk.f32.vlgmr.msrb.gmra.mxu3 %vm157_vm9, %v331_v20 }
 0x1c6   :  { %506 = vmatpush.msrb.mxu2 %v4474_v18 }
 0x1c8   :  { %507 = vmatpush.msrb.mxu2 %v4478_v21 }
 0x1ca   :  { %508 = vmatpush.msrb.mxu2 %v4481_v23 }
 0x1cc   :  { %509 = vmatpush.msrb.mxu2 %v4484_v19 }
 0x1cd   :  { %3655 = vmatmul.msk.f32.vlgmr.msra.gmra.mxu2 %vm228_vm0, %v328_v16  ;;  %3660 = vmatmul.msk.f32.vlgmr.msra.gmra.mxu3 %vm157_vm9, %v331_v20 }
 0x1ce   :  { %510 = vmatpush.msrb.mxu2 %v4487_v10 }
 0x1d0   :  { %511 = vmatpush.msrb.mxu2 %v4492_v24 }
 0x1d2   :  { %512 = vmatpush.msrb.mxu2 %v4495_v25 }
 0x1d4   :  { %513 = vmatpush.msrb.mxu2 %v4498_v26 }
 0x1d6   :  { %514 = vmatpush.msrb.mxu2 %v4501_v27 }
 0x1d8   :  { %515 = vmatpush.msrb.mxu2 %v4504_v28 }
 0x1da   :  { %516 = vmatpush.msrb.mxu2 %v4507_v29 }
 0x1dc   :  { %517 = vmatpush.msrb.mxu2 %v4510_v30 }
 0x1de   :  { %518 = vmatpush.msrb.mxu2 %v4513_v31 }
 0x1e0   :  { %519 = vmatpush.msrb.mxu2 %v4516_v33 }
 0x1e2   :  { %520 = vmatpush.msrb.mxu2 %v4519_v34 }
 0x1e4   :  { %521 = vmatpush.msrb.mxu2 %v4522_v35 }
 0x1e5   :  { %3659 = vmatmul.msk.f32.vlgmr.msrb.gmra.mxu2 %vm157_vm9, %v331_v20 }
 0x248   :  { %v351_v36 = vpop.f32.mrf.mxu2  ;;  %v371_v43 = vpop.f32.mrf.mxu3 }
 0x249   :  { %v415_v45 = vadd.f32 %v414_v44, %v371_v43 }
 0x24b   :  { %v418_v54 = vadd.f32 %v415_v45, %v4400_v32 }
 0x250   :  { %v394_v37 = vpop.f32.mrf.mxu2 }
 0x251   :  { %v395_v38 = vadd.f32 %v394_v37, %v351_v36  ;;  %v4536_v37 = vperm.slane %v155_v46, 1 }
 0x253   :  { %v417_v39 = vadd.f32 %v395_v38, %v4397_v22  ;;  %6273 = vst [vmem:[#allocation24_spill] sm:$0xff] %v4536_v37  ;;  %v543_v38 = vpop.f32.mrf.mxu3 }
 0x255   :  { %v3657_v40 = vmul.f32 -1.442695, %v417_v39 }
 0x257   :  { %3776 = vpow2.f32 %v3657_v40  ;;  %v544_v40 = vadd.f32 %v543_v38, %v4536_v37  ;;  %v4562_v38 = vld [vmem:[#allocation11 + $0xc0] sm:$0xff] }
 0x25d   :  { %v3777_v41 = vpop.eup %3776 }
 0x25e   :  { %v422_v42 = vadd.f32 1.0, %v3777_v41 }
 0x260   :  { %3778 = vrcp.f32 %v422_v42  ;;  %v434_v1 = vand.u32 2147483648, %v422_v42  ;;  %v432_v6 = vand.u32 2147483647, %v422_v42  ;;  %vm428_vm11 = vweird.f32 %v422_v42 }
 0x261   :  { %3780 = vtanh.f32 %v418_v54 }
 0x262   :  { %v435_v8 = vor.u32 1.1754944e-38, %v434_v1  ;;  %vm433_vm13 = vcmp.eq.f32.partialorder %v432_v6, 8.507059e+37  ;;  %v3662_v1 = vmul.f32 -1.442695, %v544_v40 }
 0x266   :  { %v3779_v48 = vpop.eup %3778 }
 0x267   :  { %v424_v56 = vmul.f32 %v3779_v48, %v422_v42  ;;  %vm429_vm10 = vweird.f32 %v3779_v48  ;;  %v3781_v11 = vpop.eup %3780 }
 0x268   :  { %v523_v59 = vpop.f32.mrf.mxu2  ;;  %vm430_vm12 = vmor %vm428_vm11, %vm429_vm10 }
 0x269   :  { %v524_v62 = vadd.f32 %v523_v59, %v4528_v47  ;;  %v425_v0 = vsub.f32 1.0, %v424_v56 }
 0x26b   :  { %v3661_v4 = vmul.f32 -1.442695, %v524_v62  ;;  %v426_v5 = vmul.f32 %v3779_v48, %v425_v0 }
 0x26d   :  { %3782 = vpow2.f32 %v3661_v4  ;;  %v427_v7 = vadd.f32 %v3779_v48, %v426_v5  ;;  %v3658_v4 = vmul.f32 -1.442695, %v418_v54  ;;  %v4554_v54 = vld [vmem:[#allocation11 + $0xe8] sm:$0xff] }
 0x26f   :  { %v431_v9 = vsel %vm430_vm12, %v3779_v48, %v427_v7 }
 0x270   :  { %v4532_v12 = vsel %vm433_vm13, %v435_v8, %v431_v9  ;;  %v4545_v9 = vld [vmem:[#allocation11 + $0xf0] sm:$0xff] }
 0x271   :  { %v459_v16 = vmul.f32 %v3781_v11, %v4532_v12  ;;  %v4547_v11 = vld [vmem:[#allocation11 + $0xf8] sm:$0xff]  ;;  %866 = vmatpush.msra.mxu2 %v4545_v9 }
 0x272   :  { %886 = vmatpush.msrb.mxu3 %v4547_v11 }
 0x273   :  { %v3783_v20 = vpop.eup %3782  ;;  %461 = vrot.lane.b32.xlu1 %v459_v16, %s4301_s3  ;;  %v4549_v16 = vld [vmem:[#allocation11 + $0xe0] sm:$0xff] }
 0x274   :  { %v549_v36 = vadd.f32 1.0, %v3783_v20  ;;  %v4556_v20 = vld [vmem:[#allocation11 + $0xd0] sm:$0xff]  ;;  %867 = vmatpush.msra.mxu2 %v4549_v16  ;;  %887 = vmatpush.msrb.mxu3 %v4554_v54 }
 0x276   :  { %3784 = vrcp.f32 %v549_v36  ;;  %v561_v43 = vand.u32 2147483648, %v549_v36  ;;  %v559_v45 = vand.u32 2147483647, %v549_v36  ;;  %vm555_vm15 = vweird.f32 %v549_v36  ;;  %868 = vmatpush.msra.mxu2 %v4556_v20 }
 0x277   :  { %3786 = vtanh.f32 %v544_v40 }
 0x278   :  { %v562_v56 = vor.u32 1.1754944e-38, %v561_v43  ;;  %vm560_vm2 = vcmp.eq.f32.partialorder %v559_v45, 8.507059e+37  ;;  %3788 = vpow2.f32 %v3662_v1  ;;  %869 = vmatpush.msra.mxu2 %v4562_v38  ;;  %v4580_v45 = vld [vmem:[#allocation11 + $0xa0] sm:$0xff] }
 0x279   :  { %3790 = vpow2.f32 %v3658_v4  ;;  %6277 = vst [vmem:[#allocation28_spill] sm:$0xff] %v4580_v45  ;;  %v4594_v1 = vld [vmem:[#allocation11 + $0x80] sm:$0xff]  ;;  %v4596_v4 = vld [vmem:[#allocation11 + $0x88] sm:$0xff] }
 0x27a   :  { %6281 = vst [vmem:[#allocation32_spill] sm:$0xff] %v4594_v1 }
 0x27b   :  { %6282 = vst [vmem:[#allocation33_spill] sm:$0xff] %v4596_v4 }
 0x27c   :  { %v3785_v39 = vpop.eup %3784 }
 0x27d   :  { %v551_v41 = vmul.f32 %v3785_v39, %v549_v36  ;;  %vm556_vm14 = vweird.f32 %v3785_v39  ;;  %v3787_v62 = vpop.eup %3786  ;;  %v4558_v36 = vld [vmem:[#allocation11 + $0xd8] sm:$0xff] }
 0x27e   :  { %vm557_vm1 = vmor %vm555_vm15, %vm556_vm14  ;;  %v3789_v5 = vpop.eup %3788  ;;  %888 = vmatpush.msrb.mxu3 %v4558_v36 }
 0x27f   :  { %v552_v42 = vsub.f32 1.0, %v551_v41  ;;  %v3791_v6 = vpop.eup %3790  ;;  %v4540_v7 = vadd.f32 1.0, %v3789_v5  ;;  %v4570_v41 = vld [vmem:[#allocation11 + $0xb0] sm:$0xff] }
 0x280   :  { %v4542_v8 = vadd.f32 1.0, %v3791_v6  ;;  %6275 = vst [vmem:[#allocation26_spill] sm:$0xff] %v4570_v41  ;;  %870 = vmatpush.msra.mxu2 %v4570_v41  ;;  %v4600_v6 = vld [vmem:[#allocation11 + $0x70] sm:$0xff] }
 0x281   :  { %v553_v44 = vmul.f32 %v3785_v39, %v552_v42  ;;  %3792 = vrcp.f32 %v4540_v7  ;;  %v4572_v42 = vld [vmem:[#allocation11 + $0xb8] sm:$0xff]  ;;  %6283 = vst [vmem:[#allocation34_spill] sm:$0xff] %v4600_v6  ;;  %vm574_vm4 = vweird.f32 %v4540_v7 }
 0x282   :  { %3794 = vrcp.f32 %v4542_v8  ;;  %6276 = vst [vmem:[#allocation27_spill] sm:$0xff] %v4572_v42  ;;  %871 = vmatpush.msra.mxu2 %v4580_v45  ;;  %v4609_v45 = vld [vmem:[#allocation11 + $0x68] sm:$0xff]  ;;  %vm447_vm7 = vweird.f32 %v4542_v8 }
 0x283   :  { %v554_v48 = vadd.f32 %v3785_v39, %v553_v44  ;;  %6286 = vst [vmem:[#allocation37_spill] sm:$0xff] %v4609_v45 }
 0x285   :  { %v558_v59 = vsel %vm557_vm1, %v3785_v39, %v554_v48  ;;  %v4564_v39 = vld [vmem:[#allocation11 + $0xc8] sm:$0xff] }
 0x286   :  { %v563_v46 = vsel %vm560_vm2, %v562_v56, %v558_v59  ;;  %6274 = vst [vmem:[#allocation25_spill] sm:$0xff] %v4564_v39  ;;  %889 = vmatpush.msrb.mxu3 %v4564_v39  ;;  %v4582_v48 = vld [vmem:[#allocation11 + $0xa8] sm:$0xff]  ;;  %v4588_v59 = vld [vmem:[#allocation11 + $0x90] sm:$0xff]  ;;  %v4616_v39 = vld [vmem:[#allocation11 + $0x58] sm:$0xff] }
 0x287   :  { %v586_v0 = vmul.f32 %v3787_v62, %v563_v46  ;;  %v4566_v40 = vpop.eup %3792  ;;  %6278 = vst [vmem:[#allocation29_spill] sm:$0xff] %v4582_v48  ;;  %v4590_v62 = vld [vmem:[#allocation11 + $0x98] sm:$0xff]  ;;  %872 = vmatpush.msra.mxu2 %v4588_v59  ;;  %v585_v41 = vmul.f32 0.0, %v563_v46 }
 0x288   :  { %v4574_v43 = vpop.eup %3794  ;;  %v570_v44 = vmul.f32 %v4566_v40, %v4540_v7  ;;  %890 = vmatpush.msrb.mxu3 %v4572_v42  ;;  %6279 = vst [vmem:[#allocation30_spill] sm:$0xff] %v4588_v59  ;;  %v4602_v42 = vld [vmem:[#allocation11 + $0x78] sm:$0xff]  ;;  %v4614_v59 = vld [vmem:[#allocation11 + $0x50] sm:$0xff]  ;;  %vm575_vm3 = vweird.f32 %v4566_v40 }
 0x289   :  { %588 = vrot.lane.b32.xlu2 %v586_v0, %s4301_s3  ;;  %v443_v56 = vmul.f32 %v4574_v43, %v4542_v8  ;;  %6280 = vst [vmem:[#allocation31_spill] sm:$0xff] %v4590_v62  ;;  %873 = vmatpush.msra.mxu2 %v4594_v1  ;;  %vm448_vm5 = vweird.f32 %v4574_v43  ;;  %vm4647_vm6 = vmor %vm574_vm4, %vm575_vm3 }
 0x28a   :  { %891 = vmatpush.msrb.mxu3 %v4582_v48  ;;  %v571_v0 = vsub.f32 1.0, %v570_v44  ;;  %6284 = vst [vmem:[#allocation35_spill] sm:$0xff] %v4602_v42  ;;  %v4607_v44 = vld [vmem:[#allocation11 + $0x60] sm:$0xff]  ;;  %vm4663_vm8 = vmor %vm447_vm7, %vm448_vm5 }
 0x28b   :  { %v444_v5 = vsub.f32 1.0, %v443_v56  ;;  %6285 = vst [vmem:[#allocation36_spill] sm:$0xff] %v4607_v44  ;;  %874 = vmatpush.msra.mxu2 %v4600_v6 }
 0x28c   :  { %892 = vmatpush.msrb.mxu3 %v4590_v62  ;;  %v572_v48 = vmul.f32 %v4566_v40, %v571_v0  ;;  %6287 = vst [vmem:[#allocation38_spill] sm:$0xff] %v4614_v59  ;;  %v458_v0 = vmul.f32 %v4532_v12, %v4438_v3  ;;  %v578_v3 = vand.u32 2147483647, %v4540_v7 }
 0x28d   :  { %v445_v62 = vmul.f32 %v4574_v43, %v444_v5  ;;  %6288 = vst [vmem:[#allocation39_spill] sm:$0xff] %v4616_v39  ;;  %875 = vmatpush.msra.mxu2 %v4607_v44  ;;  %v4628_v5 = vld [vmem:[#allocation11 + $0x48] sm:$0xff] }
 0x28e   :  { %893 = vmatpush.msrb.mxu3 %v4596_v4  ;;  %v573_v6 = vadd.f32 %v4566_v40, %v572_v48  ;;  %6290 = vst [vmem:[#allocation41_spill] sm:$0xff] %v4628_v5  ;;  %v4640_v48 = vld [vmem:[#allocation11 + $0x30] sm:$0xff]  ;;  %vm579_vm10 = vcmp.eq.f32.partialorder %v578_v3, 8.507059e+37  ;;  %v4680_v3 = vld [vmem:[#allocation11 + $0x8] sm:$0xff] }
 0x28f   :  { %876 = vmatpush.msra.mxu2 %v4614_v59  ;;  %v446_v12 = vadd.f32 %v4574_v43, %v445_v62  ;;  %6291 = vst [vmem:[#allocation42_spill] sm:$0xff] %v4640_v48  ;;  %v451_v62 = vand.u32 2147483647, %v4542_v8  ;;  %v4661_v59 = vld [vmem:[#allocation11 + $0x28] sm:$0xff] }
 0x290   :  { %894 = vmatpush.msrb.mxu3 %v4602_v42  ;;  %v4626_v42 = vld [vmem:[#allocation11 + $0x40] sm:$0xff]  ;;  %6300 = vst [vmem:[#allocation47_spill] sm:$0xff] %v4680_v3 }
 0x291   :  { %6289 = vst [vmem:[#allocation40_spill] sm:$0xff] %v4626_v42  ;;  %877 = vmatpush.msra.mxu2 %v4626_v42  ;;  %vm452_vm11 = vcmp.eq.f32.partialorder %v451_v62, 8.507059e+37 }
 0x292   :  { %895 = vmatpush.msrb.mxu3 %v4609_v45  ;;  %v4642_v45 = vld [vmem:[#allocation11 + $0x38] sm:$0xff] }
 0x293   :  { %6292 = vst [vmem:[#allocation43_spill] sm:$0xff] %v4642_v45  ;;  %878 = vmatpush.msra.mxu2 %v4640_v48  ;;  %v4678_v48 = vld [vmem:[#allocation11] sm:$0xff] }
 0x294   :  { %896 = vmatpush.msrb.mxu3 %v4616_v39  ;;  %v4659_v39 = vld [vmem:[#allocation11 + $0x20] sm:$0xff]  ;;  %6299 = vst [vmem:[#allocation46_spill] sm:$0xff] %v4678_v48 }
 0x295   :  { %879 = vmatpush.msra.mxu2 %v4659_v39 }
 0x296   :  { %897 = vmatpush.msrb.mxu3 %v4628_v5 }
 0x298   :  { %898 = vmatpush.msrb.mxu3 %v4642_v45 }
 0x29a   :  { %899 = vmatpush.msrb.mxu3 %v4661_v59 }
 0x2e3   :  { %v589_v56 = vpop.permute.xlu2 %588 }
 0x2e4   :  { %v4618_v1 = vadd.f32 %v589_v56, %v585_v41  ;;  %v580_v56 = vand.u32 2147483648, %v4540_v7  ;;  %v577_v7 = vsel %vm4647_vm6, %v4566_v40, %v573_v6  ;;  %v450_v40 = vsel %vm4663_vm8, %v4574_v43, %v446_v12  ;;  %v4672_v6 = vld [vmem:[#allocation11 + $0x10] sm:$0xff] }
 0x2e5   :  { %v462_v46 = vpop.permute.xlu1 %461  ;;  %6297 = vst [vmem:[#allocation44_spill] sm:$0xff] %v4672_v6  ;;  %880 = vmatpush.msra.mxu2 %v4672_v6 }
 0x2e6   :  { %3796 = vtanh.f32 %v4618_v1  ;;  %v4631_v41 = vadd.f32 %v462_v46, %v458_v0  ;;  %v453_v46 = vand.u32 2147483648, %v4542_v8  ;;  %v581_v44 = vor.u32 1.1754944e-38, %v580_v56  ;;  %v4674_v8 = vld [vmem:[#allocation11 + $0x18] sm:$0xff] }
 0x2e7   :  { %6298 = vst [vmem:[#allocation45_spill] sm:$0xff] %v4674_v8  ;;  %900 = vmatpush.msrb.mxu3 %v4674_v8  ;;  %881 = vmatpush.msra.mxu2 %v4678_v48 }
 0x2e8   :  { %3798 = vtanh.f32 %v4631_v41  ;;  %v582_v5 = vsel %vm579_vm10, %v581_v44, %v577_v7  ;;  %v454_v56 = vor.u32 1.1754944e-38, %v453_v46 }
 0x2e9   :  { %901 = vmatpush.msrb.mxu3 %v4680_v3 }
 0x2ea   :  { %v455_v4 = vsel %vm452_vm11, %v454_v56, %v450_v40 }
 0x2ec   :  { %v3797_v0 = vpop.eup %3796 }
 0x2ed   :  { %v593_v42 = vmul.f32 %v3797_v0, %v582_v5 }
 0x2ee   :  { %v3799_v45 = vpop.eup %3798 }
 0x2ef   :  { %825 = vrot.lane.b32.xlu0 %v593_v42, %s4301_s3  ;;  %v466_v43 = vmul.f32 %v3799_v45, %v455_v4  ;;  %v595_v45 = vld [vmem:[#allocation3 + $0x4] sm:$0x3] }
 0x2f1   :  { %597 = vrot.lane.b32.xlu1 %v466_v43, %s4301_s3 }
 0x361   :  { %v826_v44 = vpop.permute.xlu0 %825 }
 0x362   :  { %3671 = vmatmul.msk.f32.vlgmr.msra.gmra.mxu2 %vm157_vm9, %v826_v44  ;;  %3672 = vmatmul.msk.f32.vlgmr.msrb.gmra.mxu3 %vm157_vm9, %v826_v44 }
 0x363   :  { %v598_v5 = vpop.permute.xlu1 %597 }
 0x364   :  { %3663 = vmatmul.msk.f32.vlgmr.msrb.gmra.mxu0 %vm157_vm9, %v598_v5  ;;  %3664 = vmatmul.msk.f32.vlgmr.msra.gmra.mxu1 %vm157_vm9, %v598_v5  ;;  %v735_v12 = vsel %vm157_vm9, %v598_v5, %v593_v42 }
 0x365   :  { %736 = vmatpush.msra.mxu1 %v4474_v18 }
 0x367   :  { %737 = vmatpush.msra.mxu1 %v4478_v21 }
 0x369   :  { %738 = vmatpush.msra.mxu1 %v4481_v23 }
 0x36b   :  { %739 = vmatpush.msra.mxu1 %v4484_v19 }
 0x36c   :  { %3665 = vmatmul.msk.f32.vlgmr.msra.gmra.mxu0 %vm228_vm0, %v595_v45  ;;  %3666 = vmatmul.msk.f32.vlgmr.msrb.gmra.mxu1 %vm228_vm0, %v595_v45 }
 0x36d   :  { %740 = vmatpush.msra.mxu1 %v4487_v10 }
 0x36f   :  { %741 = vmatpush.msra.mxu1 %v4492_v24 }
 0x371   :  { %742 = vmatpush.msra.mxu1 %v4495_v25 }
 0x373   :  { %743 = vmatpush.msra.mxu1 %v4498_v26 }
 0x375   :  { %744 = vmatpush.msra.mxu1 %v4501_v27 }
 0x377   :  { %745 = vmatpush.msra.mxu1 %v4504_v28 }
 0x379   :  { %746 = vmatpush.msra.mxu1 %v4507_v29 }
 0x37b   :  { %747 = vmatpush.msra.mxu1 %v4510_v30 }
 0x37d   :  { %748 = vmatpush.msra.mxu1 %v4513_v31 }
 0x37f   :  { %749 = vmatpush.msra.mxu1 %v4516_v33 }
 0x381   :  { %750 = vmatpush.msra.mxu1 %v4519_v34 }
 0x383   :  { %751 = vmatpush.msra.mxu1 %v4522_v35 }
 0x384   :  { %752 = vmatmul.f32.vlgmr.msra.gmra.mxu1 %v735_v12 }
 0x385   :  { %756 = vmatpush.msrb.mxu1 %v4404_v49 }
 0x387   :  { %757 = vmatpush.msrb.mxu1 %v4406_v50 }
 0x389   :  { %758 = vmatpush.msrb.mxu1 %v4409_v51 }
 0x38b   :  { %759 = vmatpush.msrb.mxu1 %v4412_v52 }
 0x38d   :  { %760 = vmatpush.msrb.mxu1 %v4415_v53 }
 0x38f   :  { %761 = vmatpush.msrb.mxu1 %v4418_v55 }
 0x391   :  { %762 = vmatpush.msrb.mxu1 %v4421_v57 }
 0x393   :  { %763 = vmatpush.msrb.mxu1 %v4424_v58 }
 0x395   :  { %764 = vmatpush.msrb.mxu1 %v4427_v60 }
 0x397   :  { %765 = vmatpush.msrb.mxu1 %v4430_v61 }
 0x399   :  { %766 = vmatpush.msrb.mxu1 %v4433_v63 }
 0x39b   :  { %767 = vmatpush.msrb.mxu1 %v4436_v2 }
 0x39d   :  { %768 = vmatpush.msrb.mxu1 %v4448_v13 }
 0x39f   :  { %769 = vmatpush.msrb.mxu1 %v4455_v14 }
 0x3a1   :  { %770 = vmatpush.msrb.mxu1 %v4462_v15 }
 0x3a3   :  { %771 = vmatpush.msrb.mxu1 %v4470_v17 }
 0x3a4   :  { %772 = vmatmul.f32.vlgmr.msrb.gmra.mxu1 %v735_v12 }
 0x3e1   :  { %v618_v42 = vpop.f32.mrf.mxu0  ;;  %v638_v40 = vpop.f32.mrf.mxu1 }
 0x3e9   :  { %v661_v46 = vpop.f32.mrf.mxu0  ;;  %v681_v43 = vpop.f32.mrf.mxu1 }
 0x3ea   :  { %v662_v7 = vadd.f32 %v661_v46, %v618_v42  ;;  %v682_v44 = vadd.f32 %v681_v43, %v638_v40 }
 0x3ec   :  { %v684_v62 = vadd.f32 %v662_v7, %v4397_v22  ;;  %v685_v45 = vadd.f32 %v682_v44, %v4400_v32 }
 0x3ee   :  { %v3667_v0 = vmul.f32 -1.442695, %v684_v62 }
 0x3f0   :  { %3800 = vpow2.f32 %v3667_v0 }
 0x3f6   :  { %v3801_v56 = vpop.eup %3800 }
 0x3f7   :  { %v689_v4 = vadd.f32 1.0, %v3801_v56 }
 0x3f9   :  { %3802 = vrcp.f32 %v689_v4  ;;  %v701_v42 = vand.u32 2147483648, %v689_v4  ;;  %v699_v62 = vand.u32 2147483647, %v689_v4  ;;  %vm695_vm13 = vweird.f32 %v689_v4 }
 0x3fa   :  { %3804 = vtanh.f32 %v685_v45 }
 0x3fb   :  { %v702_v56 = vor.u32 1.1754944e-38, %v701_v42  ;;  %vm700_vm15 = vcmp.eq.f32.partialorder %v699_v62, 8.507059e+37 }
 0x3ff   :  { %v3803_v5 = vpop.eup %3802 }
 0x400   :  { %v691_v3 = vmul.f32 %v3803_v5, %v689_v4  ;;  %vm696_vm12 = vweird.f32 %v3803_v5  ;;  %v3805_v43 = vpop.eup %3804 }
 0x401   :  { %v753_v48 = vpop.f32.mrf.mxu1  ;;  %vm697_vm14 = vmor %vm695_vm13, %vm696_vm12 }
 0x402   :  { %v754_v17 = vadd.f32 %v753_v48, %v4528_v47  ;;  %v692_v12 = vsub.f32 1.0, %v691_v3 }
 0x404   :  { %v3669_v46 = vmul.f32 -1.442695, %v754_v17  ;;  %v693_v7 = vmul.f32 %v3803_v5, %v692_v12 }
 0x406   :  { %3806 = vpow2.f32 %v3669_v46  ;;  %v694_v0 = vadd.f32 %v3803_v5, %v693_v7 }
 0x408   :  { %v698_v40 = vsel %vm697_vm14, %v3803_v5, %v694_v0 }
 0x409   :  { %v703_v44 = vsel %vm700_vm15, %v702_v56, %v698_v40  ;;  %v156_v56 = vld [vmem:[#allocation13] sm:$0x3] }
 0x40a   :  { %v726_v32 = vmul.f32 %v3805_v43, %v703_v44  ;;  %v4736_v40 = vperm.slane %v156_v56, 0 }
 0x40c   :  { %v3807_v22 = vpop.eup %3806  ;;  %728 = vrot.lane.b32.xlu2 %v726_v32, %s4301_s3  ;;  %6301 = vst [vmem:[#allocation48_spill] sm:$0xff] %v4736_v40 }
 0x40d   :  { %v779_v48 = vadd.f32 1.0, %v3807_v22 }
 0x40f   :  { %3808 = vrcp.f32 %v779_v48  ;;  %v791_v5 = vand.u32 2147483648, %v779_v48  ;;  %vm785_vm2 = vweird.f32 %v779_v48  ;;  %v789_v42 = vand.u32 2147483647, %v779_v48 }
 0x411   :  { %v792_v62 = vor.u32 1.1754944e-38, %v791_v5  ;;  %vm790_vm4 = vcmp.eq.f32.partialorder %v789_v42, 8.507059e+37 }
 0x415   :  { %v3809_v3 = vpop.eup %3808 }
 0x416   :  { %v781_v17 = vmul.f32 %v3809_v3, %v779_v48  ;;  %vm786_vm1 = vweird.f32 %v3809_v3 }
 0x417   :  { %vm787_vm3 = vmor %vm785_vm2, %vm786_vm1 }
 0x418   :  { %v782_v12 = vsub.f32 1.0, %v781_v17 }
 0x41a   :  { %v783_v47 = vmul.f32 %v3809_v3, %v782_v12 }
 0x41c   :  { %v784_v4 = vadd.f32 %v3809_v3, %v783_v47  ;;  %v883_v47 = vpop.f32.mrf.mxu2 }
 0x41d   :  { %v884_v43 = vadd.f32 %v883_v47, %v4736_v40 }
 0x41e   :  { %v788_v7 = vsel %vm787_vm3, %v3809_v3, %v784_v4 }
 0x41f   :  { %v4732_v22 = vsel %vm790_vm4, %v792_v62, %v788_v7  ;;  %v3673_v48 = vmul.f32 -1.442695, %v884_v43 }
 0x421   :  { %v773_v8 = vpop.f32.mrf.mxu1 }
 0x422   :  { %v774_v46 = vadd.f32 %v773_v8, %v4536_v37  ;;  %v3668_v8 = vmul.f32 -1.442695, %v685_v45  ;;  %v725_v45 = vmul.f32 %v703_v44, %v4631_v41 }
 0x424   :  { %3810 = vtanh.f32 %v774_v46 }
 0x425   :  { %3812 = vpow2.f32 %v3668_v8 }
 0x426   :  { %3814 = vpow2.f32 %v3673_v48  ;;  %v4742_v48 = vperm.slane %v156_v56, 1 }
 0x428   :  { %6303 = vst [vmem:[#allocation50_spill] sm:$0xff] %v4742_v48 }
 0x42a   :  { %v3811_v32 = vpop.eup %3810 }
 0x42b   :  { %v816_v0 = vmul.f32 %v3811_v32, %v4732_v22  ;;  %v3813_v17 = vpop.eup %3812 }
 0x42c   :  { %v708_v3 = vadd.f32 1.0, %v3813_v17  ;;  %v3815_v12 = vpop.eup %3814 }
 0x42d   :  { %818 = vrot.lane.b32.xlu2 %v816_v0, %s4301_s3  ;;  %v909_v4 = vadd.f32 1.0, %v3815_v12  ;;  %v3670_v0 = vmul.f32 -1.442695, %v774_v46  ;;  %v903_v12 = vpop.f32.mrf.mxu3 }
 0x42e   :  { %3816 = vrcp.f32 %v708_v3  ;;  %v720_v17 = vand.u32 2147483648, %v708_v3  ;;  %vm714_vm6 = vweird.f32 %v708_v3  ;;  %v4746_v41 = vadd.f32 %v903_v12, %v4742_v48  ;;  %v4769_v12 = vld [vmem:[#allocation7 + $0x68] sm:$0xff] }
 0x42f   :  { %3818 = vrcp.f32 %v909_v4  ;;  %vm915_vm11 = vweird.f32 %v909_v4 }
 0x430   :  { %3820 = vpow2.f32 %v3670_v0  ;;  %v721_v44 = vor.u32 1.1754944e-38, %v720_v17 }
 0x434   :  { %v3817_v5 = vpop.eup %3816 }
 0x435   :  { %v710_v42 = vmul.f32 %v3817_v5, %v708_v3  ;;  %v3819_v7 = vpop.eup %3818  ;;  %vm715_vm5 = vweird.f32 %v3817_v5 }
 0x436   :  { %v911_v32 = vmul.f32 %v3819_v7, %v909_v4  ;;  %vm716_vm7 = vmor %vm714_vm6, %vm715_vm5  ;;  %vm916_vm10 = vweird.f32 %v3819_v7 }
 0x437   :  { %v711_v62 = vsub.f32 1.0, %v710_v42  ;;  %v718_v42 = vand.u32 2147483647, %v708_v3  ;;  %vm917_vm12 = vmor %vm915_vm11, %vm916_vm10 }
 0x438   :  { %v912_v47 = vsub.f32 1.0, %v911_v32  ;;  %v921_v32 = vand.u32 2147483648, %v909_v4 }
 0x439   :  { %v712_v37 = vmul.f32 %v3817_v5, %v711_v62  ;;  %v3821_v62 = vpop.eup %3820  ;;  %vm719_vm8 = vcmp.eq.f32.partialorder %v718_v42, 8.507059e+37  ;;  %v4775_v42 = vld [vmem:[#allocation7 + $0x50] sm:$0xff] }
 0x43a   :  { %v913_v40 = vmul.f32 %v3819_v7, %v912_v47  ;;  %v4748_v0 = vadd.f32 1.0, %v3821_v62  ;;  %v4752_v47 = vld [vmem:[#allocation5] sm:$0xff] }
 0x43b   :  { %v713_v43 = vadd.f32 %v3817_v5, %v712_v37  ;;  %1043 = vmatpush.msrb.mxu2 %v4752_v47 }
 0x43c   :  { %vm804_vm15 = vweird.f32 %v4748_v0 }
 0x43d   :  { %v717_v46 = vsel %vm716_vm7, %v3817_v5, %v713_v43  ;;  %v922_v5 = vor.u32 1.1754944e-38, %v921_v32  ;;  %v4754_v43 = vld [vmem:[#allocation5 + $0x8] sm:$0xff]  ;;  %1152 = vmatpush.msra.mxu2 %v4474_v18  ;;  %v4784_v18 = vld [vmem:[#allocation7 + $0x40] sm:$0xff] }
 0x43e   :  { %v722_v56 = vsel %vm719_vm8, %v721_v44, %v717_v46  ;;  %1063 = vmatpush.msra.mxu3 %v4754_v43  ;;  %v4812_v44 = vld [vmem:[#allocation7 + $0x10] sm:$0xff] }
 0x43f   :  { %1153 = vmatpush.msra.mxu2 %v4478_v21  ;;  %v4794_v21 = vld [vmem:[#allocation7 + $0x30] sm:$0xff] }
 0x440   :  { %1172 = vmatpush.msrb.mxu3 %v4404_v49  ;;  %v4782_v49 = vld [vmem:[#allocation7 + $0x58] sm:$0xff] }
 0x441   :  { %1154 = vmatpush.msra.mxu2 %v4481_v23  ;;  %v4802_v23 = vld [vmem:[#allocation7 + $0x38] sm:$0xff] }
 0x442   :  { %1173 = vmatpush.msrb.mxu3 %v4406_v50  ;;  %v4792_v50 = vld [vmem:[#allocation7 + $0x48] sm:$0xff]  ;;  %v6322_v32 = vld [vmem:[#allocation43_spill] sm:$0xff] }
 0x443   :  { %1155 = vmatpush.msra.mxu2 %v4484_v19  ;;  %v4804_v19 = vld [vmem:[#allocation7 + $0x20] sm:$0xff] }
 0x444   :  { %1174 = vmatpush.msrb.mxu3 %v4409_v51 }
 0x445   :  { %1156 = vmatpush.msra.mxu2 %v4487_v10  ;;  %v4818_v10 = vld [vmem:[#allocation7 + $0x18] sm:$0xff] }
 0x446   :  { %1175 = vmatpush.msrb.mxu3 %v4412_v52  ;;  %v4810_v52 = vld [vmem:[#allocation7 + $0x28] sm:$0xff] }
 0x447   :  { %1157 = vmatpush.msra.mxu2 %v4492_v24  ;;  %v815_v24 = vmul.f32 %v4732_v22, %v4618_v1  ;;  %v6318_v1 = vld [vmem:[#allocation39_spill] sm:$0xff]  ;;  %v6319_v22 = vld [vmem:[#allocation40_spill] sm:$0xff] }
 0x448   :  { %1176 = vmatpush.msrb.mxu3 %v4415_v53 }
 0x449   :  { %1158 = vmatpush.msra.mxu2 %v4495_v25  ;;  %v961_v25 = vld [vmem:[#allocation3 + $0x6] sm:$0x3] }
 0x44a   :  { %1177 = vmatpush.msrb.mxu3 %v4418_v55  ;;  %v4826_v55 = vld [vmem:[#allocation7 + $0x8] sm:$0xff]  ;;  %3677 = vmatmul.msk.f32.vlgmr.msrb.gmra.mxu2 %vm228_vm0, %v961_v25 }
 0x44b   :  { %1159 = vmatpush.msra.mxu2 %v4498_v26  ;;  %3678 = vmatmul.msk.f32.vlgmr.msra.gmra.mxu3 %vm228_vm0, %v961_v25  ;;  %v6329_v25 = vld [vmem:[#allocation23_spill] sm:$0xff] }
 0x44c   :  { %1178 = vmatpush.msrb.mxu3 %v4421_v57 }
 0x44d   :  { %1160 = vmatpush.msra.mxu2 %v4501_v27  ;;  %v810_v27 = vand.u32 2147483648, %v4748_v0 }
 0x44e   :  { %1179 = vmatpush.msrb.mxu3 %v4424_v58 }
 0x44f   :  { %1161 = vmatpush.msra.mxu2 %v4504_v28  ;;  %v811_v28 = vor.u32 1.1754944e-38, %v810_v27 }
 0x450   :  { %1180 = vmatpush.msrb.mxu3 %v4427_v60 }
 0x451   :  { %1162 = vmatpush.msra.mxu2 %v4507_v29  ;;  %v6304_v29 = vld [vmem:[#allocation25_spill] sm:$0xff] }
 0x452   :  { %1181 = vmatpush.msrb.mxu3 %v4430_v61  ;;  %v808_v61 = vand.u32 2147483647, %v4748_v0 }
 0x453   :  { %1163 = vmatpush.msra.mxu2 %v4510_v30 }
 0x454   :  { %1182 = vmatpush.msrb.mxu3 %v4433_v63  ;;  %vm809_vm2 = vcmp.eq.f32.partialorder %v808_v61, 8.507059e+37 }
 0x455   :  { %1164 = vmatpush.msra.mxu2 %v4513_v31  ;;  %v6308_v31 = vld [vmem:[#allocation29_spill] sm:$0xff] }
 0x456   :  { %1183 = vmatpush.msrb.mxu3 %v4436_v2 }
 0x457   :  { %1165 = vmatpush.msra.mxu2 %v4516_v33  ;;  %v6309_v33 = vld [vmem:[#allocation30_spill] sm:$0xff] }
 0x458   :  { %1184 = vmatpush.msrb.mxu3 %v4448_v13  ;;  %v6307_v13 = vld [vmem:[#allocation28_spill] sm:$0xff] }
 0x459   :  { %1166 = vmatpush.msra.mxu2 %v4519_v34  ;;  %v6314_v34 = vld [vmem:[#allocation35_spill] sm:$0xff] }
 0x45a   :  { %1185 = vmatpush.msrb.mxu3 %v4455_v14  ;;  %v6310_v14 = vld [vmem:[#allocation31_spill] sm:$0xff] }
 0x45b   :  { %1167 = vmatpush.msra.mxu2 %v4522_v35  ;;  %v6316_v35 = vld [vmem:[#allocation37_spill] sm:$0xff] }
 0x45c   :  { %1186 = vmatpush.msrb.mxu3 %v4462_v15  ;;  %v6313_v15 = vld [vmem:[#allocation34_spill] sm:$0xff] }
 0x466   :  { %v729_v6 = vpop.permute.xlu2 %728 }
 0x467   :  { %v4740_v8 = vadd.f32 %v729_v6, %v725_v45  ;;  %v914_v6 = vadd.f32 %v3819_v7, %v913_v40  ;;  %v4756_v40 = vld [vmem:[#allocation7 + $0x70] sm:$0xff] }
 0x468   :  { %993 = vmatpush.msrb.mxu0 %v4756_v40  ;;  %1403 = vmatpush.msrb.mxu2 %v4756_v40  ;;  %v4901_v40 = vld [vmem:[#allocation8 + $0x8] sm:$0xff] }
 0x469   :  { %6302 = vst [vmem:[#allocation49_spill] sm:$0xff] %v4740_v8  ;;  %3822 = vtanh.f32 %v4740_v8  ;;  %v919_v8 = vand.u32 2147483647, %v909_v4  ;;  %v918_v3 = vsel %vm917_vm12, %v3819_v7, %v914_v6  ;;  %v4761_v4 = vld [vmem:[#allocation7 + $0x78] sm:$0xff]  ;;  %v4767_v7 = vld [vmem:[#allocation7 + $0x60] sm:$0xff]  ;;  %1187 = vmatpush.msrb.mxu3 %v4901_v40 }
 0x46a   :  { %3824 = vtanh.f32 %v4746_v41  ;;  %1013 = vmatpush.msra.mxu1 %v4761_v4  ;;  %994 = vmatpush.msrb.mxu0 %v4767_v7  ;;  %v4820_v6 = vld [vmem:[#allocation7] sm:$0xff] }
 0x46b   :  { %3826 = vrcp.f32 %v4748_v0  ;;  %vm920_vm13 = vcmp.eq.f32.partialorder %v919_v8, 8.507059e+37  ;;  %1404 = vmatpush.msrb.mxu2 %v4767_v7  ;;  %1423 = vmatpush.msra.mxu3 %v4761_v4 }
 0x46c   :  { %v4763_v17 = vsel %vm920_vm13, %v922_v5, %v918_v3  ;;  %1014 = vmatpush.msra.mxu1 %v4769_v12  ;;  %995 = vmatpush.msrb.mxu0 %v4775_v42  ;;  %v6325_v3 = vld [vmem:[#allocation46_spill] sm:$0xff]  ;;  %v6326_v5 = vld [vmem:[#allocation47_spill] sm:$0xff] }
 0x46d   :  { %1405 = vmatpush.msrb.mxu2 %v4775_v42  ;;  %1424 = vmatpush.msra.mxu3 %v4769_v12 }
 0x46e   :  { %1015 = vmatpush.msra.mxu1 %v4782_v49  ;;  %996 = vmatpush.msrb.mxu0 %v4784_v18 }
 0x46f   :  { %v3823_v37 = vpop.eup %3822  ;;  %1406 = vmatpush.msrb.mxu2 %v4784_v18  ;;  %1425 = vmatpush.msra.mxu3 %v4782_v49  ;;  %v945_v49 = vmul.f32 0.0, %v4763_v17 }
 0x470   :  { %v733_v45 = vmul.f32 %v3823_v37, %v722_v56  ;;  %v3825_v8 = vpop.eup %3824  ;;  %1016 = vmatpush.msra.mxu1 %v4792_v50  ;;  %997 = vmatpush.msrb.mxu0 %v4794_v21  ;;  %v6320_v37 = vld [vmem:[#allocation41_spill] sm:$0xff]  ;;  %v6321_v56 = vld [vmem:[#allocation42_spill] sm:$0xff] }
 0x471   :  { %v946_v46 = vmul.f32 %v3825_v8, %v4763_v17  ;;  %v4786_v62 = vpop.eup %3826  ;;  %1407 = vmatpush.msrb.mxu2 %v4794_v21  ;;  %1426 = vmatpush.msra.mxu3 %v4792_v50 }
 0x472   :  { %981 = vrot.lane.b32.xlu1 %v733_v45, %s4301_s3  ;;  %v800_v51 = vmul.f32 %v4786_v62, %v4748_v0  ;;  %1017 = vmatpush.msra.mxu1 %v4802_v23  ;;  %vm805_vm14 = vweird.f32 %v4786_v62  ;;  %v6323_v0 = vld [vmem:[#allocation44_spill] sm:$0xff]  ;;  %v6324_v45 = vld [vmem:[#allocation45_spill] sm:$0xff] }
 0x473   :  { %998 = vmatpush.msrb.mxu0 %v4804_v19  ;;  %vm806_vm1 = vmor %vm804_vm15, %vm805_vm14  ;;  %1408 = vmatpush.msrb.mxu2 %v4804_v19 }
 0x474   :  { %v801_v53 = vsub.f32 1.0, %v800_v51  ;;  %1018 = vmatpush.msra.mxu1 %v4810_v52  ;;  %1427 = vmatpush.msra.mxu3 %v4802_v23 }
 0x475   :  { %999 = vmatpush.msrb.mxu0 %v4812_v44  ;;  %1409 = vmatpush.msrb.mxu2 %v4812_v44 }
 0x476   :  { %1019 = vmatpush.msra.mxu1 %v4818_v10  ;;  %v802_v57 = vmul.f32 %v4786_v62, %v801_v53  ;;  %1428 = vmatpush.msra.mxu3 %v4810_v52 }
 0x477   :  { %1000 = vmatpush.msrb.mxu0 %v4820_v6  ;;  %1410 = vmatpush.msrb.mxu2 %v4820_v6 }
 0x478   :  { %1020 = vmatpush.msra.mxu1 %v4826_v55  ;;  %v803_v60 = vadd.f32 %v4786_v62, %v802_v57  ;;  %1429 = vmatpush.msra.mxu3 %v4818_v10 }
 0x479   :  { %1277 = vmatpush.msra.mxu0 %v4545_v9  ;;  %v6305_v9 = vld [vmem:[#allocation26_spill] sm:$0xff] }
 0x47a   :  { %948 = vrot.lane.b32.xlu1 %v946_v46, %s4301_s3  ;;  %1297 = vmatpush.msrb.mxu1 %v4547_v11  ;;  %v807_v63 = vsel %vm806_vm1, %v4786_v62, %v803_v60 }
 0x47b   :  { %1278 = vmatpush.msra.mxu0 %v4549_v16  ;;  %v812_v30 = vsel %vm809_vm2, %v811_v28, %v807_v63  ;;  %v6306_v16 = vld [vmem:[#allocation27_spill] sm:$0xff]  ;;  %1430 = vmatpush.msra.mxu3 %v4826_v55  ;;  %v6328_v55 = vld [vmem:[#allocation21_spill] sm:$0xff] }
 0x47c   :  { %1298 = vmatpush.msrb.mxu1 %v4554_v54  ;;  %v6311_v54 = vld [vmem:[#allocation32_spill] sm:$0xff] }
 0x47d   :  { %1279 = vmatpush.msra.mxu0 %v4556_v20  ;;  %v6312_v20 = vld [vmem:[#allocation33_spill] sm:$0xff] }
 0x47e   :  { %1299 = vmatpush.msrb.mxu1 %v4558_v36  ;;  %v6315_v36 = vld [vmem:[#allocation36_spill] sm:$0xff] }
 0x47f   :  { %1280 = vmatpush.msra.mxu0 %v4562_v38  ;;  %v6317_v38 = vld [vmem:[#allocation38_spill] sm:$0xff] }
 0x480   :  { %1300 = vmatpush.msrb.mxu1 %v6304_v29 }
 0x481   :  { %1281 = vmatpush.msra.mxu0 %v6305_v9 }
 0x482   :  { %1301 = vmatpush.msrb.mxu1 %v6306_v16  ;;  %v6330_v16 = vld [vmem:[#allocation48_spill] sm:$0xff] }
 0x483   :  { %1282 = vmatpush.msra.mxu0 %v6307_v13 }
 0x484   :  { %1302 = vmatpush.msrb.mxu1 %v6308_v31 }
 0x485   :  { %1283 = vmatpush.msra.mxu0 %v6309_v33  ;;  %v6331_v33 = vld [vmem:[#allocation22_spill] sm:$0xff] }
 0x486   :  { %1303 = vmatpush.msrb.mxu1 %v6310_v14 }
 0x487   :  { %v819_v58 = vpop.permute.xlu2 %818  ;;  %1284 = vmatpush.msra.mxu0 %v6311_v54 }
 0x488   :  { %v4839_v26 = vadd.f32 %v819_v58, %v815_v24  ;;  %1304 = vmatpush.msrb.mxu1 %v6312_v20 }
 0x489   :  { %1285 = vmatpush.msra.mxu0 %v6313_v15 }
 0x48a   :  { %3828 = vtanh.f32 %v4839_v26  ;;  %1305 = vmatpush.msrb.mxu1 %v6314_v34 }
 0x48b   :  { %1286 = vmatpush.msra.mxu0 %v6315_v36  ;;  %v6332_v36 = vld [vmem:[#allocation24_spill] sm:$0xff] }
 0x48c   :  { %1306 = vmatpush.msrb.mxu1 %v6316_v35 }
 0x48d   :  { %1287 = vmatpush.msra.mxu0 %v6317_v38 }
 0x48e   :  { %1307 = vmatpush.msrb.mxu1 %v6318_v1 }
 0x48f   :  { %1288 = vmatpush.msra.mxu0 %v6319_v22 }
 0x490   :  { %v3829_v2 = vpop.eup %3828  ;;  %1308 = vmatpush.msrb.mxu1 %v6320_v37 }
 0x491   :  { %v823_v11 = vmul.f32 %v3829_v2, %v812_v30  ;;  %1289 = vmatpush.msra.mxu0 %v6321_v56 }
 0x492   :  { %1309 = vmatpush.msrb.mxu1 %v6322_v32 }
 0x493   :  { %1241 = vrot.lane.b32.xlu2 %v823_v11, %s4301_s3  ;;  %1290 = vmatpush.msra.mxu0 %v4659_v39  ;;  %v3674_v39 = vmul.f32 -1.442695, %v4746_v41 }
 0x494   :  { %1310 = vmatpush.msrb.mxu1 %v4661_v59 }
 0x495   :  { %1291 = vmatpush.msra.mxu0 %v6323_v0  ;;  %3830 = vpow2.f32 %v3674_v39 }
 0x496   :  { %1311 = vmatpush.msrb.mxu1 %v6324_v45 }
 0x497   :  { %1292 = vmatpush.msra.mxu0 %v6325_v3 }
 0x498   :  { %1312 = vmatpush.msrb.mxu1 %v6326_v5 }
 0x49b   :  { %v3831_v59 = vpop.eup %3830 }
 0x49c   :  { %v928_v7 = vadd.f32 1.0, %v3831_v59 }
 0x49e   :  { %3832 = vrcp.f32 %v928_v7  ;;  %v940_v21 = vand.u32 2147483648, %v928_v7  ;;  %vm934_vm4 = vweird.f32 %v928_v7  ;;  %v938_v51 = vand.u32 2147483647, %v928_v7 }
 0x4a0   :  { %v941_v19 = vor.u32 1.1754944e-38, %v940_v21  ;;  %vm939_vm6 = vcmp.eq.f32.partialorder %v938_v51, 8.507059e+37 }
 0x4a4   :  { %v3833_v4 = vpop.eup %3832 }
 0x4a5   :  { %v930_v41 = vmul.f32 %v3833_v4, %v928_v7  ;;  %vm935_vm3 = vweird.f32 %v3833_v4 }
 0x4a6   :  { %vm936_vm5 = vmor %vm934_vm4, %vm935_vm3 }
 0x4a7   :  { %v931_v42 = vsub.f32 1.0, %v930_v41 }
 0x4a9   :  { %v932_v46 = vmul.f32 %v3833_v4, %v931_v42 }
 0x4ab   :  { %v933_v50 = vadd.f32 %v3833_v4, %v932_v46 }
 0x4ad   :  { %v937_v23 = vsel %vm936_vm5, %v3833_v4, %v933_v50 }
 0x4ae   :  { %v942_v52 = vsel %vm939_vm6, %v941_v19, %v937_v23 }
 0x4cd   :  { %v1045_v53 = vpop.f32.mrf.mxu2 }
 0x4ce   :  { %v1065_v63 = vpop.f32.mrf.mxu3 }
 0x4e4   :  { %v982_v8 = vpop.permute.xlu1 %981 }
 0x4e5   :  { %3675 = vmatmul.msk.f32.vlgmr.msrb.gmra.mxu0 %vm157_vm9, %v982_v8  ;;  %3676 = vmatmul.msk.f32.vlgmr.msra.gmra.mxu1 %vm157_vm9, %v982_v8  ;;  %v1119_v12 = vsel %vm157_vm9, %v982_v8, %v823_v11 }
 0x4e6   :  { %1168 = vmatmul.f32.vlgmr.msra.gmra.mxu2 %v1119_v12  ;;  %1188 = vmatmul.f32.vlgmr.msrb.gmra.mxu3 %v1119_v12 }
 0x4e7   :  { %1453 = vmatpush.msrb.mxu0 %v4752_v47  ;;  %1473 = vmatpush.msra.mxu1 %v4754_v43 }
 0x4ec   :  { %v949_v18 = vpop.permute.xlu1 %948 }
 0x4ed   :  { %v4919_v62 = vadd.f32 %v949_v18, %v945_v49  ;;  %v1242_v44 = vpop.permute.xlu2 %1241 }
 0x4ef   :  { %3834 = vtanh.f32 %v4919_v62 }
 0x4f5   :  { %v3835_v47 = vpop.eup %3834 }
 0x4f6   :  { %v4922_v43 = vmul.f32 %v3835_v47, %v942_v52 }
 0x4f8   :  { %6327 = vst [vmem:[#allocation25_spill] sm:$0xff] %v4922_v43  ;;  %v1244_v17 = vsel %vm157_vm9, %v1242_v44, %v4922_v43 }
 0x4f9   :  { %1293 = vmatmul.f32.vlgmr.msra.gmra.mxu0 %v1244_v17  ;;  %1313 = vmatmul.f32.vlgmr.msrb.gmra.mxu1 %v1244_v17 }
 0x562   :  { %v1002_v10 = vpop.f32.mrf.mxu0  ;;  %v1022_v29 = vpop.f32.mrf.mxu1 }
 0x563   :  { %v1046_v6 = vadd.f32 %v1045_v53, %v1002_v10  ;;  %v1066_v30 = vadd.f32 %v1065_v63, %v1022_v29 }
 0x565   :  { %v1068_v57 = vadd.f32 %v1046_v6, %v6328_v55  ;;  %v1069_v14 = vadd.f32 %v1066_v30, %v6331_v33  ;;  %v4952_v30 = vld [vmem:[#allocation8 + $0xf0] sm:$0xff] }
 0x566   :  { %1562 = vmatpush.msra.mxu0 %v4952_v30 }
 0x567   :  { %v3679_v24 = vmul.f32 -1.442695, %v1068_v57 }
 0x569   :  { %3836 = vpow2.f32 %v3679_v24  ;;  %v1169_v58 = vpop.f32.mrf.mxu2  ;;  %v1189_v54 = vpop.f32.mrf.mxu3 }
 0x56a   :  { %v1170_v60 = vadd.f32 %v1169_v58, %v6329_v25  ;;  %v1190_v35 = vadd.f32 %v1189_v54, %v6332_v36  ;;  %v4967_v54 = vld [vmem:[#allocation8 + $0xd8] sm:$0xff] }
 0x56c   :  { %v3681_v27 = vmul.f32 -1.442695, %v1170_v60 }
 0x56e   :  { %3838 = vpow2.f32 %v3681_v27  ;;  %v3680_v27 = vmul.f32 -1.442695, %v1069_v14 }
 0x56f   :  { %v3837_v61 = vpop.eup %3836 }
 0x570   :  { %v1073_v28 = vadd.f32 1.0, %v3837_v61  ;;  %v3682_v61 = vmul.f32 -1.442695, %v1190_v35 }
 0x572   :  { %3840 = vrcp.f32 %v1073_v28  ;;  %v1085_v38 = vand.u32 2147483648, %v1073_v28  ;;  %v1083_v37 = vand.u32 2147483647, %v1073_v28  ;;  %vm1079_vm8 = vweird.f32 %v1073_v28 }
 0x574   :  { %v3839_v2 = vpop.eup %3838  ;;  %v1086_v0 = vor.u32 1.1754944e-38, %v1085_v38  ;;  %vm1084_vm11 = vcmp.eq.f32.partialorder %v1083_v37, 8.507059e+37  ;;  %v4981_v38 = vld [vmem:[#allocation11 + $0xe0] sm:$0xff]  ;;  %v4989_v37 = vld [vmem:[#allocation11 + $0xd0] sm:$0xff] }
 0x575   :  { %v1195_v9 = vadd.f32 1.0, %v3839_v2 }
 0x576   :  { %v1294_v11 = vpop.f32.mrf.mxu0  ;;  %v1314_v50 = vpop.f32.mrf.mxu1 }
 0x577   :  { %3842 = vrcp.f32 %v1195_v9  ;;  %v1295_v13 = vadd.f32 %v1294_v11, %v6330_v16  ;;  %v1205_v39 = vand.u32 2147483647, %v1195_v9  ;;  %v1207_v59 = vand.u32 2147483648, %v1195_v9  ;;  %v4956_v11 = vld [vmem:[#allocation8 + $0xe0] sm:$0xff] }
 0x578   :  { %v3841_v31 = vpop.eup %3840  ;;  %vm1201_vm13 = vweird.f32 %v1195_v9  ;;  %v4939_v19 = vadd.f32 %v1314_v50, %v4742_v48  ;;  %1563 = vmatpush.msra.mxu0 %v4956_v11  ;;  %v5033_v50 = vld [vmem:[#allocation8 + $0x80] sm:$0xff] }
 0x579   :  { %v3683_v20 = vmul.f32 -1.442695, %v1295_v13  ;;  %v1075_v15 = vmul.f32 %v3841_v31, %v1073_v28  ;;  %vm1080_vm7 = vweird.f32 %v3841_v31  ;;  %v1208_v46 = vor.u32 1.1754944e-38, %v1207_v59  ;;  %v4961_v13 = vld [vmem:[#allocation8 + $0xe8] sm:$0xff] }
 0x57a   :  { %vm1081_vm10 = vmor %vm1079_vm8, %vm1080_vm7  ;;  %vm1206_vm15 = vcmp.eq.f32.partialorder %v1205_v39, 8.507059e+37  ;;  %v5007_v39 = vld [vmem:[#allocation8 + $0xa0] sm:$0xff]  ;;  %v5009_v59 = vld [vmem:[#allocation8 + $0xa8] sm:$0xff] }
 0x57b   :  { %3844 = vpow2.f32 %v3683_v20  ;;  %v1076_v34 = vsub.f32 1.0, %v1075_v15  ;;  %v4969_v20 = vld [vmem:[#allocation11 + $0xf0] sm:$0xff]  ;;  %v4973_v15 = vld [vmem:[#allocation8 + $0xc0] sm:$0xff] }
 0x57c   :  { %3846 = vtanh.f32 %v1069_v14  ;;  %v4965_v14 = vld [vmem:[#allocation8 + $0xd0] sm:$0xff]  ;;  %1687 = vmatpush.msra.mxu2 %v4969_v20 }
 0x57d   :  { %v3843_v1 = vpop.eup %3842  ;;  %v1077_v22 = vmul.f32 %v3841_v31, %v1076_v34  ;;  %3848 = vtanh.f32 %v1190_v35  ;;  %v4975_v34 = vld [vmem:[#allocation11 + $0xf8] sm:$0xff]  ;;  %v4977_v35 = vld [vmem:[#allocation8 + $0xc8] sm:$0xff]  ;;  %1564 = vmatpush.msra.mxu0 %v4965_v14 }
 0x57e   :  { %v1197_v56 = vmul.f32 %v3843_v1, %v1195_v9  ;;  %vm1202_vm12 = vweird.f32 %v3843_v1  ;;  %v4954_v9 = vld [vmem:[#allocation8 + $0xf8] sm:$0xff]  ;;  %1707 = vmatpush.msrb.mxu3 %v4975_v34  ;;  %1688 = vmatpush.msra.mxu2 %v4981_v38 }
 0x57f   :  { %v1078_v32 = vadd.f32 %v3841_v31, %v1077_v22  ;;  %vm1203_vm14 = vmor %vm1201_vm13, %vm1202_vm12  ;;  %1582 = vmatpush.msrb.mxu1 %v4954_v9  ;;  %1565 = vmatpush.msra.mxu0 %v4973_v15 }
 0x580   :  { %v1198_v45 = vsub.f32 1.0, %v1197_v56  ;;  %v4991_v56 = vld [vmem:[#allocation11 + $0xd8] sm:$0xff]  ;;  %1689 = vmatpush.msra.mxu2 %v4989_v37 }
 0x581   :  { %v3845_v3 = vpop.eup %3844  ;;  %v1082_v5 = vsel %vm1081_vm10, %v3841_v31, %v1078_v32  ;;  %1583 = vmatpush.msrb.mxu1 %v4961_v13  ;;  %v4993_v32 = vld [vmem:[#allocation8 + $0xb0] sm:$0xff] }
 0x582   :  { %v3847_v7 = vpop.eup %3846  ;;  %v1320_v4 = vadd.f32 1.0, %v3845_v3  ;;  %v4931_v41 = vsel %vm1084_vm11, %v1086_v0, %v1082_v5  ;;  %v1199_v8 = vmul.f32 %v3843_v1, %v1198_v45  ;;  %v4995_v0 = vld [vmem:[#allocation8 + $0xb8] sm:$0xff]  ;;  %v5003_v3 = vld [vmem:[#allocation11 + $0xc0] sm:$0xff]  ;;  %v5005_v5 = vld [vmem:[#allocation11 + $0xc8] sm:$0xff]  ;;  %1566 = vmatpush.msra.mxu0 %v4993_v32 }
 0x583   :  { %v1110_v12 = vmul.f32 %v3847_v7, %v4931_v41  ;;  %v3849_v49 = vpop.eup %3848  ;;  %1584 = vmatpush.msrb.mxu1 %v4967_v54  ;;  %1690 = vmatpush.msra.mxu2 %v5003_v3 }
 0x584   :  { %3850 = vrcp.f32 %v1320_v4  ;;  %v1200_v42 = vadd.f32 %v3843_v1, %v1199_v8  ;;  %v1332_v44 = vand.u32 2147483648, %v1320_v4  ;;  %v1330_v53 = vand.u32 2147483647, %v1320_v4  ;;  %v5017_v8 = vld [vmem:[#allocation11 + $0xb8] sm:$0xff]  ;;  %1567 = vmatpush.msra.mxu0 %v5007_v39 }
 0x585   :  { %1112 = vrot.lane.b32.xlu0 %v1110_v12, %s4301_s3  ;;  %3852 = vtanh.f32 %v4939_v19  ;;  %vm1326_vm2 = vweird.f32 %v1320_v4  ;;  %1585 = vmatpush.msrb.mxu1 %v4977_v35 }
 0x586   :  { %v1204_v18 = vsel %vm1203_vm14, %v3843_v1, %v1200_v42  ;;  %v1333_v6 = vor.u32 1.1754944e-38, %v1332_v44  ;;  %vm1331_vm4 = vcmp.eq.f32.partialorder %v1330_v53, 8.507059e+37  ;;  %3854 = vpow2.f32 %v3680_v27  ;;  %v4983_v1 = vld [vmem:[#allocation11 + $0xe8] sm:$0xff] }
 0x587   :  { %v4935_v21 = vsel %vm1206_vm15, %v1208_v46, %v1204_v18  ;;  %3856 = vpow2.f32 %v3682_v61  ;;  %1708 = vmatpush.msrb.mxu3 %v4983_v1  ;;  %1586 = vmatpush.msrb.mxu1 %v4995_v0  ;;  %v5021_v42 = vld [vmem:[#allocation8 + $0x90] sm:$0xff]  ;;  %v5023_v46 = vld [vmem:[#allocation8 + $0x98] sm:$0xff]  ;;  %v6337_v44 = vld [vmem:[#allocation49_spill] sm:$0xff] }
 0x588   :  { %v1232_v51 = vmul.f32 %v3849_v49, %v4935_v21  ;;  %v5029_v49 = vld [vmem:[#allocation11 + $0xa0] sm:$0xff]  ;;  %v5031_v18 = vld [vmem:[#allocation11 + $0xa8] sm:$0xff]  ;;  %1568 = vmatpush.msra.mxu0 %v5021_v42 }
 0x589   :  { %1709 = vmatpush.msrb.mxu3 %v4991_v56  ;;  %1587 = vmatpush.msrb.mxu1 %v5009_v59  ;;  %6333 = vst [vmem:[#allocation26_spill] sm:$0xff] %v5029_v49  ;;  %v5064_v61 = vld [vmem:[#allocation8 + $0x68] sm:$0xff] }
 0x58a   :  { %v3851_v23 = vpop.eup %3850  ;;  %1234 = vrot.lane.b32.xlu1 %v1232_v51, %s4301_s3  ;;  %6334 = vst [vmem:[#allocation27_spill] sm:$0xff] %v5031_v18  ;;  %v5035_v51 = vld [vmem:[#allocation8 + $0x88] sm:$0xff]  ;;  %1569 = vmatpush.msra.mxu0 %v5033_v50 }
 0x58b   :  { %v1322_v47 = vmul.f32 %v3851_v23, %v1320_v4  ;;  %vm1327_vm1 = vweird.f32 %v3851_v23  ;;  %v3853_v24 = vpop.eup %3852  ;;  %v5015_v4 = vld [vmem:[#allocation11 + $0xb0] sm:$0xff]  ;;  %1710 = vmatpush.msrb.mxu3 %v5005_v5  ;;  %1588 = vmatpush.msrb.mxu1 %v5023_v46 }
 0x58c   :  { %vm1328_vm3 = vmor %vm1326_vm2, %vm1327_vm1  ;;  %v3855_v63 = vpop.eup %3854  ;;  %1691 = vmatpush.msra.mxu2 %v5015_v4 }
 0x58d   :  { %v1323_v52 = vsub.f32 1.0, %v1322_v47  ;;  %v4947_v28 = vadd.f32 1.0, %v3855_v63  ;;  %v3857_v29 = vpop.eup %3856  ;;  %1711 = vmatpush.msrb.mxu3 %v5017_v8  ;;  %v5042_v47 = vld [vmem:[#allocation11 + $0x90] sm:$0xff]  ;;  %1589 = vmatpush.msrb.mxu1 %v5035_v51 }
 0x58e   :  { %v4950_v2 = vadd.f32 1.0, %v3857_v29  ;;  %6335 = vst [vmem:[#allocation28_spill] sm:$0xff] %v5042_v47  ;;  %1692 = vmatpush.msra.mxu2 %v5029_v49  ;;  %v1371_v29 = vld [vmem:[#allocation3 + $0x8] sm:$0x3] }
 0x58f   :  { %v1324_v17 = vmul.f32 %v3851_v23, %v1323_v52  ;;  %3858 = vrcp.f32 %v4947_v28  ;;  %v5044_v52 = vld [vmem:[#allocation11 + $0x98] sm:$0xff]  ;;  %1712 = vmatpush.msrb.mxu3 %v5031_v18  ;;  %vm1098_vm6 = vweird.f32 %v4947_v28  ;;  %3687 = vmatmul.msk.f32.vlgmr.msrb.gmra.mxu0 %vm228_vm0, %v1371_v29 }
 0x590   :  { %3860 = vrcp.f32 %v4950_v2  ;;  %6336 = vst [vmem:[#allocation29_spill] sm:$0xff] %v5044_v52  ;;  %1693 = vmatpush.msra.mxu2 %v5042_v47  ;;  %3688 = vmatmul.msk.f32.vlgmr.msra.gmra.mxu1 %vm228_vm0, %v1371_v29  ;;  %v5112_v47 = vld [vmem:[#allocation11 + $0x68] sm:$0xff]  ;;  %v5128_v29 = vld [vmem:[#allocation11 + $0x58] sm:$0xff]  ;;  %vm1220_vm11 = vweird.f32 %v4950_v2 }
 0x591   :  { %v1325_v10 = vadd.f32 %v3851_v23, %v1324_v17  ;;  %v1109_v17 = vmul.f32 %v4931_v41, %v6337_v44  ;;  %v5062_v41 = vld [vmem:[#allocation8 + $0x60] sm:$0xff]  ;;  %1713 = vmatpush.msrb.mxu3 %v5044_v52  ;;  %v5077_v44 = vld [vmem:[#allocation8 + $0x58] sm:$0xff]  ;;  %6345 = vst [vmem:[#allocation35_spill] sm:$0xff] %v5112_v47 }
 0x592   :  { %v5110_v52 = vld [vmem:[#allocation11 + $0x60] sm:$0xff]  ;;  %6347 = vst [vmem:[#allocation37_spill] sm:$0xff] %v5128_v29 }
 0x593   :  { %v1329_v57 = vsel %vm1328_vm3, %v3851_v23, %v1325_v10  ;;  %v5048_v10 = vld [vmem:[#allocation8 + $0x70] sm:$0xff]  ;;  %6344 = vst [vmem:[#allocation34_spill] sm:$0xff] %v5110_v52 }
 0x594   :  { %v4943_v58 = vsel %vm1331_vm4, %v1333_v6, %v1329_v57  ;;  %v5050_v6 = vld [vmem:[#allocation8 + $0x78] sm:$0xff]  ;;  %1570 = vmatpush.msra.mxu0 %v5048_v10 }
 0x595   :  { %v1357_v60 = vmul.f32 %v3853_v24, %v4943_v58  ;;  %v4963_v31 = vpop.eup %3858  ;;  %v5056_v24 = vld [vmem:[#allocation11 + $0x80] sm:$0xff]  ;;  %1590 = vmatpush.msrb.mxu1 %v5050_v6 }
 0x596   :  { %v1094_v22 = vmul.f32 %v4963_v31, %v4947_v28  ;;  %v4999_v45 = vpop.eup %3860  ;;  %6338 = vst [vmem:[#allocation30_spill] sm:$0xff] %v5056_v24  ;;  %vm1099_vm5 = vweird.f32 %v4963_v31  ;;  %1694 = vmatpush.msra.mxu2 %v5056_v24  ;;  %1571 = vmatpush.msra.mxu0 %v5062_v41 }
 0x597   :  { %1359 = vrot.lane.b32.xlu2 %v1357_v60, %s4301_s3  ;;  %v1216_v12 = vmul.f32 %v4999_v45, %v4950_v2  ;;  %v5058_v60 = vld [vmem:[#allocation11 + $0x88] sm:$0xff]  ;;  %1591 = vmatpush.msrb.mxu1 %v5064_v61  ;;  %vm5093_vm7 = vmor %vm1098_vm6, %vm1099_vm5  ;;  %vm1221_vm8 = vweird.f32 %v4999_v45 }
 0x598   :  { %v1095_v7 = vsub.f32 1.0, %v1094_v22  ;;  %6339 = vst [vmem:[#allocation31_spill] sm:$0xff] %v5058_v60  ;;  %v1104_v22 = vand.u32 2147483648, %v4947_v28  ;;  %1714 = vmatpush.msrb.mxu3 %v5058_v60  ;;  %v1226_v60 = vand.u32 2147483648, %v4950_v2  ;;  %vm5138_vm12 = vmor %vm1220_vm11, %vm1221_vm8 }
 0x599   :  { %v1217_v53 = vsub.f32 1.0, %v1216_v12  ;;  %v5075_v12 = vld [vmem:[#allocation8 + $0x50] sm:$0xff]  ;;  %1592 = vmatpush.msrb.mxu1 %v5077_v44 }
 0x59a   :  { %v1096_v23 = vmul.f32 %v4963_v31, %v1095_v7  ;;  %1572 = vmatpush.msra.mxu0 %v5075_v12  ;;  %v1105_v18 = vor.u32 1.1754944e-38, %v1104_v22 }
 0x59b   :  { %v1218_v7 = vmul.f32 %v4999_v45, %v1217_v53  ;;  %v5087_v53 = vld [vmem:[#allocation11 + $0x70] sm:$0xff] }
 0x59c   :  { %v1097_v63 = vadd.f32 %v4963_v31, %v1096_v23  ;;  %v1231_v23 = vmul.f32 %v4935_v21, %v4839_v26  ;;  %6340 = vst [vmem:[#allocation32_spill] sm:$0xff] %v5087_v53  ;;  %v5097_v26 = vld [vmem:[#allocation8 + $0x40] sm:$0xff]  ;;  %v5099_v21 = vld [vmem:[#allocation8 + $0x48] sm:$0xff]  ;;  %1695 = vmatpush.msra.mxu2 %v5087_v53 }
 0x59d   :  { %v1219_v49 = vadd.f32 %v4999_v45, %v1218_v7  ;;  %1573 = vmatpush.msra.mxu0 %v5097_v26  ;;  %1593 = vmatpush.msrb.mxu1 %v5099_v21  ;;  %v5163_v53 = vld [vmem:[#allocation11 + $0x40] sm:$0xff] }
 0x59e   :  { %v1101_v24 = vsel %vm5093_vm7, %v4963_v31, %v1097_v63  ;;  %v5120_v31 = vld [vmem:[#allocation8 + $0x38] sm:$0xff]  ;;  %1696 = vmatpush.msra.mxu2 %v5110_v52  ;;  %6353 = vst [vmem:[#allocation41_spill] sm:$0xff] %v5163_v53 }
 0x59f   :  { %v5126_v63 = vld [vmem:[#allocation11 + $0x50] sm:$0xff]  ;;  %1594 = vmatpush.msrb.mxu1 %v5120_v31 }
 0x5a0   :  { %6346 = vst [vmem:[#allocation36_spill] sm:$0xff] %v5126_v63  ;;  %1697 = vmatpush.msra.mxu2 %v5126_v63 }
 0x5a2   :  { %1698 = vmatpush.msra.mxu2 %v5163_v53  ;;  %v1356_v53 = vmul.f32 %v4943_v58, %v4919_v62 }
 0x5f7   :  { %v1113_v57 = vpop.permute.xlu0 %1112 }
 0x5f8   :  { %v5060_v27 = vadd.f32 %v1113_v57, %v1109_v17  ;;  %v1102_v17 = vand.u32 2147483647, %v4947_v28  ;;  %v5089_v57 = vld [vmem:[#allocation11 + $0x78] sm:$0xff] }
 0x5f9   :  { %6341 = vst [vmem:[#allocation33_spill] sm:$0xff] %v5089_v57  ;;  %1715 = vmatpush.msrb.mxu3 %v5089_v57 }
 0x5fa   :  { %3862 = vtanh.f32 %v5060_v27  ;;  %vm1103_vm10 = vcmp.eq.f32.partialorder %v1102_v17, 8.507059e+37  ;;  %v5134_v17 = vld [vmem:[#allocation8 + $0x20] sm:$0xff] }
 0x5fb   :  { %v1106_v7 = vsel %vm1103_vm10, %v1105_v18, %v1101_v24  ;;  %1716 = vmatpush.msrb.mxu3 %v5112_v47  ;;  %v5144_v18 = vld [vmem:[#allocation8 + $0x28] sm:$0xff]  ;;  %v5151_v24 = vld [vmem:[#allocation8 + $0x10] sm:$0xff] }
 0x5fc   :  { %v1235_v43 = vpop.permute.xlu1 %1234  ;;  %6350 = vst [vmem:[#allocation38_spill] sm:$0xff] %v5144_v18  ;;  %1595 = vmatpush.msrb.mxu1 %v5144_v18 }
 0x5fd   :  { %v5103_v28 = vadd.f32 %v1235_v43, %v1231_v23  ;;  %v5118_v43 = vld [vmem:[#allocation8 + $0x30] sm:$0xff]  ;;  %v1224_v23 = vand.u32 2147483647, %v4950_v2  ;;  %v1223_v2 = vsel %vm5138_vm12, %v4999_v45, %v1219_v49  ;;  %1717 = vmatpush.msrb.mxu3 %v5128_v29  ;;  %6351 = vst [vmem:[#allocation39_spill] sm:$0xff] %v5151_v24  ;;  %v3684_v49 = vmul.f32 -1.442695, %v4939_v19 }
 0x5fe   :  { %1574 = vmatpush.msra.mxu0 %v5118_v43  ;;  %v5180_v19 = vld [vmem:[#allocation11 + $0x28] sm:$0xff] }
 0x5ff   :  { %3864 = vtanh.f32 %v5103_v28  ;;  %vm1225_vm13 = vcmp.eq.f32.partialorder %v1224_v23, 8.507059e+37  ;;  %v5174_v23 = vld [vmem:[#allocation11 + $0x38] sm:$0xff]  ;;  %6359 = vst [vmem:[#allocation47_spill] sm:$0xff] %v5180_v19 }
 0x600   :  { %v3863_v22 = vpop.eup %3862  ;;  %1575 = vmatpush.msra.mxu0 %v5134_v17  ;;  %3866 = vpow2.f32 %v3684_v49  ;;  %6357 = vst [vmem:[#allocation45_spill] sm:$0xff] %v5174_v23  ;;  %v5186_v49 = vld [vmem:[#allocation11 + $0x18] sm:$0xff] }
 0x601   :  { %v1117_v57 = vmul.f32 %v3863_v22, %v1106_v7  ;;  %v1227_v22 = vor.u32 1.1754944e-38, %v1226_v60  ;;  %v5155_v7 = vld [vmem:[#allocation8 + $0x18] sm:$0xff]  ;;  %v5169_v60 = vld [vmem:[#allocation8] sm:$0xff]  ;;  %6361 = vst [vmem:[#allocation51_spill] sm:$0xff] %v5186_v49 }
 0x602   :  { %6352 = vst [vmem:[#allocation40_spill] sm:$0xff] %v5155_v7  ;;  %1576 = vmatpush.msra.mxu0 %v5151_v24  ;;  %1596 = vmatpush.msrb.mxu1 %v5155_v7 }
 0x603   :  { %1391 = vrot.lane.b32.xlu0 %v1117_v57, %s4301_s3  ;;  %v1228_v52 = vsel %vm1225_vm13, %v1227_v22, %v1223_v2  ;;  %v5165_v57 = vld [vmem:[#allocation11 + $0x48] sm:$0xff]  ;;  %6355 = vst [vmem:[#allocation43_spill] sm:$0xff] %v5169_v60  ;;  %v5184_v22 = vld [vmem:[#allocation11 + $0x10] sm:$0xff] }
 0x604   :  { %1597 = vmatpush.msrb.mxu1 %v4901_v40  ;;  %6354 = vst [vmem:[#allocation42_spill] sm:$0xff] %v5165_v57  ;;  %1718 = vmatpush.msrb.mxu3 %v5165_v57  ;;  %v5176_v40 = vld [vmem:[#allocation11 + $0x20] sm:$0xff] }
 0x605   :  { %v3865_v47 = vpop.eup %3864  ;;  %1577 = vmatpush.msra.mxu0 %v5169_v60  ;;  %6358 = vst [vmem:[#allocation46_spill] sm:$0xff] %v5176_v40  ;;  %v5188_v57 = vld [vmem:[#allocation11] sm:$0xff] }
 0x606   :  { %v1239_v45 = vmul.f32 %v3865_v47, %v1228_v52  ;;  %v3867_v47 = vpop.eup %3866  ;;  %v5172_v52 = vld [vmem:[#allocation11 + $0x30] sm:$0xff]  ;;  %1719 = vmatpush.msrb.mxu3 %v5174_v23  ;;  %6360 = vst [vmem:[#allocation49_spill] sm:$0xff] %v5184_v22  ;;  %v1360_v23 = vpop.permute.xlu2 %1359 }
 0x607   :  { %6356 = vst [vmem:[#allocation44_spill] sm:$0xff] %v5172_v52  ;;  %1699 = vmatpush.msra.mxu2 %v5172_v52  ;;  %v1339_v2 = vadd.f32 1.0, %v3867_v47  ;;  %v5192_v52 = vld [vmem:[#allocation11 + $0x8] sm:$0xff]  ;;  %v5198_v60 = vadd.f32 %v1360_v23, %v1356_v53 }
 0x608   :  { %1651 = vrot.lane.b32.xlu1 %v1239_v45, %s4301_s3  ;;  %1720 = vmatpush.msrb.mxu3 %v5180_v19  ;;  %6362 = vst [vmem:[#allocation52_spill] sm:$0xff] %v5188_v57 }
 0x609   :  { %1700 = vmatpush.msra.mxu2 %v5176_v40  ;;  %6363 = vst [vmem:[#allocation53_spill] sm:$0xff] %v5192_v52  ;;  %3868 = vrcp.f32 %v1339_v2  ;;  %vm1345_vm15 = vweird.f32 %v1339_v2 }
 0x60a   :  { %1721 = vmatpush.msrb.mxu3 %v5186_v49  ;;  %6364 = vst [vmem:[#allocation54_spill] sm:$0xff] %v5198_v60  ;;  %3870 = vtanh.f32 %v5198_v60 }
 0x60b   :  { %1701 = vmatpush.msra.mxu2 %v5184_v22  ;;  %v1351_v22 = vand.u32 2147483648, %v1339_v2 }
 0x60c   :  { %1722 = vmatpush.msrb.mxu3 %v5192_v52  ;;  %v1455_v60 = vpop.f32.mrf.mxu0 }
 0x60d   :  { %1702 = vmatpush.msra.mxu2 %v5188_v57  ;;  %v1349_v57 = vand.u32 2147483647, %v1339_v2  ;;  %v1352_v53 = vor.u32 1.1754944e-38, %v1351_v22 }
 0x60f   :  { %v3869_v47 = vpop.eup %3868  ;;  %vm1350_vm2 = vcmp.eq.f32.partialorder %v1349_v57, 8.507059e+37 }
 0x610   :  { %v1341_v40 = vmul.f32 %v3869_v47, %v1339_v2  ;;  %vm1346_vm14 = vweird.f32 %v3869_v47  ;;  %v3871_v58 = vpop.eup %3870 }
 0x611   :  { %vm1347_vm1 = vmor %vm1345_vm15, %vm1346_vm14 }
 0x612   :  { %v1342_v19 = vsub.f32 1.0, %v1341_v40 }
 0x614   :  { %v1343_v29 = vmul.f32 %v3869_v47, %v1342_v19 }
 0x616   :  { %v1344_v49 = vadd.f32 %v3869_v47, %v1343_v29 }
 0x618   :  { %v1348_v62 = vsel %vm1347_vm1, %v3869_v47, %v1344_v49 }
 0x619   :  { %v1353_v23 = vsel %vm1350_vm2, %v1352_v53, %v1348_v62 }
 0x61a   :  { %v5204_v19 = vmul.f32 %v3871_v58, %v1353_v23 }
 0x61c   :  { %6365 = vst [vmem:[#allocation55_spill] sm:$0xff] %v5204_v19 }
 0x675   :  { %v1392_v63 = vpop.permute.xlu0 %1391 }
 0x676   :  { %3685 = vmatmul.msk.f32.vlgmr.msrb.gmra.mxu2 %vm157_vm9, %v1392_v63  ;;  %3686 = vmatmul.msk.f32.vlgmr.msra.gmra.mxu3 %vm157_vm9, %v1392_v63  ;;  %v1529_v40 = vsel %vm157_vm9, %v1392_v63, %v1239_v45 }
 0x677   :  { %1578 = vmatmul.f32.vlgmr.msra.gmra.mxu0 %v1529_v40  ;;  %1598 = vmatmul.f32.vlgmr.msrb.gmra.mxu1 %v1529_v40 }
 0x67a   :  { %v1652_v29 = vpop.permute.xlu1 %1651 }
 0x67b   :  { %v1654_v2 = vsel %vm157_vm9, %v1652_v29, %v5204_v19 }
 0x67e   :  { %1703 = vmatmul.f32.vlgmr.msra.gmra.mxu2 %v1654_v2  ;;  %1723 = vmatmul.f32.vlgmr.msrb.gmra.mxu3 %v1654_v2 }
 0x6f4   :  { %v1579_v52 = vpop.f32.mrf.mxu0 }
 0x6f5   :  { %v1580_v63 = vadd.f32 %v1579_v52, %v6329_v25 }
 0x6f7   :  { %v3691_v45 = vmul.f32 -1.442695, %v1580_v63 }
 0x6f9   :  { %3872 = vpow2.f32 %v3691_v45  ;;  %v1412_v40 = vpop.f32.mrf.mxu2  ;;  %v1432_v2 = vpop.f32.mrf.mxu3 }
 0x6fa   :  { %v1456_v49 = vadd.f32 %v1455_v60, %v1412_v40  ;;  %v1475_v45 = vpop.f32.mrf.mxu1 }
 0x6fb   :  { %v1476_v60 = vadd.f32 %v1475_v45, %v1432_v2 }
 0x6fc   :  { %v1478_v22 = vadd.f32 %v1456_v49, %v6328_v55 }
 0x6fe   :  { %v3689_v57 = vmul.f32 -1.442695, %v1478_v22 }
 0x6ff   :  { %v3873_v47 = vpop.eup %3872 }
 0x700   :  { %v5210_v62 = vadd.f32 1.0, %v3873_v47  ;;  %3874 = vpow2.f32 %v3689_v57  ;;  %v1479_v57 = vadd.f32 %v1476_v60, %v6331_v33 }
 0x701   :  { %v1704_v58 = vpop.f32.mrf.mxu2 }
 0x702   :  { %v1705_v53 = vadd.f32 %v1704_v58, %v6330_v16  ;;  %3876 = vrcp.f32 %v5210_v62  ;;  %v1724_v16 = vpop.f32.mrf.mxu3  ;;  %v1599_v25 = vpop.f32.mrf.mxu1  ;;  %vm1611_vm6 = vweird.f32 %v5210_v62 }
 0x703   :  { %v5217_v45 = vadd.f32 %v1724_v16, %v4742_v48 }
 0x704   :  { %v3693_v23 = vmul.f32 -1.442695, %v1705_v53 }
 0x706   :  { %v3875_v29 = vpop.eup %3874  ;;  %3878 = vpow2.f32 %v3693_v23 }
 0x707   :  { %v1483_v52 = vadd.f32 1.0, %v3875_v29 }
 0x708   :  { %v3877_v63 = vpop.eup %3876 }
 0x709   :  { %3880 = vrcp.f32 %v1483_v52  ;;  %v1607_v49 = vmul.f32 %v3877_v63, %v5210_v62  ;;  %v1495_v23 = vand.u32 2147483648, %v1483_v52  ;;  %v1493_v55 = vand.u32 2147483647, %v1483_v52 }
 0x70a   :  { %vm1489_vm4 = vweird.f32 %v1483_v52  ;;  %vm1612_vm7 = vweird.f32 %v3877_v63 }
 0x70b   :  { %v1608_v19 = vsub.f32 1.0, %v1607_v49  ;;  %v1496_v49 = vor.u32 1.1754944e-38, %v1495_v23  ;;  %vm1494_vm8 = vcmp.eq.f32.partialorder %v1493_v55, 8.507059e+37  ;;  %vm1613_vm11 = vmor %vm1611_vm6, %vm1612_vm7 }
 0x70c   :  { %v3879_v40 = vpop.eup %3878 }
 0x70d   :  { %v1730_v22 = vadd.f32 1.0, %v3879_v40  ;;  %v1609_v7 = vmul.f32 %v3877_v63, %v1608_v19  ;;  %v1600_v40 = vadd.f32 %v1599_v25, %v6332_v36 }
 0x70f   :  { %v3881_v47 = vpop.eup %3880  ;;  %3882 = vrcp.f32 %v1730_v22  ;;  %v1610_v19 = vadd.f32 %v3877_v63, %v1609_v7  ;;  %v1742_v25 = vand.u32 2147483648, %v1730_v22  ;;  %v1740_v48 = vand.u32 2147483647, %v1730_v22 }
 0x710   :  { %v1485_v58 = vmul.f32 %v3881_v47, %v1483_v52  ;;  %3884 = vtanh.f32 %v1479_v57  ;;  %vm1490_vm3 = vweird.f32 %v3881_v47  ;;  %vm1736_vm12 = vweird.f32 %v1730_v22 }
 0x711   :  { %vm1491_vm5 = vmor %vm1489_vm4, %vm1490_vm3  ;;  %3886 = vtanh.f32 %v5217_v45  ;;  %v1743_v7 = vor.u32 1.1754944e-38, %v1742_v25  ;;  %vm1741_vm14 = vcmp.eq.f32.partialorder %v1740_v48, 8.507059e+37 }
 0x712   :  { %v1486_v53 = vsub.f32 1.0, %v1485_v58  ;;  %v1615_v58 = vand.u32 2147483647, %v5210_v62  ;;  %3888 = vtanh.f32 %v1600_v40 }
 0x714   :  { %v1487_v29 = vmul.f32 %v3881_v47, %v1486_v53  ;;  %vm1616_vm15 = vcmp.eq.f32.partialorder %v1615_v58, 8.507059e+37 }
 0x715   :  { %v3883_v2 = vpop.eup %3882 }
 0x716   :  { %v1732_v24 = vmul.f32 %v3883_v2, %v1730_v22  ;;  %v1488_v60 = vadd.f32 %v3881_v47, %v1487_v29  ;;  %v3885_v18 = vpop.eup %3884  ;;  %v1617_v29 = vand.u32 2147483648, %v5210_v62  ;;  %vm1737_vm10 = vweird.f32 %v3883_v2 }
 0x717   :  { %vm1738_vm13 = vmor %vm1736_vm12, %vm1737_vm10  ;;  %v3692_v22 = vmul.f32 -1.442695, %v1600_v40 }
 0x718   :  { %v1492_v53 = vsel %vm1491_vm5, %v3881_v47, %v1488_v60  ;;  %v1733_v33 = vsub.f32 1.0, %v1732_v24  ;;  %v1614_v24 = vsel %vm1613_vm11, %v3877_v63, %v1610_v19  ;;  %v1618_v47 = vor.u32 1.1754944e-38, %v1617_v29  ;;  %v5246_v29 = vld [vmem:[#allocation7 + $0x70] sm:$0xff] }
 0x719   :  { %v5223_v16 = vsel %vm1494_vm8, %v1496_v49, %v1492_v53  ;;  %v3690_v63 = vmul.f32 -1.442695, %v1479_v57  ;;  %1813 = vmatpush.msrb.mxu0 %v5246_v29  ;;  %v5255_v57 = vld [vmem:[#allocation7 + $0x68] sm:$0xff] }
 0x71a   :  { %v1520_v52 = vmul.f32 %v3885_v18, %v5223_v16  ;;  %v1734_v23 = vmul.f32 %v3883_v2, %v1733_v33  ;;  %v3887_v18 = vpop.eup %3886  ;;  %v5233_v49 = vsel %vm1616_vm15, %v1618_v47, %v1614_v24  ;;  %v5259_v24 = vld [vmem:[#allocation7 + $0x50] sm:$0xff] }
 0x71b   :  { %v3889_v62 = vpop.eup %3888  ;;  %3890 = vpow2.f32 %v3690_v63  ;;  %v5263_v47 = vld [vmem:[#allocation5] sm:$0xff]  ;;  %v5281_v63 = vld [vmem:[#allocation7 + $0x38] sm:$0xff] }
 0x71c   :  { %1522 = vrot.lane.b32.xlu0 %v1520_v52, %s4301_s3  ;;  %v1735_v55 = vadd.f32 %v3883_v2, %v1734_v23  ;;  %v1642_v52 = vmul.f32 %v3889_v62, %v5233_v49  ;;  %3892 = vpow2.f32 %v3692_v22  ;;  %v5248_v23 = vld [vmem:[#allocation7 + $0x78] sm:$0xff]  ;;  %1863 = vmatpush.msrb.mxu2 %v5263_v47 }
 0x71d   :  { %1833 = vmatpush.msra.mxu1 %v5248_v23 }
 0x71e   :  { %v1739_v60 = vsel %vm1738_vm13, %v3883_v2, %v1735_v55  ;;  %v5250_v55 = vld [vmem:[#allocation7 + $0x60] sm:$0xff]  ;;  %1972 = vmatpush.msra.mxu2 %v4952_v30 }
 0x71f   :  { %v5231_v33 = vsel %vm1741_vm14, %v1743_v7, %v1739_v60  ;;  %v5261_v7 = vld [vmem:[#allocation7 + $0x58] sm:$0xff]  ;;  %1814 = vmatpush.msrb.mxu0 %v5250_v55  ;;  %1834 = vmatpush.msra.mxu1 %v5255_v57 }
 0x720   :  { %v1767_v53 = vmul.f32 %v3887_v18, %v5231_v33  ;;  %v5267_v60 = vld [vmem:[#allocation5 + $0x8] sm:$0xff]  ;;  %v5269_v18 = vld [vmem:[#allocation7 + $0x40] sm:$0xff]  ;;  %1973 = vmatpush.msra.mxu2 %v4956_v11  ;;  %v5300_v11 = vld [vmem:[#allocation7 + $0x10] sm:$0xff] }
 0x721   :  { %v3891_v2 = vpop.eup %3890  ;;  %1883 = vmatpush.msra.mxu3 %v5267_v60  ;;  %1815 = vmatpush.msrb.mxu0 %v5259_v24 }
 0x722   :  { %1769 = vrot.lane.b32.xlu1 %v1767_v53, %s4301_s3  ;;  %v5239_v48 = vadd.f32 1.0, %v3891_v2  ;;  %v3893_v58 = vpop.eup %3892  ;;  %v5271_v53 = vld [vmem:[#allocation7 + $0x48] sm:$0xff]  ;;  %1835 = vmatpush.msra.mxu1 %v5261_v7  ;;  %v5289_v2 = vld [vmem:[#allocation7 + $0x20] sm:$0xff] }
 0x723   :  { %v5242_v19 = vadd.f32 1.0, %v3893_v58  ;;  %1992 = vmatpush.msrb.mxu3 %v4954_v9  ;;  %1816 = vmatpush.msrb.mxu0 %v5269_v18  ;;  %v5291_v58 = vld [vmem:[#allocation7 + $0x28] sm:$0xff] }
 0x724   :  { %1644 = vrot.lane.b32.xlu0 %v1642_v52, %s4301_s3  ;;  %3894 = vrcp.f32 %v5239_v48  ;;  %v5279_v52 = vld [vmem:[#allocation7 + $0x30] sm:$0xff]  ;;  %1836 = vmatpush.msra.mxu1 %v5271_v53  ;;  %vm1508_vm2 = vweird.f32 %v5239_v48 }
 0x725   :  { %3896 = vrcp.f32 %v5242_v19  ;;  %1993 = vmatpush.msrb.mxu3 %v4961_v13  ;;  %1817 = vmatpush.msrb.mxu0 %v5279_v52  ;;  %v5302_v13 = vld [vmem:[#allocation7 + $0x18] sm:$0xff]  ;;  %vm1630_vm6 = vweird.f32 %v5242_v19 }
 0x726   :  { %1837 = vmatpush.msra.mxu1 %v5281_v63  ;;  %1974 = vmatpush.msra.mxu2 %v4965_v14  ;;  %v5312_v14 = vld [vmem:[#allocation7 + $0x8] sm:$0xff] }
 0x727   :  { %1994 = vmatpush.msrb.mxu3 %v4967_v54  ;;  %1818 = vmatpush.msrb.mxu0 %v5289_v2 }
 0x728   :  { %1838 = vmatpush.msra.mxu1 %v5291_v58  ;;  %1975 = vmatpush.msra.mxu2 %v4973_v15  ;;  %v1514_v15 = vand.u32 2147483648, %v5239_v48 }
 0x729   :  { %1995 = vmatpush.msrb.mxu3 %v4977_v35  ;;  %1819 = vmatpush.msrb.mxu0 %v5300_v11  ;;  %v6392_v35 = vld [vmem:[#allocation52_spill] sm:$0xff] }
 0x72a   :  { %v5244_v25 = vpop.eup %3894  ;;  %1839 = vmatpush.msra.mxu1 %v5302_v13  ;;  %1976 = vmatpush.msra.mxu2 %v4993_v32 }
 0x72b   :  { %v1504_v40 = vmul.f32 %v5244_v25, %v5239_v48  ;;  %v5283_v22 = vpop.eup %3896  ;;  %vm1509_vm1 = vweird.f32 %v5244_v25  ;;  %1996 = vmatpush.msrb.mxu3 %v4995_v0 }
 0x72c   :  { %v1626_v9 = vmul.f32 %v5283_v22, %v5242_v19  ;;  %1840 = vmatpush.msra.mxu1 %v5312_v14  ;;  %vm5330_vm3 = vmor %vm1508_vm2, %vm1509_vm1  ;;  %1977 = vmatpush.msra.mxu2 %v5007_v39  ;;  %vm1631_vm5 = vweird.f32 %v5283_v22 }
 0x72d   :  { %v1505_v62 = vsub.f32 1.0, %v1504_v40  ;;  %v1519_v40 = vmul.f32 %v5223_v16, %v5060_v27  ;;  %1997 = vmatpush.msrb.mxu3 %v5009_v59  ;;  %vm1632_vm7 = vmor %vm1630_vm6, %vm1631_vm5 }
 0x72e   :  { %v1627_v16 = vsub.f32 1.0, %v1626_v9  ;;  %2117 = vmatpush.msrb.mxu1 %v4975_v34  ;;  %v1515_v34 = vor.u32 1.1754944e-38, %v1514_v15  ;;  %1978 = vmatpush.msra.mxu2 %v5021_v42  ;;  %v6385_v9 = vld [vmem:[#allocation42_spill] sm:$0xff]  ;;  %v6390_v15 = vld [vmem:[#allocation49_spill] sm:$0xff] }
 0x72f   :  { %v1506_v30 = vmul.f32 %v5244_v25, %v1505_v62  ;;  %v5310_v62 = vld [vmem:[#allocation7] sm:$0xff]  ;;  %1998 = vmatpush.msrb.mxu3 %v5023_v46  ;;  %v6369_v46 = vld [vmem:[#allocation27_spill] sm:$0xff] }
 0x730   :  { %1820 = vmatpush.msrb.mxu0 %v5310_v62  ;;  %v1628_v0 = vmul.f32 %v5283_v22, %v1627_v16  ;;  %2118 = vmatpush.msrb.mxu1 %v4983_v1  ;;  %v6389_v16 = vld [vmem:[#allocation47_spill] sm:$0xff] }
 0x731   :  { %v1507_v27 = vadd.f32 %v5244_v25, %v1506_v30  ;;  %1979 = vmatpush.msra.mxu2 %v5033_v50  ;;  %1999 = vmatpush.msrb.mxu3 %v5035_v51  ;;  %v1781_v50 = vld [vmem:[#allocation3 + $0xa] sm:$0x3] }
 0x732   :  { %2097 = vmatpush.msra.mxu0 %v4969_v20  ;;  %v1641_v20 = vmul.f32 %v5233_v49, %v5103_v28  ;;  %2119 = vmatpush.msrb.mxu1 %v4991_v56  ;;  %v1629_v28 = vadd.f32 %v5283_v22, %v1628_v0  ;;  %v1634_v56 = vand.u32 2147483647, %v5242_v19  ;;  %v6378_v49 = vld [vmem:[#allocation35_spill] sm:$0xff]  ;;  %v6384_v30 = vld [vmem:[#allocation41_spill] sm:$0xff] }
 0x733   :  { %v1511_v32 = vsel %vm5330_vm3, %v5244_v25, %v1507_v27  ;;  %1980 = vmatpush.msra.mxu2 %v5048_v10  ;;  %2000 = vmatpush.msrb.mxu3 %v5050_v6  ;;  %v6371_v10 = vld [vmem:[#allocation29_spill] sm:$0xff]  ;;  %v6380_v25 = vld [vmem:[#allocation40_spill] sm:$0xff]  ;;  %v6388_v27 = vld [vmem:[#allocation46_spill] sm:$0xff] }
 0x734   :  { %2098 = vmatpush.msra.mxu0 %v4981_v38  ;;  %2120 = vmatpush.msrb.mxu1 %v5005_v5  ;;  %v6368_v5 = vld [vmem:[#allocation26_spill] sm:$0xff]  ;;  %vm1635_vm8 = vcmp.eq.f32.partialorder %v1634_v56, 8.507059e+37  ;;  %v6396_v56 = vld [vmem:[#allocation21_spill] sm:$0xff] }
 0x735   :  { %1981 = vmatpush.msra.mxu2 %v5062_v41  ;;  %2001 = vmatpush.msrb.mxu3 %v5064_v61  ;;  %v6372_v41 = vld [vmem:[#allocation30_spill] sm:$0xff]  ;;  %v6373_v61 = vld [vmem:[#allocation31_spill] sm:$0xff] }
 0x736   :  { %2099 = vmatpush.msra.mxu0 %v4989_v37  ;;  %v1636_v37 = vand.u32 2147483648, %v5242_v19  ;;  %2121 = vmatpush.msrb.mxu1 %v5017_v8  ;;  %v6379_v19 = vld [vmem:[#allocation39_spill] sm:$0xff] }
 0x737   :  { %1982 = vmatpush.msra.mxu2 %v5075_v12  ;;  %2002 = vmatpush.msrb.mxu3 %v5077_v44  ;;  %v6374_v12 = vld [vmem:[#allocation32_spill] sm:$0xff]  ;;  %v6375_v44 = vld [vmem:[#allocation33_spill] sm:$0xff] }
 0x738   :  { %2100 = vmatpush.msra.mxu0 %v5003_v3  ;;  %v1633_v3 = vsel %vm1632_vm7, %v5283_v22, %v1629_v28  ;;  %v1637_v42 = vor.u32 1.1754944e-38, %v1636_v37  ;;  %2122 = vmatpush.msrb.mxu1 %v6369_v46  ;;  %v6381_v22 = vld [vmem:[#allocation36_spill] sm:$0xff] }
 0x739   :  { %1983 = vmatpush.msra.mxu2 %v5097_v26  ;;  %2003 = vmatpush.msrb.mxu3 %v5099_v21  ;;  %v6376_v26 = vld [vmem:[#allocation38_spill] sm:$0xff] }
 0x73a   :  { %2101 = vmatpush.msra.mxu0 %v5015_v4  ;;  %v6370_v4 = vld [vmem:[#allocation28_spill] sm:$0xff]  ;;  %v1638_v51 = vsel %vm1635_vm8, %v1637_v42, %v1633_v3  ;;  %2123 = vmatpush.msrb.mxu1 %v6371_v10  ;;  %v6377_v21 = vld [vmem:[#allocation34_spill] sm:$0xff] }
 0x73b   :  { %3697 = vmatmul.msk.f32.vlgmr.msrb.gmra.mxu2 %vm228_vm0, %v1781_v50  ;;  %3698 = vmatmul.msk.f32.vlgmr.msra.gmra.mxu3 %vm228_vm0, %v1781_v50  ;;  %v6398_v50 = vld [vmem:[#allocation48_spill] sm:$0xff] }
 0x73c   :  { %2102 = vmatpush.msra.mxu0 %v6368_v5  ;;  %2124 = vmatpush.msrb.mxu1 %v6373_v61  ;;  %v6397_v5 = vld [vmem:[#allocation23_spill] sm:$0xff] }
 0x73d   :  { %1984 = vmatpush.msra.mxu2 %v5118_v43  ;;  %2004 = vmatpush.msrb.mxu3 %v5120_v31  ;;  %v6382_v43 = vld [vmem:[#allocation37_spill] sm:$0xff]  ;;  %v6383_v31 = vld [vmem:[#allocation43_spill] sm:$0xff] }
 0x73e   :  { %2103 = vmatpush.msra.mxu0 %v6370_v4  ;;  %2125 = vmatpush.msrb.mxu1 %v6375_v44 }
 0x73f   :  { %1985 = vmatpush.msra.mxu2 %v5134_v17  ;;  %2005 = vmatpush.msrb.mxu3 %v6376_v26  ;;  %v6386_v17 = vld [vmem:[#allocation44_spill] sm:$0xff] }
 0x740   :  { %2104 = vmatpush.msra.mxu0 %v6372_v41  ;;  %2126 = vmatpush.msrb.mxu1 %v6378_v49 }
 0x741   :  { %1986 = vmatpush.msra.mxu2 %v6379_v19  ;;  %2006 = vmatpush.msrb.mxu3 %v6380_v25  ;;  %v6399_v25 = vld [vmem:[#allocation22_spill] sm:$0xff] }
 0x742   :  { %2105 = vmatpush.msra.mxu0 %v6374_v12  ;;  %2127 = vmatpush.msrb.mxu1 %v6382_v43 }
 0x743   :  { %1987 = vmatpush.msra.mxu2 %v6383_v31 }
 0x744   :  { %2106 = vmatpush.msra.mxu0 %v6377_v21  ;;  %2128 = vmatpush.msrb.mxu1 %v6385_v9  ;;  %v6400_v9 = vld [vmem:[#allocation24_spill] sm:$0xff] }
 0x745   :  { %2223 = vmatpush.msrb.mxu2 %v5246_v29  ;;  %v6393_v29 = vld [vmem:[#allocation53_spill] sm:$0xff] }
 0x746   :  { %2107 = vmatpush.msra.mxu0 %v6381_v22 }
 0x747   :  { %2224 = vmatpush.msrb.mxu2 %v5250_v55  ;;  %v3694_v55 = vmul.f32 -1.442695, %v5217_v45 }
 0x748   :  { %2108 = vmatpush.msra.mxu0 %v6384_v30 }
 0x749   :  { %2225 = vmatpush.msrb.mxu2 %v5259_v24  ;;  %v5416_v24 = vld [vmem:[#allocation8 + $0x8] sm:$0xff] }
 0x74a   :  { %2109 = vmatpush.msra.mxu0 %v6386_v17  ;;  %2007 = vmatpush.msrb.mxu3 %v5416_v24 }
 0x74b   :  { %2226 = vmatpush.msrb.mxu2 %v5269_v18 }
 0x74c   :  { %2110 = vmatpush.msra.mxu0 %v6388_v27  ;;  %2243 = vmatpush.msra.mxu3 %v5248_v23 }
 0x74d   :  { %2227 = vmatpush.msrb.mxu2 %v5279_v52 }
 0x74e   :  { %2111 = vmatpush.msra.mxu0 %v6390_v15  ;;  %2244 = vmatpush.msra.mxu3 %v5255_v57 }
 0x74f   :  { %2228 = vmatpush.msrb.mxu2 %v5289_v2 }
 0x750   :  { %2112 = vmatpush.msra.mxu0 %v6392_v35  ;;  %2245 = vmatpush.msra.mxu3 %v5261_v7 }
 0x751   :  { %2229 = vmatpush.msrb.mxu2 %v5300_v11  ;;  %v6394_v11 = vld [vmem:[#allocation54_spill] sm:$0xff] }
 0x752   :  { %2246 = vmatpush.msra.mxu3 %v5271_v53  ;;  %v1766_v57 = vmul.f32 %v5231_v33, %v6394_v11 }
 0x753   :  { %2230 = vmatpush.msrb.mxu2 %v5310_v62 }
 0x754   :  { %2247 = vmatpush.msra.mxu3 %v5281_v63 }
 0x756   :  { %2248 = vmatpush.msra.mxu3 %v5291_v58 }
 0x758   :  { %2249 = vmatpush.msra.mxu3 %v5302_v13 }
 0x75a   :  { %2250 = vmatpush.msra.mxu3 %v5312_v14 }
 0x78e   :  { %v1523_v36 = vpop.permute.xlu0 %1522 }
 0x78f   :  { %v5314_v54 = vadd.f32 %v1523_v36, %v1519_v40  ;;  %v1512_v36 = vand.u32 2147483647, %v5239_v48  ;;  %v6387_v40 = vld [vmem:[#allocation45_spill] sm:$0xff] }
 0x790   :  { %2129 = vmatpush.msrb.mxu1 %v6387_v40 }
 0x791   :  { %3898 = vtanh.f32 %v5314_v54  ;;  %vm1513_vm4 = vcmp.eq.f32.partialorder %v1512_v36, 8.507059e+37  ;;  %v6391_v36 = vld [vmem:[#allocation51_spill] sm:$0xff] }
 0x792   :  { %v1516_v38 = vsel %vm1513_vm4, %v1515_v34, %v1511_v32  ;;  %2130 = vmatpush.msrb.mxu1 %v6389_v16 }
 0x794   :  { %2131 = vmatpush.msrb.mxu1 %v6391_v36  ;;  %v1770_v23 = vpop.permute.xlu1 %1769 }
 0x795   :  { %v5429_v62 = vadd.f32 %v1770_v23, %v1766_v57 }
 0x796   :  { %v1645_v39 = vpop.permute.xlu0 %1644  ;;  %2132 = vmatpush.msrb.mxu1 %v6393_v29 }
 0x797   :  { %v3899_v59 = vpop.eup %3898  ;;  %v5348_v48 = vadd.f32 %v1645_v39, %v1641_v20 }
 0x798   :  { %v1527_v1 = vmul.f32 %v3899_v59, %v1516_v38 }
 0x799   :  { %3900 = vtanh.f32 %v5348_v48 }
 0x79a   :  { %1801 = vrot.lane.b32.xlu2 %v1527_v1, %s4301_s3  ;;  %3902 = vpow2.f32 %v3694_v55  ;;  %v6401_v55 = vld [vmem:[#allocation50_spill] sm:$0xff] }
 0x79f   :  { %v3901_v8 = vpop.eup %3900 }
 0x7a0   :  { %v5375_v6 = vmul.f32 %v3901_v8, %v1638_v51  ;;  %v3903_v18 = vpop.eup %3902 }
 0x7a1   :  { %v1749_v32 = vadd.f32 1.0, %v3903_v18 }
 0x7a2   :  { %2061 = vrot.lane.b32.xlu2 %v5375_v6, %s4301_s3 }
 0x7a3   :  { %3904 = vrcp.f32 %v1749_v32  ;;  %v1761_v58 = vand.u32 2147483648, %v1749_v32  ;;  %vm1755_vm11 = vweird.f32 %v1749_v32  ;;  %v1759_v14 = vand.u32 2147483647, %v1749_v32 }
 0x7a4   :  { %3906 = vtanh.f32 %v5429_v62 }
 0x7a5   :  { %v1762_v20 = vor.u32 1.1754944e-38, %v1761_v58  ;;  %vm1760_vm13 = vcmp.eq.f32.partialorder %v1759_v14, 8.507059e+37 }
 0x7a9   :  { %v3905_v45 = vpop.eup %3904 }
 0x7aa   :  { %v1751_v52 = vmul.f32 %v3905_v45, %v1749_v32  ;;  %vm1756_vm10 = vweird.f32 %v3905_v45  ;;  %v3907_v0 = vpop.eup %3906 }
 0x7ab   :  { %vm1757_vm12 = vmor %vm1755_vm11, %vm1756_vm10 }
 0x7ac   :  { %v1752_v2 = vsub.f32 1.0, %v1751_v52 }
 0x7ae   :  { %v1753_v7 = vmul.f32 %v3905_v45, %v1752_v2 }
 0x7b0   :  { %v1754_v53 = vadd.f32 %v3905_v45, %v1753_v7 }
 0x7b2   :  { %v1758_v33 = vsel %vm1757_vm12, %v3905_v45, %v1754_v53 }
 0x7b3   :  { %v1763_v34 = vsel %vm1760_vm13, %v1762_v20, %v1758_v33 }
 0x7b4   :  { %v5438_v39 = vmul.f32 %v3907_v0, %v1763_v34 }
 0x7b6   :  { %6395 = vst [vmem:[#allocation26_spill] sm:$0xff] %v5438_v39 }
 0x7be   :  { %v1865_v1 = vpop.f32.mrf.mxu2 }
 0x7f4   :  { %v1802_v63 = vpop.permute.xlu2 %1801 }
 0x7f5   :  { %3695 = vmatmul.msk.f32.vlgmr.msrb.gmra.mxu0 %vm157_vm9, %v1802_v63  ;;  %3696 = vmatmul.msk.f32.vlgmr.msra.gmra.mxu1 %vm157_vm9, %v1802_v63  ;;  %v1939_v13 = vsel %vm157_vm9, %v1802_v63, %v5375_v6  ;;  %v1885_v6 = vpop.f32.mrf.mxu3 }
 0x7f6   :  { %1988 = vmatmul.f32.vlgmr.msra.gmra.mxu2 %v1939_v13  ;;  %2008 = vmatmul.f32.vlgmr.msrb.gmra.mxu3 %v1939_v13 }
 0x7f7   :  { %2273 = vmatpush.msrb.mxu0 %v5263_v47  ;;  %2293 = vmatpush.msra.mxu1 %v5267_v60 }
 0x7fc   :  { %v2062_v59 = vpop.permute.xlu2 %2061 }
 0x7fd   :  { %v2064_v38 = vsel %vm157_vm9, %v2062_v59, %v5438_v39  ;;  %v5616_v39 = vld [vmem:[#allocation11 + $0x78] sm:$0xff] }
 0x7fe   :  { %2113 = vmatmul.f32.vlgmr.msra.gmra.mxu0 %v2064_v38  ;;  %2133 = vmatmul.f32.vlgmr.msrb.gmra.mxu1 %v2064_v38  ;;  %6411 = vst [vmem:[#allocation38_spill] sm:$0xff] %v5616_v39 }
 0x872   :  { %v1822_v28 = vpop.f32.mrf.mxu0  ;;  %v1842_v61 = vpop.f32.mrf.mxu1 }
 0x873   :  { %v1866_v37 = vadd.f32 %v1865_v1, %v1822_v28  ;;  %v1886_v44 = vadd.f32 %v1885_v6, %v1842_v61 }
 0x875   :  { %v1888_v3 = vadd.f32 %v1866_v37, %v6396_v56  ;;  %v1889_v22 = vadd.f32 %v1886_v44, %v6399_v25  ;;  %v5472_v44 = vld [vmem:[#allocation8 + $0xf8] sm:$0xff] }
 0x876   :  { %2402 = vmatpush.msrb.mxu1 %v5472_v44 }
 0x877   :  { %v3699_v47 = vmul.f32 -1.442695, %v1888_v3 }
 0x879   :  { %3908 = vpow2.f32 %v3699_v47  ;;  %v1989_v60 = vpop.f32.mrf.mxu2  ;;  %v2009_v43 = vpop.f32.mrf.mxu3 }
 0x87a   :  { %v1990_v42 = vadd.f32 %v1989_v60, %v6397_v5  ;;  %v2010_v17 = vadd.f32 %v2009_v43, %v6400_v9  ;;  %v5489_v43 = vld [vmem:[#allocation11 + $0xf0] sm:$0xff] }
 0x87b   :  { %v2114_v46 = vpop.f32.mrf.mxu0  ;;  %v2134_v40 = vpop.f32.mrf.mxu1  ;;  %2507 = vmatpush.msra.mxu2 %v5489_v43 }
 0x87c   :  { %v3701_v4 = vmul.f32 -1.442695, %v1990_v42  ;;  %v2115_v8 = vadd.f32 %v2114_v46, %v6398_v50  ;;  %v5448_v18 = vadd.f32 %v2134_v40, %v6401_v55  ;;  %v5499_v40 = vld [vmem:[#allocation11 + $0xe0] sm:$0xff] }
 0x87d   :  { %2508 = vmatpush.msra.mxu2 %v5499_v40 }
 0x87e   :  { %3910 = vpow2.f32 %v3701_v4  ;;  %v3703_v51 = vmul.f32 -1.442695, %v2115_v8  ;;  %v3700_v4 = vmul.f32 -1.442695, %v1889_v22  ;;  %v3702_v8 = vmul.f32 -1.442695, %v2010_v17 }
 0x87f   :  { %v3909_v10 = vpop.eup %3908 }
 0x880   :  { %v1893_v41 = vadd.f32 1.0, %v3909_v10  ;;  %3912 = vpow2.f32 %v3703_v51 }
 0x882   :  { %3914 = vrcp.f32 %v1893_v41  ;;  %v1905_v27 = vand.u32 2147483648, %v1893_v41  ;;  %v1903_v36 = vand.u32 2147483647, %v1893_v41  ;;  %vm1899_vm15 = vweird.f32 %v1893_v41 }
 0x884   :  { %v3911_v12 = vpop.eup %3910  ;;  %v1906_v52 = vor.u32 1.1754944e-38, %v1905_v27  ;;  %vm1904_vm2 = vcmp.eq.f32.partialorder %v1903_v36, 8.507059e+37  ;;  %v5503_v27 = vld [vmem:[#allocation8 + $0xb0] sm:$0xff]  ;;  %v5507_v36 = vld [vmem:[#allocation8 + $0xb8] sm:$0xff] }
 0x885   :  { %v2015_v26 = vadd.f32 1.0, %v3911_v12  ;;  %v5470_v12 = vld [vmem:[#allocation8 + $0xf0] sm:$0xff] }
 0x886   :  { %v3913_v21 = vpop.eup %3912  ;;  %2382 = vmatpush.msra.mxu0 %v5470_v12 }
 0x887   :  { %3916 = vrcp.f32 %v2015_v26  ;;  %v2140_v49 = vadd.f32 1.0, %v3913_v21  ;;  %v2025_v11 = vand.u32 2147483647, %v2015_v26  ;;  %v2027_v57 = vand.u32 2147483648, %v2015_v26  ;;  %v5479_v21 = vld [vmem:[#allocation8 + $0xe8] sm:$0xff] }
 0x888   :  { %v3915_v19 = vpop.eup %3914  ;;  %vm2021_vm4 = vweird.f32 %v2015_v26  ;;  %2403 = vmatpush.msrb.mxu1 %v5479_v21 }
 0x889   :  { %3918 = vrcp.f32 %v2140_v49  ;;  %v1895_v31 = vmul.f32 %v3915_v19, %v1893_v41  ;;  %vm1900_vm14 = vweird.f32 %v3915_v19  ;;  %v2152_v14 = vand.u32 2147483648, %v2140_v49 }
 0x88a   :  { %3920 = vtanh.f32 %v1889_v22  ;;  %vm1901_vm1 = vmor %vm1899_vm15, %vm1900_vm14  ;;  %v2150_v20 = vand.u32 2147483647, %v2140_v49  ;;  %v2028_v34 = vor.u32 1.1754944e-38, %v2027_v57  ;;  %vm2026_vm7 = vcmp.eq.f32.partialorder %v2025_v11, 8.507059e+37  ;;  %v5485_v22 = vld [vmem:[#allocation8 + $0xd8] sm:$0xff] }
 0x88b   :  { %v1896_v30 = vsub.f32 1.0, %v1895_v31  ;;  %3922 = vtanh.f32 %v2010_v17  ;;  %vm2146_vm8 = vweird.f32 %v2140_v49  ;;  %v2153_v37 = vor.u32 1.1754944e-38, %v2152_v14  ;;  %v5491_v31 = vld [vmem:[#allocation11 + $0xf8] sm:$0xff]  ;;  %v5495_v17 = vld [vmem:[#allocation8 + $0xc8] sm:$0xff]  ;;  %2404 = vmatpush.msrb.mxu1 %v5485_v22  ;;  %v5531_v11 = vld [vmem:[#allocation11 + $0xb0] sm:$0xff] }
 0x88c   :  { %3924 = vtanh.f32 %v5448_v18  ;;  %vm2151_vm11 = vcmp.eq.f32.partialorder %v2150_v20, 8.507059e+37  ;;  %2527 = vmatpush.msrb.mxu3 %v5491_v31  ;;  %v5533_v57 = vld [vmem:[#allocation11 + $0xb8] sm:$0xff] }
 0x88d   :  { %v3917_v16 = vpop.eup %3916  ;;  %v1897_v15 = vmul.f32 %v3915_v19, %v1896_v30  ;;  %3926 = vpow2.f32 %v3700_v4  ;;  %v5493_v30 = vld [vmem:[#allocation8 + $0xc0] sm:$0xff]  ;;  %2405 = vmatpush.msrb.mxu1 %v5495_v17 }
 0x88e   :  { %v2017_v35 = vmul.f32 %v3917_v16, %v2015_v26  ;;  %vm2022_vm3 = vweird.f32 %v3917_v16  ;;  %3928 = vpow2.f32 %v3702_v8  ;;  %v5474_v26 = vld [vmem:[#allocation8 + $0xe0] sm:$0xff] }
 0x88f   :  { %v3919_v29 = vpop.eup %3918  ;;  %v1898_v32 = vadd.f32 %v3915_v19, %v1897_v15  ;;  %vm2023_vm6 = vmor %vm2021_vm4, %vm2022_vm3  ;;  %2383 = vmatpush.msra.mxu0 %v5474_v26  ;;  %2406 = vmatpush.msrb.mxu1 %v5507_v36  ;;  %v5580_v8 = vld [vmem:[#allocation11 + $0x80] sm:$0xff] }
 0x890   :  { %v2142_v45 = vmul.f32 %v3919_v29, %v2140_v49  ;;  %v2018_v2 = vsub.f32 1.0, %v2017_v35  ;;  %v3921_v7 = vpop.eup %3920  ;;  %vm2147_vm5 = vweird.f32 %v3919_v29  ;;  %v5511_v35 = vld [vmem:[#allocation11 + $0xd0] sm:$0xff]  ;;  %6406 = vst [vmem:[#allocation31_spill] sm:$0xff] %v5580_v8 }
 0x891   :  { %v1902_v23 = vsel %vm1901_vm1, %v3915_v19, %v1898_v32  ;;  %v3923_v59 = vpop.eup %3922  ;;  %vm2148_vm10 = vmor %vm2146_vm8, %vm2147_vm5  ;;  %v5483_v19 = vld [vmem:[#allocation8 + $0xd0] sm:$0xff]  ;;  %2509 = vmatpush.msra.mxu2 %v5511_v35 }
 0x892   :  { %v5450_v53 = vsel %vm1904_vm2, %v1906_v52, %v1902_v23  ;;  %v2019_v63 = vmul.f32 %v3917_v16, %v2018_v2  ;;  %v2143_v58 = vsub.f32 1.0, %v2142_v45  ;;  %v3925_v60 = vpop.eup %3924  ;;  %2384 = vmatpush.msra.mxu0 %v5483_v19  ;;  %v5519_v45 = vld [vmem:[#allocation11 + $0xc0] sm:$0xff]  ;;  %v5521_v52 = vld [vmem:[#allocation11 + $0xc8] sm:$0xff] }
 0x893   :  { %v1930_v13 = vmul.f32 %v3921_v7, %v5450_v53  ;;  %v3927_v51 = vpop.eup %3926  ;;  %v5523_v2 = vld [vmem:[#allocation8 + $0xa0] sm:$0xff]  ;;  %v5525_v23 = vld [vmem:[#allocation8 + $0xa8] sm:$0xff]  ;;  %2510 = vmatpush.msra.mxu2 %v5519_v45  ;;  %v1929_v14 = vmul.f32 %v5450_v53, %v5314_v54  ;;  %v5562_v54 = vld [vmem:[#allocation11 + $0x90] sm:$0xff] }
 0x894   :  { %v2020_v33 = vadd.f32 %v3917_v16, %v2019_v63  ;;  %v2144_v0 = vmul.f32 %v3919_v29, %v2143_v58  ;;  %v5463_v10 = vadd.f32 1.0, %v3927_v51  ;;  %v3929_v6 = vpop.eup %3928  ;;  %2385 = vmatpush.msra.mxu0 %v5493_v30  ;;  %v5538_v58 = vld [vmem:[#allocation8 + $0x90] sm:$0xff]  ;;  %2407 = vmatpush.msrb.mxu1 %v5525_v23  ;;  %6404 = vst [vmem:[#allocation29_spill] sm:$0xff] %v5562_v54  ;;  %v5564_v53 = vld [vmem:[#allocation11 + $0x98] sm:$0xff] }
 0x895   :  { %1932 = vrot.lane.b32.xlu0 %v1930_v13, %s4301_s3  ;;  %v5466_v41 = vadd.f32 1.0, %v3929_v6  ;;  %v5540_v13 = vld [vmem:[#allocation8 + $0x98] sm:$0xff]  ;;  %2511 = vmatpush.msra.mxu2 %v5531_v11  ;;  %6405 = vst [vmem:[#allocation30_spill] sm:$0xff] %v5564_v53  ;;  %v5582_v51 = vld [vmem:[#allocation11 + $0x88] sm:$0xff] }
 0x896   :  { %v2024_v38 = vsel %vm2023_vm6, %v3917_v16, %v2020_v33  ;;  %v2145_v1 = vadd.f32 %v3919_v29, %v2144_v0  ;;  %3930 = vrcp.f32 %v5463_v10  ;;  %v5505_v16 = vld [vmem:[#allocation11 + $0xe8] sm:$0xff]  ;;  %2386 = vmatpush.msra.mxu0 %v5503_v27  ;;  %v5548_v33 = vld [vmem:[#allocation11 + $0xa0] sm:$0xff]  ;;  %2408 = vmatpush.msrb.mxu1 %v5540_v13  ;;  %v1924_v4 = vand.u32 2147483648, %v5463_v10  ;;  %6407 = vst [vmem:[#allocation32_spill] sm:$0xff] %v5582_v51 }
 0x897   :  { %v5455_v28 = vsel %vm2026_vm7, %v2028_v34, %v2024_v38  ;;  %3932 = vrcp.f32 %v5466_v41  ;;  %2528 = vmatpush.msrb.mxu3 %v5505_v16  ;;  %6402 = vst [vmem:[#allocation27_spill] sm:$0xff] %v5548_v33  ;;  %v5550_v0 = vld [vmem:[#allocation11 + $0xa8] sm:$0xff]  ;;  %v5552_v34 = vld [vmem:[#allocation8 + $0x80] sm:$0xff]  ;;  %2512 = vmatpush.msra.mxu2 %v5548_v33  ;;  %vm1918_vm13 = vweird.f32 %v5463_v10  ;;  %v1922_v6 = vand.u32 2147483647, %v5463_v10 }
 0x898   :  { %v2052_v3 = vmul.f32 %v3923_v59, %v5455_v28  ;;  %v2149_v47 = vsel %vm2148_vm10, %v3919_v29, %v2145_v1  ;;  %v5513_v29 = vld [vmem:[#allocation11 + $0xd8] sm:$0xff]  ;;  %2387 = vmatpush.msra.mxu0 %v5523_v2  ;;  %6403 = vst [vmem:[#allocation28_spill] sm:$0xff] %v5550_v0  ;;  %v5554_v59 = vld [vmem:[#allocation8 + $0x88] sm:$0xff]  ;;  %vm2040_vm2 = vweird.f32 %v5466_v41 }
 0x899   :  { %v5458_v42 = vsel %vm2151_vm11, %v2153_v37, %v2149_v47  ;;  %2529 = vmatpush.msrb.mxu3 %v5513_v29  ;;  %v5568_v47 = vld [vmem:[#allocation8 + $0x70] sm:$0xff]  ;;  %2409 = vmatpush.msrb.mxu1 %v5554_v59  ;;  %vm1923_vm15 = vcmp.eq.f32.partialorder %v1922_v6, 8.507059e+37 }
 0x89a   :  { %2054 = vrot.lane.b32.xlu2 %v2052_v3, %s4301_s3  ;;  %v2177_v46 = vmul.f32 %v3925_v60, %v5458_v42  ;;  %2388 = vmatpush.msra.mxu0 %v5538_v58  ;;  %v5570_v60 = vld [vmem:[#allocation8 + $0x78] sm:$0xff] }
 0x89b   :  { %2530 = vmatpush.msrb.mxu3 %v5521_v52  ;;  %2513 = vmatpush.msra.mxu2 %v5562_v54 }
 0x89c   :  { %v5468_v61 = vpop.eup %3930  ;;  %2389 = vmatpush.msra.mxu0 %v5552_v34  ;;  %2410 = vmatpush.msrb.mxu1 %v5570_v60 }
 0x89d   :  { %2179 = vrot.lane.b32.xlu0 %v2177_v46, %s4301_s3  ;;  %v1914_v49 = vmul.f32 %v5468_v61, %v5463_v10  ;;  %v5515_v32 = vpop.eup %3932  ;;  %2531 = vmatpush.msrb.mxu3 %v5533_v57  ;;  %vm1919_vm12 = vweird.f32 %v5468_v61  ;;  %v2051_v46 = vmul.f32 %v5455_v28, %v5348_v48  ;;  %v2191_v10 = vld [vmem:[#allocation3 + $0xc] sm:$0x3]  ;;  %v5627_v28 = vld [vmem:[#allocation11 + $0x60] sm:$0xff] }
 0x89e   :  { %v2036_v63 = vmul.f32 %v5515_v32, %v5466_v41  ;;  %vm5596_vm14 = vmor %vm1918_vm13, %vm1919_vm12  ;;  %2390 = vmatpush.msra.mxu0 %v5568_v47  ;;  %2514 = vmatpush.msra.mxu2 %v5580_v8  ;;  %6412 = vst [vmem:[#allocation34_spill] sm:$0xff] %v5627_v28  ;;  %vm2041_vm1 = vweird.f32 %v5515_v32  ;;  %v5631_v8 = vld [vmem:[#allocation8 + $0x30] sm:$0xff] }
 0x89f   :  { %v1915_v15 = vsub.f32 1.0, %v1914_v49  ;;  %2532 = vmatpush.msrb.mxu3 %v5550_v0  ;;  %v5586_v49 = vld [vmem:[#allocation8 + $0x60] sm:$0xff]  ;;  %3707 = vmatmul.msk.f32.vlgmr.msrb.gmra.mxu0 %vm228_vm0, %v2191_v10  ;;  %vm5654_vm3 = vmor %vm2040_vm2, %vm2041_vm1 }
 0x8a0   :  { %v2037_v3 = vsub.f32 1.0, %v2036_v63  ;;  %2391 = vmatpush.msra.mxu0 %v5586_v49  ;;  %3708 = vmatmul.msk.f32.vlgmr.msra.gmra.mxu1 %vm228_vm0, %v2191_v10  ;;  %v2046_v10 = vand.u32 2147483648, %v5466_v41 }
 0x8a1   :  { %v1916_v7 = vmul.f32 %v5468_v61, %v1915_v15  ;;  %v5588_v15 = vld [vmem:[#allocation8 + $0x68] sm:$0xff]  ;;  %2533 = vmatpush.msrb.mxu3 %v5564_v53  ;;  %v5633_v53 = vld [vmem:[#allocation8 + $0x38] sm:$0xff] }
 0x8a2   :  { %v2038_v63 = vmul.f32 %v5515_v32, %v2037_v3  ;;  %2411 = vmatpush.msrb.mxu1 %v5588_v15  ;;  %v2047_v0 = vor.u32 1.1754944e-38, %v2046_v10  ;;  %v5681_v10 = vld [vmem:[#allocation11 + $0x40] sm:$0xff] }
 0x8a3   :  { %v1917_v37 = vadd.f32 %v5468_v61, %v1916_v7  ;;  %2534 = vmatpush.msrb.mxu3 %v5582_v51  ;;  %6421 = vst [vmem:[#allocation41_spill] sm:$0xff] %v5681_v10 }
 0x8a4   :  { %v2039_v6 = vadd.f32 %v5515_v32, %v2038_v63  ;;  %v2044_v63 = vand.u32 2147483647, %v5466_v41 }
 0x8a5   :  { %v1921_v7 = vsel %vm5596_vm14, %v5468_v61, %v1917_v37  ;;  %v5618_v61 = vld [vmem:[#allocation8 + $0x40] sm:$0xff]  ;;  %v5620_v37 = vld [vmem:[#allocation8 + $0x48] sm:$0xff]  ;;  %2535 = vmatpush.msrb.mxu3 %v5616_v39 }
 0x8a6   :  { %v2043_v41 = vsel %vm5654_vm3, %v5515_v32, %v2039_v6  ;;  %vm2045_vm4 = vcmp.eq.f32.partialorder %v2044_v63, 8.507059e+37  ;;  %v3704_v32 = vmul.f32 -1.442695, %v5448_v18  ;;  %v5679_v6 = vld [vmem:[#allocation8] sm:$0xff]  ;;  %v5683_v63 = vld [vmem:[#allocation11 + $0x48] sm:$0xff] }
 0x8a7   :  { %v2048_v33 = vsel %vm2045_vm4, %v2047_v0, %v2043_v41  ;;  %6420 = vst [vmem:[#allocation43_spill] sm:$0xff] %v5679_v6  ;;  %v5687_v0 = vld [vmem:[#allocation11 + $0x30] sm:$0xff]  ;;  %v5695_v18 = vld [vmem:[#allocation11 + $0x28] sm:$0xff] }
 0x8a8   :  { %6422 = vst [vmem:[#allocation42_spill] sm:$0xff] %v5683_v63  ;;  %v5698_v41 = vld [vmem:[#allocation11 + $0x10] sm:$0xff] }
 0x8a9   :  { %6423 = vst [vmem:[#allocation44_spill] sm:$0xff] %v5687_v0 }
 0x8aa   :  { %6426 = vst [vmem:[#allocation47_spill] sm:$0xff] %v5695_v18 }
 0x8ab   :  { %6427 = vst [vmem:[#allocation49_spill] sm:$0xff] %v5698_v41 }
 0x8f4   :  { %v2055_v1 = vpop.permute.xlu2 %2054 }
 0x8f5   :  { %v5592_v48 = vadd.f32 %v2055_v1, %v2051_v46  ;;  %v1925_v1 = vor.u32 1.1754944e-38, %v1924_v4  ;;  %v5614_v46 = vld [vmem:[#allocation11 + $0x70] sm:$0xff] }
 0x8f6   :  { %6410 = vst [vmem:[#allocation33_spill] sm:$0xff] %v5614_v46  ;;  %2515 = vmatpush.msra.mxu2 %v5614_v46  ;;  %v5666_v46 = vld [vmem:[#allocation8 + $0x10] sm:$0xff] }
 0x8f7   :  { %v1926_v4 = vsel %vm1923_vm15, %v1925_v1, %v1921_v7  ;;  %v5640_v7 = vld [vmem:[#allocation11 + $0x68] sm:$0xff]  ;;  %v5642_v1 = vld [vmem:[#allocation11 + $0x50] sm:$0xff]  ;;  %6418 = vst [vmem:[#allocation36_spill] sm:$0xff] %v5666_v46 }
 0x8f8   :  { %6413 = vst [vmem:[#allocation35_spill] sm:$0xff] %v5640_v7  ;;  %2516 = vmatpush.msra.mxu2 %v5627_v28  ;;  %2536 = vmatpush.msrb.mxu3 %v5640_v7  ;;  %v5668_v28 = vld [vmem:[#allocation8 + $0x18] sm:$0xff] }
 0x8f9   :  { %6414 = vst [vmem:[#allocation39_spill] sm:$0xff] %v5642_v1 }
 0x8fa   :  { %6419 = vst [vmem:[#allocation37_spill] sm:$0xff] %v5668_v28  ;;  %2517 = vmatpush.msra.mxu2 %v5642_v1 }
 0x8fc   :  { %2518 = vmatpush.msra.mxu2 %v5681_v10  ;;  %v5701_v10 = vld [vmem:[#allocation11 + $0x18] sm:$0xff] }
 0x8fd   :  { %6428 = vst [vmem:[#allocation51_spill] sm:$0xff] %v5701_v10 }
 0x8fe   :  { %2519 = vmatpush.msra.mxu2 %v5687_v0  ;;  %v5708_v0 = vld [vmem:[#allocation11 + $0x8] sm:$0xff] }
 0x8ff   :  { %6430 = vst [vmem:[#allocation53_spill] sm:$0xff] %v5708_v0 }
 0x907   :  { %v1933_v20 = vpop.permute.xlu0 %1932 }
 0x908   :  { %v5558_v38 = vadd.f32 %v1933_v20, %v1929_v14  ;;  %v5606_v14 = vld [vmem:[#allocation8 + $0x50] sm:$0xff]  ;;  %v5608_v20 = vld [vmem:[#allocation8 + $0x58] sm:$0xff] }
 0x909   :  { %2392 = vmatpush.msra.mxu0 %v5606_v14  ;;  %2412 = vmatpush.msrb.mxu1 %v5608_v20 }
 0x90a   :  { %3934 = vtanh.f32 %v5558_v38 }
 0x90b   :  { %3936 = vtanh.f32 %v5592_v48  ;;  %2393 = vmatpush.msra.mxu0 %v5618_v61  ;;  %2413 = vmatpush.msrb.mxu1 %v5620_v37 }
 0x90c   :  { %3938 = vpow2.f32 %v3704_v32 }
 0x90d   :  { %2394 = vmatpush.msra.mxu0 %v5631_v8  ;;  %2414 = vmatpush.msrb.mxu1 %v5633_v53 }
 0x910   :  { %v3935_v3 = vpop.eup %3934 }
 0x911   :  { %v1937_v51 = vmul.f32 %v3935_v3, %v1926_v4  ;;  %v5647_v3 = vld [vmem:[#allocation8 + $0x20] sm:$0xff]  ;;  %v5649_v4 = vld [vmem:[#allocation8 + $0x28] sm:$0xff]  ;;  %v3937_v54 = vpop.eup %3936 }
 0x912   :  { %2395 = vmatpush.msra.mxu0 %v5647_v3  ;;  %2415 = vmatpush.msrb.mxu1 %v5649_v4  ;;  %v2059_v39 = vmul.f32 %v3937_v54, %v2048_v33  ;;  %v5689_v33 = vld [vmem:[#allocation11 + $0x38] sm:$0xff]  ;;  %v5692_v54 = vld [vmem:[#allocation11 + $0x20] sm:$0xff] }
 0x913   :  { %2211 = vrot.lane.b32.xlu1 %v1937_v51, %s4301_s3  ;;  %v5660_v51 = vld [vmem:[#allocation11 + $0x58] sm:$0xff]  ;;  %6424 = vst [vmem:[#allocation45_spill] sm:$0xff] %v5689_v33  ;;  %2520 = vmatpush.msra.mxu2 %v5692_v54 }
 0x914   :  { %6417 = vst [vmem:[#allocation40_spill] sm:$0xff] %v5660_v51  ;;  %2537 = vmatpush.msrb.mxu3 %v5660_v51  ;;  %2396 = vmatpush.msra.mxu0 %v5666_v46  ;;  %v2180_v51 = vpop.permute.xlu0 %2179 }
 0x915   :  { %2416 = vmatpush.msrb.mxu1 %v5668_v28  ;;  %6425 = vst [vmem:[#allocation46_spill] sm:$0xff] %v5692_v54  ;;  %2521 = vmatpush.msra.mxu2 %v5698_v41 }
 0x916   :  { %2397 = vmatpush.msra.mxu0 %v5679_v6  ;;  %2538 = vmatpush.msrb.mxu3 %v5683_v63  ;;  %v5706_v63 = vld [vmem:[#allocation11] sm:$0xff] }
 0x917   :  { %2417 = vmatpush.msrb.mxu1 %v5416_v24  ;;  %v3939_v24 = vpop.eup %3938  ;;  %6429 = vst [vmem:[#allocation52_spill] sm:$0xff] %v5706_v63  ;;  %2522 = vmatpush.msra.mxu2 %v5706_v63 }
 0x918   :  { %2539 = vmatpush.msrb.mxu3 %v5689_v33  ;;  %v2159_v32 = vadd.f32 1.0, %v3939_v24 }
 0x91a   :  { %2540 = vmatpush.msrb.mxu3 %v5695_v18  ;;  %3940 = vrcp.f32 %v2159_v32  ;;  %v2176_v18 = vmul.f32 %v5458_v42, %v5429_v62  ;;  %v2171_v6 = vand.u32 2147483648, %v2159_v32  ;;  %vm2165_vm6 = vweird.f32 %v2159_v32 }
 0x91b   :  { %2471 = vrot.lane.b32.xlu1 %v2059_v39, %s4301_s3 }
 0x91c   :  { %2541 = vmatpush.msrb.mxu3 %v5701_v10  ;;  %v5714_v1 = vadd.f32 %v2180_v51, %v2176_v18  ;;  %v2172_v51 = vor.u32 1.1754944e-38, %v2171_v6  ;;  %v2275_v63 = vpop.f32.mrf.mxu0 }
 0x91e   :  { %2542 = vmatpush.msrb.mxu3 %v5708_v0  ;;  %6431 = vst [vmem:[#allocation54_spill] sm:$0xff] %v5714_v1  ;;  %3942 = vtanh.f32 %v5714_v1 }
 0x920   :  { %v3941_v24 = vpop.eup %3940 }
 0x921   :  { %v2161_v33 = vmul.f32 %v3941_v24, %v2159_v32  ;;  %vm2166_vm5 = vweird.f32 %v3941_v24 }
 0x922   :  { %vm2167_vm7 = vmor %vm2165_vm6, %vm2166_vm5 }
 0x923   :  { %v2162_v54 = vsub.f32 1.0, %v2161_v33  ;;  %v2169_v33 = vand.u32 2147483647, %v2159_v32 }
 0x924   :  { %v3943_v42 = vpop.eup %3942 }
 0x925   :  { %v2163_v41 = vmul.f32 %v3941_v24, %v2162_v54  ;;  %vm2170_vm8 = vcmp.eq.f32.partialorder %v2169_v33, 8.507059e+37 }
 0x927   :  { %v2164_v10 = vadd.f32 %v3941_v24, %v2163_v41 }
 0x929   :  { %v2168_v62 = vsel %vm2167_vm7, %v3941_v24, %v2164_v10  ;;  %v2295_v24 = vpop.f32.mrf.mxu1 }
 0x92a   :  { %v2173_v54 = vsel %vm2170_vm8, %v2172_v51, %v2168_v62 }
 0x92b   :  { %v5720_v18 = vmul.f32 %v3943_v42, %v2173_v54 }
 0x92d   :  { %6432 = vst [vmem:[#allocation50_spill] sm:$0xff] %v5720_v18 }
 0x985   :  { %v2212_v7 = vpop.permute.xlu1 %2211 }
 0x986   :  { %3705 = vmatmul.msk.f32.vlgmr.msrb.gmra.mxu2 %vm157_vm9, %v2212_v7  ;;  %3706 = vmatmul.msk.f32.vlgmr.msra.gmra.mxu3 %vm157_vm9, %v2212_v7  ;;  %v2349_v0 = vsel %vm157_vm9, %v2212_v7, %v2059_v39 }
 0x987   :  { %2398 = vmatmul.f32.vlgmr.msra.gmra.mxu0 %v2349_v0  ;;  %2418 = vmatmul.f32.vlgmr.msrb.gmra.mxu1 %v2349_v0 }
 0x98d   :  { %v2472_v41 = vpop.permute.xlu1 %2471 }
 0x98e   :  { %v2474_v1 = vsel %vm157_vm9, %v2472_v41, %v5720_v18 }
 0x98f   :  { %2523 = vmatmul.f32.vlgmr.msra.gmra.mxu2 %v2474_v1  ;;  %2543 = vmatmul.f32.vlgmr.msrb.gmra.mxu3 %v2474_v1 }
 0xa04   :  { %v2399_v7 = vpop.f32.mrf.mxu0  ;;  %v2419_v1 = vpop.f32.mrf.mxu1 }
 0xa05   :  { %v2400_v39 = vadd.f32 %v2399_v7, %v6397_v5 }
 0xa07   :  { %v3711_v32 = vmul.f32 -1.442695, %v2400_v39  ;;  %v5728_v39 = vadd.f32 %v2419_v1, %v6400_v9 }
 0xa09   :  { %3944 = vpow2.f32 %v3711_v32  ;;  %v2232_v0 = vpop.f32.mrf.mxu2 }
 0xa0a   :  { %v2276_v10 = vadd.f32 %v2275_v63, %v2232_v0  ;;  %v2252_v63 = vpop.f32.mrf.mxu3 }
 0xa0b   :  { %v2296_v0 = vadd.f32 %v2295_v24, %v2252_v63 }
 0xa0c   :  { %v2298_v6 = vadd.f32 %v2276_v10, %v6396_v56 }
 0xa0e   :  { %v3709_v33 = vmul.f32 -1.442695, %v2298_v6 }
 0xa0f   :  { %v3945_v62 = vpop.eup %3944 }
 0xa10   :  { %v2425_v42 = vadd.f32 1.0, %v3945_v62  ;;  %3946 = vpow2.f32 %v3709_v33 }
 0xa12   :  { %3948 = vrcp.f32 %v2425_v42  ;;  %v2524_v51 = vpop.f32.mrf.mxu2  ;;  %v2437_v6 = vand.u32 2147483648, %v2425_v42  ;;  %vm2431_vm11 = vweird.f32 %v2425_v42 }
 0xa13   :  { %v2525_v54 = vadd.f32 %v2524_v51, %v6398_v50  ;;  %v2435_v51 = vand.u32 2147483647, %v2425_v42 }
 0xa14   :  { %v2438_v1 = vor.u32 1.1754944e-38, %v2437_v6 }
 0xa15   :  { %v3713_v41 = vmul.f32 -1.442695, %v2525_v54  ;;  %vm2436_vm13 = vcmp.eq.f32.partialorder %v2435_v51, 8.507059e+37 }
 0xa16   :  { %v3947_v18 = vpop.eup %3946 }
 0xa17   :  { %v2303_v28 = vadd.f32 1.0, %v3947_v18  ;;  %3950 = vpow2.f32 %v3713_v41  ;;  %v2299_v18 = vadd.f32 %v2296_v0, %v6399_v25 }
 0xa18   :  { %v3949_v7 = vpop.eup %3948 }
 0xa19   :  { %v2427_v32 = vmul.f32 %v3949_v7, %v2425_v42  ;;  %3952 = vrcp.f32 %v2303_v28  ;;  %vm2432_vm10 = vweird.f32 %v3949_v7  ;;  %v2313_v0 = vand.u32 2147483647, %v2303_v28 }
 0xa1a   :  { %3954 = vtanh.f32 %v5728_v39  ;;  %vm2433_vm12 = vmor %vm2431_vm11, %vm2432_vm10  ;;  %vm2309_vm15 = vweird.f32 %v2303_v28 }
 0xa1b   :  { %v2428_v10 = vsub.f32 1.0, %v2427_v32  ;;  %vm2314_vm2 = vcmp.eq.f32.partialorder %v2313_v0, 8.507059e+37 }
 0xa1d   :  { %v3951_v33 = vpop.eup %3950  ;;  %v2429_v62 = vmul.f32 %v3949_v7, %v2428_v10  ;;  %v2544_v10 = vpop.f32.mrf.mxu3 }
 0xa1e   :  { %v2550_v54 = vadd.f32 1.0, %v3951_v33  ;;  %v2315_v33 = vand.u32 2147483648, %v2303_v28  ;;  %v5737_v6 = vadd.f32 %v2544_v10, %v6401_v55 }
 0xa1f   :  { %v3953_v50 = vpop.eup %3952  ;;  %v2430_v41 = vadd.f32 %v3949_v7, %v2429_v62 }
 0xa20   :  { %3956 = vrcp.f32 %v2550_v54  ;;  %v2305_v9 = vmul.f32 %v3953_v50, %v2303_v28  ;;  %v3955_v24 = vpop.eup %3954  ;;  %vm2310_vm14 = vweird.f32 %v3953_v50  ;;  %vm2556_vm4 = vweird.f32 %v2550_v54 }
 0xa21   :  { %v2434_v5 = vsel %vm2433_vm12, %v3949_v7, %v2430_v41  ;;  %3958 = vtanh.f32 %v2299_v18  ;;  %vm2311_vm1 = vmor %vm2309_vm15, %vm2310_vm14 }
 0xa22   :  { %v5732_v63 = vsel %vm2436_vm13, %v2438_v1, %v2434_v5  ;;  %v2306_v32 = vsub.f32 1.0, %v2305_v9  ;;  %v2316_v5 = vor.u32 1.1754944e-38, %v2315_v33  ;;  %3960 = vtanh.f32 %v5737_v6 }
 0xa23   :  { %v2462_v56 = vmul.f32 %v3955_v24, %v5732_v63 }
 0xa24   :  { %v2307_v46 = vmul.f32 %v3953_v50, %v2306_v32  ;;  %v2562_v32 = vand.u32 2147483648, %v2550_v54 }
 0xa25   :  { %2464 = vrot.lane.b32.xlu1 %v2462_v56, %s4301_s3  ;;  %v2560_v56 = vand.u32 2147483647, %v2550_v54 }
 0xa26   :  { %v3957_v42 = vpop.eup %3956  ;;  %v2308_v7 = vadd.f32 %v3953_v50, %v2307_v46  ;;  %v2563_v46 = vor.u32 1.1754944e-38, %v2562_v32  ;;  %v2603_v32 = vld [vmem:[#allocation5 + $0x8] sm:$0xff] }
 0xa27   :  { %v2552_v62 = vmul.f32 %v3957_v42, %v2550_v54  ;;  %v3959_v51 = vpop.eup %3958  ;;  %vm2557_vm3 = vweird.f32 %v3957_v42  ;;  %vm2561_vm6 = vcmp.eq.f32.partialorder %v2560_v56, 8.507059e+37  ;;  %v2618_v56 = vld [vmem:[#allocation7 + $0x70] sm:$0xff]  ;;  %2703 = vmatpush.msra.mxu3 %v2603_v32 }
 0xa28   :  { %v2312_v9 = vsel %vm2311_vm1, %v3953_v50, %v2308_v7  ;;  %vm2558_vm5 = vmor %vm2556_vm4, %vm2557_vm3  ;;  %v3961_v50 = vpop.eup %3960  ;;  %v3710_v7 = vmul.f32 -1.442695, %v2299_v18  ;;  %v2619_v18 = vld [vmem:[#allocation7 + $0x78] sm:$0xff]  ;;  %2633 = vmatpush.msrb.mxu0 %v2618_v56 }
 0xa29   :  { %v2317_v41 = vsel %vm2314_vm2, %v2316_v5, %v2312_v9  ;;  %v2553_v1 = vsub.f32 1.0, %v2552_v62  ;;  %v3712_v9 = vmul.f32 -1.442695, %v5728_v39  ;;  %2812 = vmatpush.msrb.mxu3 %v5472_v44  ;;  %v2616_v39 = vld [vmem:[#allocation7 + $0x60] sm:$0xff]  ;;  %2653 = vmatpush.msra.mxu1 %v2619_v18  ;;  %v2607_v56 = vld [vmem:[#allocation7 + $0x18] sm:$0xff] }
 0xa2a   :  { %v2340_v24 = vmul.f32 %v3959_v51, %v2317_v41  ;;  %3962 = vpow2.f32 %v3710_v7  ;;  %v2614_v7 = vld [vmem:[#allocation7 + $0x50] sm:$0xff]  ;;  %2634 = vmatpush.msrb.mxu0 %v2616_v39  ;;  %v2612_v44 = vld [vmem:[#allocation7 + $0x40] sm:$0xff] }
 0xa2b   :  { %v2554_v25 = vmul.f32 %v3957_v42, %v2553_v1  ;;  %2813 = vmatpush.msrb.mxu3 %v5479_v21  ;;  %v6453_v18 = vld [vmem:[#allocation45_spill] sm:$0xff]  ;;  %v6455_v39 = vld [vmem:[#allocation47_spill] sm:$0xff] }
 0xa2c   :  { %2342 = vrot.lane.b32.xlu2 %v2340_v24, %s4301_s3  ;;  %v2602_v24 = vld [vmem:[#allocation5] sm:$0xff]  ;;  %2635 = vmatpush.msrb.mxu0 %v2614_v7  ;;  %v6458_v7 = vld [vmem:[#allocation52_spill] sm:$0xff] }
 0xa2d   :  { %v2555_v10 = vadd.f32 %v3957_v42, %v2554_v25  ;;  %2683 = vmatpush.msrb.mxu2 %v2602_v24  ;;  %2814 = vmatpush.msrb.mxu3 %v5485_v22  ;;  %v2609_v24 = vld [vmem:[#allocation7 + $0x28] sm:$0xff] }
 0xa2e   :  { %2636 = vmatpush.msrb.mxu0 %v2612_v44 }
 0xa2f   :  { %v2559_v28 = vsel %vm2558_vm5, %v3957_v42, %v2555_v10  ;;  %2792 = vmatpush.msra.mxu2 %v5470_v12  ;;  %2815 = vmatpush.msrb.mxu3 %v5495_v17 }
 0xa30   :  { %v5741_v33 = vsel %vm2561_vm6, %v2563_v46, %v2559_v28  ;;  %v3963_v62 = vpop.eup %3962  ;;  %v2339_v46 = vmul.f32 %v2317_v41, %v5558_v38  ;;  %v2617_v28 = vld [vmem:[#allocation7 + $0x68] sm:$0xff] }
 0xa31   :  { %v2587_v0 = vmul.f32 %v3961_v50, %v5741_v33  ;;  %v2322_v5 = vadd.f32 1.0, %v3963_v62  ;;  %2793 = vmatpush.msra.mxu2 %v5474_v26  ;;  %v2615_v62 = vld [vmem:[#allocation7 + $0x58] sm:$0xff]  ;;  %2654 = vmatpush.msra.mxu1 %v2617_v28  ;;  %v2613_v38 = vld [vmem:[#allocation7 + $0x48] sm:$0xff] }
 0xa32   :  { %2816 = vmatpush.msrb.mxu3 %v5507_v36  ;;  %v2605_v36 = vld [vmem:[#allocation7 + $0x8] sm:$0xff] }
 0xa33   :  { %3964 = vrcp.f32 %v2322_v5  ;;  %v2334_v12 = vand.u32 2147483648, %v2322_v5  ;;  %2794 = vmatpush.msra.mxu2 %v5483_v19  ;;  %vm2328_vm8 = vweird.f32 %v2322_v5  ;;  %v2332_v26 = vand.u32 2147483647, %v2322_v5  ;;  %2655 = vmatpush.msra.mxu1 %v2615_v62  ;;  %v2611_v19 = vld [vmem:[#allocation7 + $0x38] sm:$0xff]  ;;  %v6456_v28 = vld [vmem:[#allocation49_spill] sm:$0xff] }
 0xa34   :  { %2589 = vrot.lane.b32.xlu2 %v2587_v0, %s4301_s3  ;;  %3966 = vpow2.f32 %v3712_v9  ;;  %2817 = vmatpush.msrb.mxu3 %v5525_v23  ;;  %v2461_v23 = vmul.f32 %v5732_v63, %v5592_v48  ;;  %v6444_v48 = vld [vmem:[#allocation33_spill] sm:$0xff]  ;;  %v6451_v63 = vld [vmem:[#allocation42_spill] sm:$0xff] }
 0xa35   :  { %2795 = vmatpush.msra.mxu2 %v5493_v30  ;;  %2656 = vmatpush.msra.mxu1 %v2613_v38  ;;  %vm2333_vm11 = vcmp.eq.f32.partialorder %v2332_v26, 8.507059e+37  ;;  %v6459_v62 = vld [vmem:[#allocation53_spill] sm:$0xff] }
 0xa36   :  { %2818 = vmatpush.msrb.mxu3 %v5540_v13 }
 0xa37   :  { %2796 = vmatpush.msra.mxu2 %v5503_v27  ;;  %2657 = vmatpush.msra.mxu1 %v2611_v19  ;;  %v2604_v27 = vld [vmem:[#allocation7] sm:$0xff] }
 0xa38   :  { %2819 = vmatpush.msrb.mxu3 %v5554_v59 }
 0xa39   :  { %v3965_v25 = vpop.eup %3964  ;;  %2797 = vmatpush.msra.mxu2 %v5523_v2  ;;  %2658 = vmatpush.msra.mxu1 %v2609_v24 }
 0xa3a   :  { %v2324_v54 = vmul.f32 %v3965_v25, %v2322_v5  ;;  %v3967_v51 = vpop.eup %3966  ;;  %vm2329_vm7 = vweird.f32 %v3965_v25  ;;  %2820 = vmatpush.msrb.mxu3 %v5570_v60  ;;  %v6436_v60 = vld [vmem:[#allocation28_spill] sm:$0xff] }
 0xa3b   :  { %v5746_v42 = vadd.f32 1.0, %v3967_v51  ;;  %vm5761_vm10 = vmor %vm2328_vm8, %vm2329_vm7  ;;  %v2335_v51 = vor.u32 1.1754944e-38, %v2334_v12  ;;  %2798 = vmatpush.msra.mxu2 %v5538_v58  ;;  %2659 = vmatpush.msra.mxu1 %v2607_v56  ;;  %v3714_v12 = vmul.f32 -1.442695, %v5737_v6 }
 0xa3c   :  { %v2325_v1 = vsub.f32 1.0, %v2324_v54  ;;  %v2610_v54 = vld [vmem:[#allocation7 + $0x30] sm:$0xff]  ;;  %2821 = vmatpush.msrb.mxu3 %v5588_v15  ;;  %v6443_v15 = vld [vmem:[#allocation32_spill] sm:$0xff] }
 0xa3d   :  { %3968 = vrcp.f32 %v5746_v42  ;;  %2637 = vmatpush.msrb.mxu0 %v2610_v54  ;;  %2799 = vmatpush.msra.mxu2 %v5552_v34  ;;  %vm2450_vm13 = vweird.f32 %v5746_v42 }
 0xa3e   :  { %v2326_v10 = vmul.f32 %v3965_v25, %v2325_v1  ;;  %v2608_v1 = vld [vmem:[#allocation7 + $0x20] sm:$0xff]  ;;  %2660 = vmatpush.msra.mxu1 %v2605_v36  ;;  %2822 = vmatpush.msrb.mxu3 %v5608_v20  ;;  %v6446_v20 = vld [vmem:[#allocation34_spill] sm:$0xff] }
 0xa3f   :  { %2638 = vmatpush.msrb.mxu0 %v2608_v1  ;;  %2800 = vmatpush.msra.mxu2 %v5568_v47 }
 0xa40   :  { %v2327_v9 = vadd.f32 %v3965_v25, %v2326_v10  ;;  %2937 = vmatpush.msrb.mxu1 %v5491_v31  ;;  %v2456_v31 = vand.u32 2147483648, %v5746_v42  ;;  %2823 = vmatpush.msrb.mxu3 %v5620_v37  ;;  %v6448_v37 = vld [vmem:[#allocation39_spill] sm:$0xff] }
 0xa41   :  { %2801 = vmatpush.msra.mxu2 %v5586_v49  ;;  %v6442_v49 = vld [vmem:[#allocation31_spill] sm:$0xff] }
 0xa42   :  { %v2331_v22 = vsel %vm5761_vm10, %v3965_v25, %v2327_v9  ;;  %v2606_v25 = vld [vmem:[#allocation7 + $0x10] sm:$0xff]  ;;  %2938 = vmatpush.msrb.mxu1 %v5505_v16  ;;  %2824 = vmatpush.msrb.mxu3 %v5633_v53  ;;  %v6438_v53 = vld [vmem:[#allocation37_spill] sm:$0xff] }
 0xa43   :  { %v5759_v41 = vpop.eup %3968  ;;  %v2336_v17 = vsel %vm2333_vm11, %v2335_v51, %v2331_v22  ;;  %2639 = vmatpush.msrb.mxu0 %v2606_v25  ;;  %2802 = vmatpush.msra.mxu2 %v5606_v14  ;;  %v6445_v14 = vld [vmem:[#allocation38_spill] sm:$0xff] }
 0xa44   :  { %v2446_v5 = vmul.f32 %v5759_v41, %v5746_v42  ;;  %vm2451_vm12 = vweird.f32 %v5759_v41  ;;  %2939 = vmatpush.msrb.mxu1 %v5513_v29  ;;  %2825 = vmatpush.msrb.mxu3 %v5649_v4  ;;  %v6450_v4 = vld [vmem:[#allocation41_spill] sm:$0xff]  ;;  %v6460_v22 = vld [vmem:[#allocation54_spill] sm:$0xff] }
 0xa45   :  { %2640 = vmatpush.msrb.mxu0 %v2604_v27  ;;  %2803 = vmatpush.msra.mxu2 %v5618_v61  ;;  %vm2452_vm14 = vmor %vm2450_vm13, %vm2451_vm12  ;;  %v6447_v61 = vld [vmem:[#allocation35_spill] sm:$0xff]  ;;  %v5842_v9 = vld [vmem:[#allocation8 + $0x8] sm:$0xff]  ;;  %v2586_v51 = vmul.f32 %v5741_v33, %v6460_v22 }
 0xa46   :  { %v2447_v10 = vsub.f32 1.0, %v2446_v5  ;;  %2940 = vmatpush.msrb.mxu1 %v5521_v52  ;;  %v6437_v52 = vld [vmem:[#allocation36_spill] sm:$0xff]  ;;  %2826 = vmatpush.msrb.mxu3 %v6438_v53 }
 0xa47   :  { %2917 = vmatpush.msra.mxu0 %v5489_v43  ;;  %v2601_v43 = vld [vmem:[#allocation3 + $0xe] sm:$0x3]  ;;  %2804 = vmatpush.msra.mxu2 %v5631_v8 }
 0xa48   :  { %v2448_v2 = vmul.f32 %v5759_v41, %v2447_v10  ;;  %3717 = vmatmul.msk.f32.vlgmr.msrb.gmra.mxu2 %vm228_vm0, %v2601_v43  ;;  %3718 = vmatmul.msk.f32.vlgmr.msra.gmra.mxu3 %vm228_vm0, %v2601_v43  ;;  %v6440_v8 = vld [vmem:[#allocation30_spill] sm:$0xff] }
 0xa49   :  { %2918 = vmatpush.msra.mxu0 %v5499_v40  ;;  %v2454_v40 = vand.u32 2147483647, %v5746_v42  ;;  %2941 = vmatpush.msrb.mxu1 %v5533_v57  ;;  %v6441_v57 = vld [vmem:[#allocation43_spill] sm:$0xff]  ;;  %v6452_v42 = vld [vmem:[#allocation44_spill] sm:$0xff] }
 0xa4a   :  { %v2449_v34 = vadd.f32 %v5759_v41, %v2448_v2  ;;  %2805 = vmatpush.msra.mxu2 %v5647_v3  ;;  %v6449_v3 = vld [vmem:[#allocation40_spill] sm:$0xff]  ;;  %2827 = vmatpush.msrb.mxu3 %v5842_v9 }
 0xa4b   :  { %2919 = vmatpush.msra.mxu0 %v5511_v35  ;;  %v2457_v35 = vor.u32 1.1754944e-38, %v2456_v31  ;;  %vm2455_vm15 = vcmp.eq.f32.partialorder %v2454_v40, 8.507059e+37  ;;  %2942 = vmatpush.msrb.mxu1 %v6436_v60 }
 0xa4c   :  { %v2453_v16 = vsel %vm2452_vm14, %v5759_v41, %v2449_v34  ;;  %2806 = vmatpush.msra.mxu2 %v6437_v52  ;;  %v6461_v34 = vld [vmem:[#allocation21_spill] sm:$0xff] }
 0xa4d   :  { %2920 = vmatpush.msra.mxu0 %v5519_v45  ;;  %v2458_v59 = vsel %vm2455_vm15, %v2457_v35, %v2453_v16  ;;  %v6435_v45 = vld [vmem:[#allocation27_spill] sm:$0xff]  ;;  %2943 = vmatpush.msrb.mxu1 %v6440_v8 }
 0xa4e   :  { %2807 = vmatpush.msra.mxu2 %v6441_v57  ;;  %v6462_v16 = vld [vmem:[#allocation23_spill] sm:$0xff]  ;;  %v6463_v57 = vld [vmem:[#allocation48_spill] sm:$0xff] }
 0xa4f   :  { %2921 = vmatpush.msra.mxu0 %v5531_v11  ;;  %v6439_v11 = vld [vmem:[#allocation29_spill] sm:$0xff]  ;;  %2944 = vmatpush.msrb.mxu1 %v6443_v15 }
 0xa51   :  { %2922 = vmatpush.msra.mxu0 %v6435_v45  ;;  %2945 = vmatpush.msrb.mxu1 %v6445_v14  ;;  %v6464_v14 = vld [vmem:[#allocation22_spill] sm:$0xff] }
 0xa53   :  { %2923 = vmatpush.msra.mxu0 %v6439_v11  ;;  %2946 = vmatpush.msrb.mxu1 %v6447_v61 }
 0xa55   :  { %2924 = vmatpush.msra.mxu0 %v6442_v49  ;;  %2947 = vmatpush.msrb.mxu1 %v6449_v3 }
 0xa57   :  { %2925 = vmatpush.msra.mxu0 %v6444_v48  ;;  %2948 = vmatpush.msrb.mxu1 %v6451_v63 }
 0xa59   :  { %2926 = vmatpush.msra.mxu0 %v6446_v20  ;;  %2949 = vmatpush.msrb.mxu1 %v6453_v18 }
 0xa5b   :  { %2927 = vmatpush.msra.mxu0 %v6448_v37  ;;  %2950 = vmatpush.msrb.mxu1 %v6455_v39 }
 0xa5d   :  { %2928 = vmatpush.msra.mxu0 %v6450_v4  ;;  %v6465_v4 = vld [vmem:[#allocation24_spill] sm:$0xff] }
 0xa5f   :  { %2929 = vmatpush.msra.mxu0 %v6452_v42 }
 0xa86   :  { %v2343_v50 = vpop.permute.xlu2 %2342 }
 0xa87   :  { %v5752_v0 = vadd.f32 %v2343_v50, %v2339_v46  ;;  %v6454_v46 = vld [vmem:[#allocation46_spill] sm:$0xff]  ;;  %v6457_v50 = vld [vmem:[#allocation51_spill] sm:$0xff] }
 0xa88   :  { %2930 = vmatpush.msra.mxu0 %v6454_v46  ;;  %2951 = vmatpush.msrb.mxu1 %v6457_v50 }
 0xa89   :  { %3970 = vtanh.f32 %v5752_v0 }
 0xa8a   :  { %2931 = vmatpush.msra.mxu0 %v6456_v28  ;;  %2952 = vmatpush.msrb.mxu1 %v6459_v62 }
 0xa8c   :  { %2932 = vmatpush.msra.mxu0 %v6458_v7 }
 0xa8e   :  { %v2590_v54 = vpop.permute.xlu2 %2589 }
 0xa8f   :  { %v3971_v30 = vpop.eup %3970  ;;  %v5851_v5 = vadd.f32 %v2590_v54, %v2586_v51 }
 0xa90   :  { %v2347_v32 = vmul.f32 %v3971_v30, %v2336_v17 }
 0xa92   :  { %2621 = vrot.lane.b32.xlu0 %v2347_v32, %s4301_s3 }
 0xa97   :  { %v2465_v58 = vpop.permute.xlu1 %2464 }
 0xa98   :  { %v5788_v13 = vadd.f32 %v2465_v58, %v2461_v23 }
 0xa9a   :  { %3972 = vtanh.f32 %v5788_v13 }
 0xa9b   :  { %3974 = vpow2.f32 %v3714_v12 }
 0xaa0   :  { %v3973_v29 = vpop.eup %3972 }
 0xaa1   :  { %v2469_v47 = vmul.f32 %v3973_v29, %v2458_v59  ;;  %v3975_v44 = vpop.eup %3974 }
 0xaa2   :  { %v2569_v38 = vadd.f32 1.0, %v3975_v44 }
 0xaa3   :  { %2881 = vrot.lane.b32.xlu0 %v2469_v47, %s4301_s3 }
 0xaa4   :  { %3976 = vrcp.f32 %v2569_v38  ;;  %v2581_v30 = vand.u32 2147483648, %v2569_v38  ;;  %vm2575_vm1 = vweird.f32 %v2569_v38  ;;  %v2579_v17 = vand.u32 2147483647, %v2569_v38 }
 0xaa5   :  { %3978 = vtanh.f32 %v5851_v5 }
 0xaa6   :  { %v2582_v32 = vor.u32 1.1754944e-38, %v2581_v30  ;;  %vm2580_vm3 = vcmp.eq.f32.partialorder %v2579_v17, 8.507059e+37 }
 0xaaa   :  { %v3977_v41 = vpop.eup %3976 }
 0xaab   :  { %v2571_v26 = vmul.f32 %v3977_v41, %v2569_v38  ;;  %vm2576_vm0 = vweird.f32 %v3977_v41  ;;  %v3979_v25 = vpop.eup %3978 }
 0xaac   :  { %vm2577_vm2 = vmor %vm2575_vm1, %vm2576_vm0 }
 0xaad   :  { %v2572_v21 = vsub.f32 1.0, %v2571_v26 }
 0xaaf   :  { %v2573_v1 = vmul.f32 %v3977_v41, %v2572_v21 }
 0xab1   :  { %v2574_v24 = vadd.f32 %v3977_v41, %v2573_v1 }
 0xab3   :  { %v2578_v33 = vsel %vm2577_vm2, %v3977_v41, %v2574_v24 }
 0xab4   :  { %v2583_v56 = vsel %vm2580_vm3, %v2582_v32, %v2578_v33 }
 0xab5   :  { %v5854_v10 = vmul.f32 %v3979_v25, %v2583_v56 }
 0xacb   :  { %v2685_v2 = vpop.f32.mrf.mxu2 }
 0xb04   :  { %v2622_v19 = vpop.permute.xlu0 %2621 }
 0xb05   :  { %3715 = vmatmul.msk.f32.vlgmr.msrb.gmra.mxu0 %vm157_vm9, %v2622_v19  ;;  %3716 = vmatmul.msk.f32.vlgmr.msra.gmra.mxu1 %vm157_vm9, %v2622_v19  ;;  %v2759_v6 = vsel %vm157_vm9, %v2622_v19, %v2469_v47  ;;  %v2705_v47 = vpop.f32.mrf.mxu3 }
 0xb06   :  { %2808 = vmatmul.f32.vlgmr.msra.gmra.mxu2 %v2759_v6  ;;  %2828 = vmatmul.f32.vlgmr.msrb.gmra.mxu3 %v2759_v6 }
 0xb15   :  { %v2882_v27 = vpop.permute.xlu0 %2881 }
 0xb16   :  { %v2884_v36 = vsel %vm157_vm9, %v2882_v27, %v5854_v10 }
 0xb17   :  { %2933 = vmatmul.f32.vlgmr.msra.gmra.mxu0 %v2884_v36  ;;  %2953 = vmatmul.f32.vlgmr.msrb.gmra.mxu1 %v2884_v36 }
 0xb82   :  { %v2642_v23 = vpop.f32.mrf.mxu0  ;;  %v2662_v60 = vpop.f32.mrf.mxu1 }
 0xb83   :  { %v2686_v58 = vadd.f32 %v2685_v2, %v2642_v23  ;;  %v2706_v53 = vadd.f32 %v2705_v47, %v2662_v60 }
 0xb85   :  { %v2708_v43 = vadd.f32 %v2686_v58, %v6461_v34  ;;  %v5862_v20 = vadd.f32 %v2706_v53, %v6464_v14 }
 0xb87   :  { %v3719_v31 = vmul.f32 -1.442695, %v2708_v43 }
 0xb89   :  { %3980 = vpow2.f32 %v3719_v31  ;;  %v2809_v40 = vpop.f32.mrf.mxu2  ;;  %v2829_v61 = vpop.f32.mrf.mxu3 }
 0xb8a   :  { %v2810_v35 = vadd.f32 %v2809_v40, %v6462_v16  ;;  %v2830_v63 = vadd.f32 %v2829_v61, %v6465_v4 }
 0xb8c   :  { %v3721_v29 = vmul.f32 -1.442695, %v2810_v35 }
 0xb8e   :  { %3982 = vpow2.f32 %v3721_v29  ;;  %v3722_v29 = vmul.f32 -1.442695, %v2830_v63 }
 0xb8f   :  { %v3981_v59 = vpop.eup %3980 }
 0xb90   :  { %v2713_v45 = vadd.f32 1.0, %v3981_v59 }
 0xb92   :  { %3984 = vrcp.f32 %v2713_v45  ;;  %v2725_v42 = vand.u32 2147483648, %v2713_v45  ;;  %v2723_v39 = vand.u32 2147483647, %v2713_v45  ;;  %vm2719_vm5 = vweird.f32 %v2713_v45 }
 0xb94   :  { %v3983_v52 = vpop.eup %3982  ;;  %v2934_v11 = vpop.f32.mrf.mxu0  ;;  %v2726_v12 = vor.u32 1.1754944e-38, %v2725_v42  ;;  %vm2724_vm7 = vcmp.eq.f32.partialorder %v2723_v39, 8.507059e+37  ;;  %v5889_v42 = vld [vmem:[#allocation11 + $0xf0] sm:$0xff]  ;;  %v5897_v39 = vld [vmem:[#allocation11 + $0xe8] sm:$0xff] }
 0xb95   :  { %v2835_v8 = vadd.f32 1.0, %v3983_v52  ;;  %v2935_v49 = vadd.f32 %v2934_v11, %v6463_v57  ;;  %v2954_v6 = vpop.f32.mrf.mxu1  ;;  %3172 = vmatpush.msrb.mxu0 %v5889_v42 }
 0xb96   :  { %v5871_v25 = vadd.f32 %v2954_v6, %v6401_v55  ;;  %v5929_v6 = vld [vmem:[#allocation11 + $0x90] sm:$0xff] }
 0xb97   :  { %3986 = vrcp.f32 %v2835_v8  ;;  %v3723_v15 = vmul.f32 -1.442695, %v2935_v49  ;;  %v2845_v41 = vand.u32 2147483647, %v2835_v8  ;;  %v2847_v26 = vand.u32 2147483648, %v2835_v8 }
 0xb98   :  { %v3985_v48 = vpop.eup %3984  ;;  %vm2841_vm10 = vweird.f32 %v2835_v8 }
 0xb99   :  { %3988 = vpow2.f32 %v3723_v15  ;;  %v2715_v37 = vmul.f32 %v3985_v48, %v2713_v45  ;;  %vm2720_vm4 = vweird.f32 %v3985_v48  ;;  %v2848_v1 = vor.u32 1.1754944e-38, %v2847_v26  ;;  %v5917_v26 = vld [vmem:[#allocation11 + $0xb0] sm:$0xff] }
 0xb9a   :  { %3990 = vtanh.f32 %v5862_v20  ;;  %vm2721_vm6 = vmor %vm2719_vm5, %vm2720_vm4  ;;  %vm2846_vm12 = vcmp.eq.f32.partialorder %v2845_v41, 8.507059e+37  ;;  %v3720_v45 = vmul.f32 -1.442695, %v5862_v20  ;;  %v5911_v41 = vld [vmem:[#allocation11 + $0xc8] sm:$0xff] }
 0xb9b   :  { %v2716_v3 = vsub.f32 1.0, %v2715_v37  ;;  %3992 = vtanh.f32 %v2830_v63 }
 0xb9d   :  { %v3987_v18 = vpop.eup %3986  ;;  %v2717_v46 = vmul.f32 %v3985_v48, %v2716_v3 }
 0xb9e   :  { %v2837_v28 = vmul.f32 %v3987_v18, %v2835_v8  ;;  %vm2842_vm8 = vweird.f32 %v3987_v18 }
 0xb9f   :  { %v3989_v50 = vpop.eup %3988  ;;  %v2718_v7 = vadd.f32 %v3985_v48, %v2717_v46  ;;  %vm2843_vm11 = vmor %vm2841_vm10, %vm2842_vm8 }
 0xba0   :  { %v2960_v62 = vadd.f32 1.0, %v3989_v50  ;;  %v2838_v44 = vsub.f32 1.0, %v2837_v28  ;;  %v3991_v21 = vpop.eup %3990  ;;  %v5899_v28 = vld [vmem:[#allocation11 + $0xd0] sm:$0xff]  ;;  %v5901_v50 = vld [vmem:[#allocation11 + $0xd8] sm:$0xff] }
 0xba1   :  { %v2722_v38 = vsel %vm2721_vm6, %v3985_v48, %v2718_v7  ;;  %v3993_v24 = vpop.eup %3992 }
 0xba2   :  { %3994 = vrcp.f32 %v2960_v62  ;;  %v5866_v54 = vsel %vm2724_vm7, %v2726_v12, %v2722_v38  ;;  %v2839_v19 = vmul.f32 %v3987_v18, %v2838_v44  ;;  %v2972_v36 = vand.u32 2147483648, %v2960_v62  ;;  %v5909_v38 = vld [vmem:[#allocation11 + $0xc0] sm:$0xff] }
 0xba3   :  { %v2750_v22 = vmul.f32 %v3991_v21, %v5866_v54  ;;  %3996 = vtanh.f32 %v5871_v25  ;;  %v2970_v23 = vand.u32 2147483647, %v2960_v62  ;;  %vm2966_vm14 = vweird.f32 %v2960_v62  ;;  %v5919_v21 = vld [vmem:[#allocation11 + $0xb8] sm:$0xff] }
 0xba4   :  { %v2840_v51 = vadd.f32 %v3987_v18, %v2839_v19  ;;  %v2973_v34 = vor.u32 1.1754944e-38, %v2972_v36  ;;  %3998 = vpow2.f32 %v3722_v29  ;;  %v5946_v36 = vld [vmem:[#allocation11 + $0x78] sm:$0xff]  ;;  %v5968_v29 = vld [vmem:[#allocation11 + $0x40] sm:$0xff] }
 0xba5   :  { %2752 = vrot.lane.b32.xlu1 %v2750_v22, %s4301_s3  ;;  %vm2971_vm0 = vcmp.eq.f32.partialorder %v2970_v23, 8.507059e+37  ;;  %v5923_v22 = vld [vmem:[#allocation11 + $0xa0] sm:$0xff]  ;;  %v5955_v23 = vld [vmem:[#allocation11 + $0x68] sm:$0xff] }
 0xba6   :  { %v2844_v30 = vsel %vm2843_vm11, %v3987_v18, %v2840_v51  ;;  %v5891_v18 = vld [vmem:[#allocation11 + $0xf8] sm:$0xff]  ;;  %v5925_v51 = vld [vmem:[#allocation11 + $0xa8] sm:$0xff] }
 0xba7   :  { %v2849_v17 = vsel %vm2846_vm12, %v2848_v1, %v2844_v30  ;;  %3192 = vmatpush.msra.mxu1 %v5891_v18  ;;  %v5931_v1 = vld [vmem:[#allocation11 + $0x98] sm:$0xff]  ;;  %v2749_v30 = vmul.f32 %v5866_v54, %v5752_v0  ;;  %v5953_v54 = vld [vmem:[#allocation11 + $0x60] sm:$0xff] }
 0xba8   :  { %v3995_v33 = vpop.eup %3994  ;;  %v2872_v32 = vmul.f32 %v3993_v24, %v2849_v17  ;;  %v2871_v15 = vmul.f32 %v2849_v17, %v5788_v13  ;;  %v5893_v13 = vld [vmem:[#allocation11 + $0xe0] sm:$0xff] }
 0xba9   :  { %v2962_v56 = vmul.f32 %v3995_v33, %v2960_v62  ;;  %vm2967_vm13 = vweird.f32 %v3995_v33  ;;  %v3997_v31 = vpop.eup %3996  ;;  %3173 = vmatpush.msrb.mxu0 %v5893_v13  ;;  %3193 = vmatpush.msra.mxu1 %v5897_v39  ;;  %v5938_v17 = vld [vmem:[#allocation11 + $0x80] sm:$0xff] }
 0xbaa   :  { %2874 = vrot.lane.b32.xlu2 %v2872_v32, %s4301_s3  ;;  %vm2968_vm15 = vmor %vm2966_vm14, %vm2967_vm13  ;;  %v3999_v59 = vpop.eup %3998 }
 0xbab   :  { %v2963_v27 = vsub.f32 1.0, %v2962_v56  ;;  %v2854_v47 = vadd.f32 1.0, %v3999_v59  ;;  %3174 = vmatpush.msrb.mxu0 %v5899_v28  ;;  %3194 = vmatpush.msra.mxu1 %v5901_v50  ;;  %v5970_v59 = vld [vmem:[#allocation11 + $0x48] sm:$0xff] }
 0xbad   :  { %v2964_v2 = vmul.f32 %v3995_v33, %v2963_v27  ;;  %4000 = vrcp.f32 %v2854_v47  ;;  %v2866_v20 = vand.u32 2147483648, %v2854_v47  ;;  %vm2860_vm2 = vweird.f32 %v2854_v47  ;;  %3175 = vmatpush.msrb.mxu0 %v5909_v38  ;;  %3195 = vmatpush.msra.mxu1 %v5911_v41  ;;  %v5944_v27 = vld [vmem:[#allocation11 + $0x70] sm:$0xff] }
 0xbae   :  { %4002 = vpow2.f32 %v3720_v45  ;;  %v2864_v37 = vand.u32 2147483647, %v2854_v47 }
 0xbaf   :  { %v2965_v58 = vadd.f32 %v3995_v33, %v2964_v2  ;;  %v2867_v46 = vor.u32 1.1754944e-38, %v2866_v20  ;;  %3176 = vmatpush.msrb.mxu0 %v5917_v26  ;;  %3196 = vmatpush.msra.mxu1 %v5919_v21 }
 0xbb0   :  { %vm2865_vm4 = vcmp.eq.f32.partialorder %v2864_v37, 8.507059e+37  ;;  %v5998_v37 = vld [vmem:[#allocation11] sm:$0xff] }
 0xbb1   :  { %v2969_v43 = vsel %vm2968_vm15, %v3995_v33, %v2965_v58  ;;  %3177 = vmatpush.msrb.mxu0 %v5923_v22  ;;  %3197 = vmatpush.msra.mxu1 %v5925_v51  ;;  %v5940_v33 = vld [vmem:[#allocation11 + $0x88] sm:$0xff] }
 0xbb2   :  { %v5875_v40 = vsel %vm2971_vm0, %v2973_v34, %v2969_v43  ;;  %v5961_v34 = vld [vmem:[#allocation11 + $0x50] sm:$0xff]  ;;  %v5963_v43 = vld [vmem:[#allocation11 + $0x58] sm:$0xff] }
 0xbb3   :  { %v2997_v35 = vmul.f32 %v3997_v31, %v5875_v40  ;;  %v4001_v60 = vpop.eup %4000  ;;  %3178 = vmatpush.msrb.mxu0 %v5929_v6  ;;  %3198 = vmatpush.msra.mxu1 %v5931_v1 }
 0xbb4   :  { %v2856_v52 = vmul.f32 %v4001_v60, %v2854_v47  ;;  %v4003_v53 = vpop.eup %4002  ;;  %vm2861_vm1 = vweird.f32 %v4001_v60 }
 0xbb5   :  { %2999 = vrot.lane.b32.xlu1 %v2997_v35, %s4301_s3  ;;  %v5880_v8 = vadd.f32 1.0, %v4003_v53  ;;  %vm2862_vm3 = vmor %vm2860_vm2, %vm2861_vm1  ;;  %3179 = vmatpush.msrb.mxu0 %v5938_v17  ;;  %v5978_v53 = vld [vmem:[#allocation11 + $0x38] sm:$0xff] }
 0xbb6   :  { %v2857_v11 = vsub.f32 1.0, %v2856_v52  ;;  %3199 = vmatpush.msra.mxu1 %v5940_v33 }
 0xbb7   :  { %4004 = vrcp.f32 %v5880_v8  ;;  %v2744_v0 = vand.u32 2147483648, %v5880_v8  ;;  %vm2738_vm6 = vweird.f32 %v5880_v8  ;;  %v2742_v58 = vand.u32 2147483647, %v5880_v8  ;;  %3180 = vmatpush.msrb.mxu0 %v5944_v27 }
 0xbb8   :  { %v2858_v49 = vmul.f32 %v4001_v60, %v2857_v11  ;;  %3200 = vmatpush.msra.mxu1 %v5946_v36  ;;  %v5980_v11 = vld [vmem:[#allocation11 + $0x20] sm:$0xff] }
 0xbb9   :  { %3181 = vmatpush.msrb.mxu0 %v5953_v54  ;;  %v2745_v35 = vor.u32 1.1754944e-38, %v2744_v0  ;;  %vm2743_vm8 = vcmp.eq.f32.partialorder %v2742_v58, 8.507059e+37  ;;  %v3036_v0 = vld [vmem:[#allocation8 + $0xa8] sm:$0xff] }
 0xbba   :  { %v2859_v61 = vadd.f32 %v4001_v60, %v2858_v49  ;;  %3201 = vmatpush.msra.mxu1 %v5955_v23  ;;  %v5987_v49 = vld [vmem:[#allocation11 + $0x10] sm:$0xff] }
 0xbbb   :  { %3182 = vmatpush.msrb.mxu0 %v5961_v34 }
 0xbbc   :  { %v2863_v63 = vsel %vm2862_vm3, %v4001_v60, %v2859_v61  ;;  %3202 = vmatpush.msra.mxu1 %v5963_v43  ;;  %v5974_v60 = vld [vmem:[#allocation11 + $0x30] sm:$0xff] }
 0xbbd   :  { %v5887_v3 = vpop.eup %4004  ;;  %v2868_v62 = vsel %vm2865_vm4, %v2867_v46, %v2863_v63  ;;  %3183 = vmatpush.msrb.mxu0 %v5968_v29  ;;  %v3045_v63 = vld [vmem:[#allocation8 + $0xf0] sm:$0xff]  ;;  %v3046_v46 = vld [vmem:[#allocation8 + $0xf8] sm:$0xff] }
 0xbbe   :  { %v2734_v12 = vmul.f32 %v5887_v3, %v5880_v8  ;;  %vm2739_vm5 = vweird.f32 %v5887_v3  ;;  %3203 = vmatpush.msra.mxu1 %v5970_v59  ;;  %v5984_v8 = vld [vmem:[#allocation11 + $0x28] sm:$0xff]  ;;  %3047 = vmatpush.msrb.mxu2 %v3045_v63 }
 0xbbf   :  { %vm2740_vm7 = vmor %vm2738_vm6, %vm2739_vm5  ;;  %3184 = vmatpush.msrb.mxu0 %v5974_v60  ;;  %3067 = vmatpush.msra.mxu3 %v3046_v46  ;;  %v3029_v63 = vld [vmem:[#allocation8 + $0x70] sm:$0xff]  ;;  %v3030_v46 = vld [vmem:[#allocation8 + $0x78] sm:$0xff] }
 0xbc0   :  { %v2735_v19 = vsub.f32 1.0, %v2734_v12  ;;  %3204 = vmatpush.msra.mxu1 %v5978_v53  ;;  %v3042_v12 = vld [vmem:[#allocation8 + $0xd8] sm:$0xff] }
 0xbc1   :  { %3185 = vmatpush.msrb.mxu0 %v5980_v11 }
 0xbc2   :  { %v2736_v24 = vmul.f32 %v5887_v3, %v2735_v19  ;;  %3205 = vmatpush.msra.mxu1 %v5984_v8  ;;  %v3039_v19 = vld [vmem:[#allocation8 + $0xc0] sm:$0xff] }
 0xbc3   :  { %3186 = vmatpush.msrb.mxu0 %v5987_v49 }
 0xbc4   :  { %v2737_v2 = vadd.f32 %v5887_v3, %v2736_v24  ;;  %v3040_v24 = vld [vmem:[#allocation8 + $0xc8] sm:$0xff] }
 0xbc5   :  { %3187 = vmatpush.msrb.mxu0 %v5998_v37 }
 0xbc6   :  { %v2741_v31 = vsel %vm2740_vm7, %v5887_v3, %v2737_v2  ;;  %v6000_v3 = vld [vmem:[#allocation11 + $0x8] sm:$0xff]  ;;  %v3035_v2 = vld [vmem:[#allocation8 + $0xa0] sm:$0xff] }
 0xbc7   :  { %v2746_v45 = vsel %vm2743_vm8, %v2745_v35, %v2741_v31  ;;  %v3033_v31 = vld [vmem:[#allocation8 + $0x90] sm:$0xff]  ;;  %v3034_v35 = vld [vmem:[#allocation8 + $0x98] sm:$0xff] }
 0xc04   :  { %v2875_v48 = vpop.permute.xlu2 %2874 }
 0xc05   :  { %v5884_v14 = vadd.f32 %v2875_v48, %v2871_v15  ;;  %v5990_v15 = vld [vmem:[#allocation11 + $0x18] sm:$0xff]  ;;  %v3724_v48 = vmul.f32 -1.442695, %v5871_v25  ;;  %v3044_v25 = vld [vmem:[#allocation8 + $0xe8] sm:$0xff] }
 0xc06   :  { %3206 = vmatpush.msra.mxu1 %v5990_v15  ;;  %3068 = vmatpush.msra.mxu3 %v3044_v25  ;;  %v3027_v25 = vld [vmem:[#allocation8 + $0x60] sm:$0xff] }
 0xc07   :  { %4006 = vtanh.f32 %v5884_v14 }
 0xc08   :  { %3207 = vmatpush.msra.mxu1 %v6000_v3  ;;  %3069 = vmatpush.msra.mxu3 %v3042_v12 }
 0xc0a   :  { %3070 = vmatpush.msra.mxu3 %v3040_v24  ;;  %v3026_v24 = vld [vmem:[#allocation8 + $0x58] sm:$0xff] }
 0xc0d   :  { %v4007_v7 = vpop.eup %4006 }
 0xc0e   :  { %v5907_v44 = vmul.f32 %v4007_v7, %v2868_v62  ;;  %v3043_v7 = vld [vmem:[#allocation8 + $0xe0] sm:$0xff]  ;;  %v3041_v62 = vld [vmem:[#allocation8 + $0xd0] sm:$0xff] }
 0xc0f   :  { %3048 = vmatpush.msrb.mxu2 %v3043_v7 }
 0xc10   :  { %3136 = vrot.lane.b32.xlu2 %v5907_v44, %s4301_s3 }
 0xc11   :  { %3049 = vmatpush.msrb.mxu2 %v3041_v62  ;;  %v3028_v62 = vld [vmem:[#allocation8 + $0x68] sm:$0xff] }
 0xc13   :  { %3050 = vmatpush.msrb.mxu2 %v3039_v19  ;;  %v3025_v19 = vld [vmem:[#allocation8 + $0x50] sm:$0xff] }
 0xc17   :  { %v2753_v32 = vpop.permute.xlu1 %2752 }
 0xc18   :  { %v2755_v56 = vadd.f32 %v2753_v32, %v2749_v30  ;;  %v3037_v32 = vld [vmem:[#allocation8 + $0xb0] sm:$0xff] }
 0xc19   :  { %3051 = vmatpush.msrb.mxu2 %v3037_v32  ;;  %v3023_v32 = vld [vmem:[#allocation8 + $0x40] sm:$0xff] }
 0xc1a   :  { %4008 = vtanh.f32 %v2755_v56  ;;  %v3038_v56 = vld [vmem:[#allocation8 + $0xb8] sm:$0xff] }
 0xc1b   :  { %4010 = vpow2.f32 %v3724_v48  ;;  %3071 = vmatpush.msra.mxu3 %v3038_v56  ;;  %3052 = vmatpush.msrb.mxu2 %v3035_v2  ;;  %v3021_v2 = vld [vmem:[#allocation8 + $0x30] sm:$0xff] }
 0xc1d   :  { %3072 = vmatpush.msra.mxu3 %v3036_v0  ;;  %3053 = vmatpush.msrb.mxu2 %v3033_v31  ;;  %v3022_v0 = vld [vmem:[#allocation8 + $0x38] sm:$0xff]  ;;  %v3019_v31 = vld [vmem:[#allocation8 + $0x20] sm:$0xff] }
 0xc1f   :  { %3073 = vmatpush.msra.mxu3 %v3034_v35  ;;  %v3020_v35 = vld [vmem:[#allocation8 + $0x28] sm:$0xff] }
 0xc20   :  { %v4009_v47 = vpop.eup %4008 }
 0xc21   :  { %v2757_v52 = vmul.f32 %v4009_v47, %v2746_v45  ;;  %v4011_v61 = vpop.eup %4010  ;;  %v3031_v47 = vld [vmem:[#allocation8 + $0x80] sm:$0xff]  ;;  %v3032_v45 = vld [vmem:[#allocation8 + $0x88] sm:$0xff] }
 0xc22   :  { %v5996_v20 = vadd.f32 1.0, %v4011_v61  ;;  %v2996_v61 = vmul.f32 %v5875_v40, %v5851_v5  ;;  %3054 = vmatpush.msrb.mxu2 %v3031_v47  ;;  %3074 = vmatpush.msra.mxu3 %v3032_v45  ;;  %v3024_v5 = vld [vmem:[#allocation8 + $0x48] sm:$0xff] }
 0xc23   :  { %3011 = vrot.lane.b32.xlu0 %v2757_v52, %s4301_s3 }
 0xc24   :  { %4012 = vrcp.f32 %v5996_v20  ;;  %3055 = vmatpush.msrb.mxu2 %v3029_v63  ;;  %3075 = vmatpush.msra.mxu3 %v3030_v46  ;;  %v2991_v56 = vand.u32 2147483648, %v5996_v20  ;;  %vm2985_vm11 = vweird.f32 %v5996_v20 }
 0xc26   :  { %3056 = vmatpush.msrb.mxu2 %v3027_v25  ;;  %3076 = vmatpush.msra.mxu3 %v3028_v62 }
 0xc27   :  { %v3000_v48 = vpop.permute.xlu1 %2999 }
 0xc28   :  { %v6011_v7 = vadd.f32 %v3000_v48, %v2996_v61  ;;  %3057 = vmatpush.msrb.mxu2 %v3025_v19  ;;  %3077 = vmatpush.msra.mxu3 %v3026_v24  ;;  %v3017_v48 = vld [vmem:[#allocation8 + $0x10] sm:$0xff]  ;;  %v3018_v61 = vld [vmem:[#allocation8 + $0x18] sm:$0xff] }
 0xc2a   :  { %v6005_v30 = vpop.eup %4012  ;;  %4014 = vtanh.f32 %v6011_v7  ;;  %3058 = vmatpush.msrb.mxu2 %v3023_v32  ;;  %3078 = vmatpush.msra.mxu3 %v3024_v5  ;;  %v6467_v5 = vld [vmem:[#allocation26_spill] sm:$0xff] }
 0xc2b   :  { %v2981_v58 = vmul.f32 %v6005_v30, %v5996_v20  ;;  %vm2986_vm10 = vweird.f32 %v6005_v30 }
 0xc2c   :  { %vm2987_vm12 = vmor %vm2985_vm11, %vm2986_vm10  ;;  %3059 = vmatpush.msrb.mxu2 %v3021_v2  ;;  %3079 = vmatpush.msra.mxu3 %v3022_v0  ;;  %v3409_v2 = vld [vmem:[#allocation14 + $0x30] sm:$0xff]  ;;  %v3408_v0 = vld [vmem:[#allocation14 + $0x28] sm:$0xff]  ;;  %vm958_vm10 = vcmask 517120  }
 0xc2d   :  { %v2982_v52 = vsub.f32 1.0, %v2981_v58  ;;  %v2989_v58 = vand.u32 2147483647, %v5996_v20 }
 0xc2e   :  { %3060 = vmatpush.msrb.mxu2 %v3019_v31  ;;  %3080 = vmatpush.msra.mxu3 %v3020_v35  ;;  %v3407_v31 = vld [vmem:[#allocation14 + $0x20] sm:$0xff] }
 0xc2f   :  { %v2983_v12 = vmul.f32 %v6005_v30, %v2982_v52  ;;  %v2992_v52 = vor.u32 1.1754944e-38, %v2991_v56  ;;  %vm2990_vm13 = vcmp.eq.f32.partialorder %v2989_v58, 8.507059e+37  ;;  %v3410_v56 = vld [vmem:[#allocation14 + $0x38] sm:$0xff] }
 0xc30   :  { %v4015_v45 = vpop.eup %4014  ;;  %3061 = vmatpush.msrb.mxu2 %v3017_v48  ;;  %3081 = vmatpush.msra.mxu3 %v3018_v61  ;;  %v3403_v48 = vld [vmem:[#allocation14] sm:$0xff] }
 0xc31   :  { %v2984_v40 = vadd.f32 %v6005_v30, %v2983_v12  ;;  %3447 = vmatpush.msra.mxu0 %v3410_v56 }
 0xc32   :  { %3082 = vmatpush.msra.mxu3 %v5842_v9 }
 0xc33   :  { %v2988_v47 = vsel %vm2987_vm12, %v6005_v30, %v2984_v40  ;;  %v3015_v30 = vld [vmem:[#allocation8] sm:$0xff]  ;;  %3448 = vmatpush.msra.mxu0 %v3409_v2 }
 0xc34   :  { %v2993_v63 = vsel %vm2990_vm13, %v2992_v52, %v2988_v47  ;;  %3322 = vmatpush.msrb.mxu3 %v5891_v18  ;;  %3062 = vmatpush.msrb.mxu2 %v3015_v30  ;;  %v3406_v47 = vld [vmem:[#allocation14 + $0x18] sm:$0xff]  ;;  %v3404_v52 = vld [vmem:[#allocation14 + $0x8] sm:$0xff] }
 0xc35   :  { %v6021_v46 = vmul.f32 %v4015_v45, %v2993_v63  ;;  %3449 = vmatpush.msra.mxu0 %v3408_v0  ;;  %v3405_v45 = vld [vmem:[#allocation14 + $0x10] sm:$0xff] }
 0xc36   :  { %3323 = vmatpush.msrb.mxu3 %v5897_v39  ;;  %3302 = vmatpush.msra.mxu2 %v5889_v42 }
 0xc37   :  { %3450 = vmatpush.msra.mxu0 %v3407_v31 }
 0xc38   :  { %3324 = vmatpush.msrb.mxu3 %v5901_v50  ;;  %3303 = vmatpush.msra.mxu2 %v5893_v13 }
 0xc39   :  { %3451 = vmatpush.msra.mxu0 %v3406_v47 }
 0xc3a   :  { %3325 = vmatpush.msrb.mxu3 %v5911_v41  ;;  %3304 = vmatpush.msra.mxu2 %v5899_v28 }
 0xc3b   :  { %3452 = vmatpush.msra.mxu0 %v3405_v45 }
 0xc3c   :  { %3326 = vmatpush.msrb.mxu3 %v5919_v21  ;;  %3305 = vmatpush.msra.mxu2 %v5909_v38 }
 0xc3d   :  { %3453 = vmatpush.msra.mxu0 %v3404_v52 }
 0xc3e   :  { %3327 = vmatpush.msrb.mxu3 %v5925_v51  ;;  %3306 = vmatpush.msra.mxu2 %v5917_v26 }
 0xc3f   :  { %3454 = vmatpush.msra.mxu0 %v3403_v48 }
 0xc40   :  { %3328 = vmatpush.msrb.mxu3 %v5931_v1  ;;  %3307 = vmatpush.msra.mxu2 %v5923_v22 }
 0xc42   :  { %3329 = vmatpush.msrb.mxu3 %v5940_v33  ;;  %3308 = vmatpush.msra.mxu2 %v5929_v6 }
 0xc44   :  { %3330 = vmatpush.msrb.mxu3 %v5946_v36  ;;  %3309 = vmatpush.msra.mxu2 %v5938_v17 }
 0xc46   :  { %3331 = vmatpush.msrb.mxu3 %v5955_v23  ;;  %3310 = vmatpush.msra.mxu2 %v5944_v27 }
 0xc48   :  { %3332 = vmatpush.msrb.mxu3 %v5963_v43  ;;  %3311 = vmatpush.msra.mxu2 %v5953_v54 }
 0xc4a   :  { %3333 = vmatpush.msrb.mxu3 %v5970_v59  ;;  %3312 = vmatpush.msra.mxu2 %v5961_v34 }
 0xc4c   :  { %3334 = vmatpush.msrb.mxu3 %v5978_v53  ;;  %3313 = vmatpush.msra.mxu2 %v5968_v29 }
 0xc4e   :  { %3335 = vmatpush.msrb.mxu3 %v5984_v8  ;;  %3314 = vmatpush.msra.mxu2 %v5974_v60 }
 0xc50   :  { %3336 = vmatpush.msrb.mxu3 %v5990_v15  ;;  %3315 = vmatpush.msra.mxu2 %v5980_v11 }
 0xc52   :  { %3337 = vmatpush.msrb.mxu3 %v6000_v3  ;;  %3316 = vmatpush.msra.mxu2 %v5987_v49 }
 0xc54   :  { %3317 = vmatpush.msra.mxu2 %v5998_v37 }
 0xc6a   :  { %v3137_v20 = vpop.permute.xlu2 %3136 }
 0xc6b   :  { %v3139_v25 = vsel %vm157_vm9, %v3137_v20, %v6021_v46 }
 0xc6c   :  { %3188 = vmatmul.f32.vlgmr.msrb.gmra.mxu0 %v3139_v25  ;;  %3208 = vmatmul.f32.vlgmr.msra.gmra.mxu1 %v3139_v25 }
 0xc95   :  { %v3012_v9 = vpop.permute.xlu0 %3011 }
 0xc96   :  { %v3014_v42 = vsel %vm157_vm9, %v3012_v9, %v5907_v44 }
 0xc97   :  { %3063 = vmatmul.f32.vlgmr.msrb.gmra.mxu2 %v3014_v42  ;;  %3083 = vmatmul.f32.vlgmr.msra.gmra.mxu3 %v3014_v42 }
 0xce9   :  { %v3189_v18 = vpop.f32.mrf.mxu0  ;;  %v3209_v38 = vpop.f32.mrf.mxu1 }
 0xcea   :  { %v3190_v13 = vadd.f32 %v3189_v18, %v6463_v57  ;;  %v6062_v26 = vadd.f32 %v3209_v38, %v6401_v55 }
 0xcec   :  { %v3727_v39 = vmul.f32 -1.442695, %v3190_v13 }
 0xcee   :  { %4016 = vpow2.f32 %v3727_v39 }
 0xcf4   :  { %v4017_v28 = vpop.eup %4016 }
 0xcf5   :  { %v3215_v50 = vadd.f32 1.0, %v4017_v28 }
 0xcf7   :  { %4018 = vrcp.f32 %v3215_v50  ;;  %v3227_v44 = vand.u32 2147483648, %v3215_v50  ;;  %v3225_v6 = vand.u32 2147483647, %v3215_v50  ;;  %vm3221_vm15 = vweird.f32 %v3215_v50 }
 0xcf8   :  { %4020 = vtanh.f32 %v6062_v26 }
 0xcf9   :  { %v3228_v17 = vor.u32 1.1754944e-38, %v3227_v44  ;;  %vm3226_vm1 = vcmp.eq.f32.partialorder %v3225_v6, 8.507059e+37  ;;  %v6468_v44 = vld [vmem:[#allocation55_spill] sm:$0xff]  ;;  %v3728_v6 = vmul.f32 -1.442695, %v6062_v26 }
 0xcfd   :  { %v4019_v41 = vpop.eup %4018 }
 0xcfe   :  { %v3217_v21 = vmul.f32 %v4019_v41, %v3215_v50  ;;  %vm3222_vm14 = vweird.f32 %v4019_v41  ;;  %v4021_v27 = vpop.eup %4020 }
 0xcff   :  { %vm3223_vm0 = vmor %vm3221_vm15, %vm3222_vm14 }
 0xd00   :  { %v3218_v22 = vsub.f32 1.0, %v3217_v21 }
 0xd02   :  { %v3219_v51 = vmul.f32 %v4019_v41, %v3218_v22 }
 0xd04   :  { %v3220_v1 = vadd.f32 %v4019_v41, %v3219_v51 }
 0xd06   :  { %v3224_v33 = vsel %vm3223_vm0, %v4019_v41, %v3220_v1 }
 0xd07   :  { %v6065_v36 = vsel %vm3226_vm1, %v3228_v17, %v3224_v33 }
 0xd08   :  { %v3252_v54 = vmul.f32 %v4021_v27, %v6065_v36 }
 0xd0a   :  { %3254 = vrot.lane.b32.xlu1 %v3252_v54, %s4301_s3 }
 0xd1a   :  { %v3064_v23 = vpop.f32.mrf.mxu2  ;;  %v3084_v60 = vpop.f32.mrf.mxu3 }
 0xd1b   :  { %v3065_v34 = vadd.f32 %v3064_v23, %v6462_v16  ;;  %v3085_v11 = vadd.f32 %v3084_v60, %v6465_v4  ;;  %v6466_v4 = vld [vmem:[#allocation25_spill] sm:$0xff] }
 0xd1d   :  { %v3725_v43 = vmul.f32 -1.442695, %v3065_v34  ;;  %v3726_v40 = vmul.f32 -1.442695, %v3085_v11  ;;  %v3251_v34 = vmul.f32 %v6065_v36, %v6011_v7 }
 0xd1f   :  { %4022 = vpow2.f32 %v3725_v43 }
 0xd25   :  { %v4023_v29 = vpop.eup %4022 }
 0xd26   :  { %v3090_v59 = vadd.f32 1.0, %v4023_v29 }
 0xd28   :  { %4024 = vrcp.f32 %v3090_v59  ;;  %v3102_v15 = vand.u32 2147483648, %v3090_v59  ;;  %v3100_v3 = vand.u32 2147483647, %v3090_v59  ;;  %vm3096_vm3 = vweird.f32 %v3090_v59 }
 0xd29   :  { %4026 = vtanh.f32 %v3085_v11 }
 0xd2a   :  { %v3103_v16 = vor.u32 1.1754944e-38, %v3102_v15  ;;  %vm3101_vm5 = vcmp.eq.f32.partialorder %v3100_v3, 8.507059e+37  ;;  %4028 = vpow2.f32 %v3726_v40 }
 0xd2e   :  { %v4025_v53 = vpop.eup %4024 }
 0xd2f   :  { %v3092_v8 = vmul.f32 %v4025_v53, %v3090_v59  ;;  %vm3097_vm2 = vweird.f32 %v4025_v53  ;;  %v4027_v19 = vpop.eup %4026 }
 0xd30   :  { %vm3098_vm4 = vmor %vm3096_vm3, %vm3097_vm2  ;;  %v4029_v58 = vpop.eup %4028 }
 0xd31   :  { %v3093_v49 = vsub.f32 1.0, %v3092_v8  ;;  %v3109_v35 = vadd.f32 1.0, %v4029_v58 }
 0xd33   :  { %v3094_v37 = vmul.f32 %v4025_v53, %v3093_v49  ;;  %4030 = vrcp.f32 %v3109_v35  ;;  %v3121_v18 = vand.u32 2147483648, %v3109_v35  ;;  %vm3115_vm7 = vweird.f32 %v3109_v35 }
 0xd34   :  { %v3119_v13 = vand.u32 2147483647, %v3109_v35 }
 0xd35   :  { %v3095_v62 = vadd.f32 %v4025_v53, %v3094_v37  ;;  %v3122_v28 = vor.u32 1.1754944e-38, %v3121_v18 }
 0xd36   :  { %vm3120_vm11 = vcmp.eq.f32.partialorder %v3119_v13, 8.507059e+37 }
 0xd37   :  { %v3099_v12 = vsel %vm3098_vm4, %v4025_v53, %v3095_v62 }
 0xd38   :  { %v3104_v24 = vsel %vm3101_vm5, %v3103_v16, %v3099_v12  ;;  %v6105_v16 = vld [vmem:[%s6165_s9] ss:$0 sm:$0xff] }
 0xd39   :  { %v3127_v32 = vmul.f32 %v4027_v19, %v3104_v24  ;;  %v4031_v61 = vpop.eup %4030  ;;  %v3126_v25 = vmul.f32 %v3104_v24, %v5884_v14 }
 0xd3a   :  { %v3111_v63 = vmul.f32 %v4031_v61, %v3109_v35  ;;  %vm3116_vm6 = vweird.f32 %v4031_v61 }
 0xd3b   :  { %3129 = vrot.lane.b32.xlu0 %v3127_v32, %s4301_s3  ;;  %vm3117_vm8 = vmor %vm3115_vm7, %vm3116_vm6 }
 0xd43   :  { %955 = vrot.lane.b32.xlu0 %v6466_v4, %s4301_s3 }
 0xd4b   :  { %1776 = vrot.lane.b32.xlu0 %v6467_v5, %s4301_s3 }
 0xd53   :  { %3006 = vrot.lane.b32.xlu0 %v6021_v46, %s4301_s3  ;;  %v3112_v46 = vsub.f32 1.0, %v3111_v63 }
 0xd55   :  { %v3113_v20 = vmul.f32 %v4031_v61, %v3112_v46 }
 0xd57   :  { %v3114_v42 = vadd.f32 %v4031_v61, %v3113_v20 }
 0xd59   :  { %v3118_v39 = vsel %vm3117_vm8, %v4031_v61, %v3114_v42 }
 0xd5a   :  { %v3123_v41 = vsel %vm3120_vm11, %v3122_v28, %v3118_v39 }
 0xd7c   :  { %v3255_v23 = vpop.permute.xlu1 %3254 }
 0xd7d   :  { %v6091_v43 = vadd.f32 %v3255_v23, %v3251_v34 }
 0xdad   :  { %v3130_v30 = vpop.permute.xlu0 %3129 }
 0xdae   :  { %v3132_v9 = vadd.f32 %v3130_v30, %v3126_v25 }
 0xdb0   :  { %4032 = vtanh.f32 %v3132_v9 }
 0xdb1   :  { %4034 = vpow2.f32 %v3728_v6 }
 0xdb5   :  { %v956_v50 = vpop.permute.xlu0 %955 }
 0xdb6   :  { %v4033_v38 = vpop.eup %4032  ;;  %959 = vst.msk [vmem:[#allocation2] sm:$0x3] %vm958_vm10, %v956_v50 }
 0xdb7   :  { %v3134_v21 = vmul.f32 %v4033_v38, %v3123_v41  ;;  %v4035_v1 = vpop.eup %4034 }
 0xdb8   :  { %v3234_v17 = vadd.f32 1.0, %v4035_v1 }
 0xdb9   :  { %3266 = vrot.lane.b32.xlu2 %v3134_v21, %s4301_s3 }
 0xdba   :  { %4036 = vrcp.f32 %v3234_v17  ;;  %vm3240_vm13 = vweird.f32 %v3234_v17  ;;  %v3244_v26 = vand.u32 2147483647, %v3234_v17 }
 0xdbb   :  { %4038 = vtanh.f32 %v6091_v43 }
 0xdbc   :  { %vm3245_vm15 = vcmp.eq.f32.partialorder %v3244_v26, 8.507059e+37 }
 0xdbd   :  { %v1777_v14 = vpop.permute.xlu0 %1776  ;;  %v3395_v22 = vld [vmem:[#allocation2] sm:$0xff] }
 0xdbe   :  { %1779 = vst.msk [vmem:[#allocation2 + $0x10] sm:$0x3] %vm958_vm10, %v1777_v14  ;;  %3731 = vmatmul.msk.f32.vlgmr.msra.gmra.mxu0 %vm157_vm9, %v3395_v22 }
 0xdc0   :  { %v4037_v33 = vpop.eup %4036 }
 0xdc1   :  { %1366 = vrot.lane.b32.xlu2 %v6468_v44, %s4301_s3  ;;  %v3236_v27 = vmul.f32 %v4037_v33, %v3234_v17  ;;  %vm3241_vm12 = vweird.f32 %v4037_v33  ;;  %v4039_v53 = vpop.eup %4038 }
 0xdc2   :  { %vm3242_vm14 = vmor %vm3240_vm13, %vm3241_vm12 }
 0xdc3   :  { %v3237_v54 = vsub.f32 1.0, %v3236_v27 }
 0xdc5   :  { %v3007_v51 = vpop.permute.xlu0 %3006  ;;  %v3238_v29 = vmul.f32 %v4037_v33, %v3237_v54  ;;  %v3397_v62 = vld [vmem:[#allocation2 + $0x10] sm:$0xff] }
 0xdc6   :  { %3009 = vst.msk [vmem:[#allocation2 + $0x28] sm:$0x3] %vm958_vm10, %v3007_v51 }
 0xdc7   :  { %v3239_v59 = vadd.f32 %v4037_v33, %v3238_v29 }
 0xdc9   :  { %2596 = vrot.lane.b32.xlu2 %v5854_v10, %s4301_s3  ;;  %v3246_v10 = vand.u32 2147483648, %v3234_v17  ;;  %v3243_v60 = vsel %vm3242_vm14, %v4037_v33, %v3239_v59 }
 0xdcb   :  { %v3247_v11 = vor.u32 1.1754944e-38, %v3246_v10 }
 0xdcd   :  { %v3248_v8 = vsel %vm3245_vm15, %v3247_v11, %v3243_v60 }
 0xdce   :  { %v6094_v49 = vmul.f32 %v4039_v53, %v3248_v8 }
 0xe13   :  { %v3267_v15 = vpop.permute.xlu2 %3266 }
 0xe14   :  { %v3269_v7 = vsel %vm157_vm9, %v3267_v15, %v6094_v49 }
 0xe15   :  { %3318 = vmatmul.f32.vlgmr.msra.gmra.mxu2 %v3269_v7  ;;  %3338 = vmatmul.f32.vlgmr.msrb.gmra.mxu3 %v3269_v7 }
 0xe1b   :  { %v1367_v36 = vpop.permute.xlu2 %1366 }
 0xe1c   :  { %1369 = vst.msk [vmem:[#allocation2 + $0x8] sm:$0x3] %vm958_vm10, %v1367_v36 }
 0xe23   :  { %v2597_v37 = vpop.permute.xlu2 %2596  ;;  %v3396_v3 = vld [vmem:[#allocation2 + $0x8] sm:$0xff] }
 0xe24   :  { %2599 = vst.msk [vmem:[#allocation2 + $0x20] sm:$0x3] %vm958_vm10, %v2597_v37  ;;  %3732 = vmatmul.msk.f32.gmra.mxu0 %vm157_vm9, %v3396_v3 }
 0xe2c   :  { %3733 = vmatmul.msk.f32.gmra.mxu0 %vm157_vm9, %v3397_v62  ;;  %v6469_v62 = vld [vmem:[#allocation50_spill] sm:$0xff] }
 0xe3b   :  { %v3456_v12 = vpop.f32.mrf.mxu0 }
 0xe3c   :  { %v3457_v19 = vadd.f32 %v6105_v16, %v3456_v12 }
 0xe3e   :  { %v3739_v24 = vmul.f32 -1.442695, %v3457_v19 }
 0xe40   :  { %4040 = vpow2.f32 %v3739_v24 }
 0xe46   :  { %v4041_v32 = vpop.eup %4040 }
 0xe47   :  { %v3504_v4 = vadd.f32 1.0, %v4041_v32 }
 0xe49   :  { %4042 = vrcp.f32 %v3504_v4  ;;  %v3523_v2 = vand.u32 2147483648, %v3504_v4  ;;  %v3521_v58 = vand.u32 2147483647, %v3504_v4  ;;  %vm3517_vm1 = vweird.f32 %v3504_v4 }
 0xe4b   :  { %v3524_v35 = vor.u32 1.1754944e-38, %v3523_v2  ;;  %vm3522_vm3 = vcmp.eq.f32.partialorder %v3521_v58, 8.507059e+37 }
 0xe4f   :  { %v4043_v5 = vpop.eup %4042 }
 0xe50   :  { %v3513_v40 = vmul.f32 %v4043_v5, %v3504_v4  ;;  %vm3518_vm0 = vweird.f32 %v4043_v5 }
 0xe51   :  { %vm3519_vm2 = vmor %vm3517_vm1, %vm3518_vm0 }
 0xe52   :  { %v3514_v56 = vsub.f32 1.0, %v3513_v40 }
 0xe54   :  { %v3515_v0 = vmul.f32 %v4043_v5, %v3514_v56 }
 0xe56   :  { %v3516_v31 = vadd.f32 %v4043_v5, %v3515_v0 }
 0xe58   :  { %v3520_v47 = vsel %vm3519_vm2, %v4043_v5, %v3516_v31 }
 0xe59   :  { %v3525_v45 = vsel %vm3522_vm3, %v3524_v35, %v3520_v47 }
 0xe5a   :  { %3632 = vst [vmem:[%s6166_s10] sm:$0xff] %v3525_v45 }
 0xe98   :  { %v3319_v52 = vpop.f32.mrf.mxu2  ;;  %v3339_v18 = vpop.f32.mrf.mxu3 }
 0xe99   :  { %v3320_v48 = vadd.f32 %v3319_v52, %v6463_v57  ;;  %v3340_v57 = vadd.f32 %v3339_v18, %v6401_v55 }
 0xe9b   :  { %v3729_v61 = vmul.f32 -1.442695, %v3320_v48  ;;  %v3730_v4 = vmul.f32 -1.442695, %v3340_v57 }
 0xe9d   :  { %4044 = vpow2.f32 %v3729_v61 }
 0xea1   :  { %v3459_v63 = vpop.f32.mrf.mxu0 }
 0xea2   :  { %v3460_v46 = vadd.f32 %v6105_v16, %v3459_v63 }
 0xea3   :  { %v4045_v20 = vpop.eup %4044 }
 0xea4   :  { %v3345_v25 = vadd.f32 1.0, %v4045_v20  ;;  %v3740_v30 = vmul.f32 -1.442695, %v3460_v46 }
 0xea6   :  { %4046 = vrcp.f32 %v3345_v25  ;;  %v3357_v14 = vand.u32 2147483648, %v3345_v25  ;;  %v3355_v22 = vand.u32 2147483647, %v3345_v25  ;;  %vm3351_vm5 = vweird.f32 %v3345_v25 }
 0xea7   :  { %4048 = vpow2.f32 %v3740_v30 }
 0xea8   :  { %v3358_v17 = vor.u32 1.1754944e-38, %v3357_v14  ;;  %vm3356_vm7 = vcmp.eq.f32.partialorder %v3355_v22, 8.507059e+37 }
 0xea9   :  { %v3462_v9 = vpop.f32.mrf.mxu0 }
 0xeaa   :  { %v3463_v42 = vadd.f32 %v6105_v16, %v3462_v9  ;;  %v3399_v9 = vld [vmem:[#allocation2 + $0x20] sm:$0xff] }
 0xeac   :  { %v4047_v13 = vpop.eup %4046  ;;  %v3741_v39 = vmul.f32 -1.442695, %v3463_v42  ;;  %v3400_v42 = vld [vmem:[#allocation2 + $0x28] sm:$0xff] }
 0xead   :  { %v3347_v28 = vmul.f32 %v4047_v13, %v3345_v25  ;;  %v4049_v50 = vpop.eup %4048  ;;  %vm3352_vm4 = vweird.f32 %v4047_v13 }
 0xeae   :  { %4050 = vpow2.f32 %v3741_v39  ;;  %v3505_v38 = vadd.f32 1.0, %v4049_v50  ;;  %vm3353_vm6 = vmor %vm3351_vm5, %vm3352_vm4 }
 0xeaf   :  { %v3348_v41 = vsub.f32 1.0, %v3347_v28 }
 0xeb0   :  { %4052 = vrcp.f32 %v3505_v38  ;;  %v3538_v29 = vand.u32 2147483648, %v3505_v38  ;;  %v3536_v10 = vand.u32 2147483647, %v3505_v38  ;;  %vm3532_vm11 = vweird.f32 %v3505_v38 }
 0xeb1   :  { %4054 = vtanh.f32 %v3340_v57  ;;  %v3349_v21 = vmul.f32 %v4047_v13, %v3348_v41 }
 0xeb2   :  { %v3539_v11 = vor.u32 1.1754944e-38, %v3538_v29  ;;  %vm3537_vm13 = vcmp.eq.f32.partialorder %v3536_v10, 8.507059e+37 }
 0xeb3   :  { %v3350_v51 = vadd.f32 %v4047_v13, %v3349_v21 }
 0xeb4   :  { %v4051_v44 = vpop.eup %4050 }
 0xeb5   :  { %v3506_v6 = vadd.f32 1.0, %v4051_v44  ;;  %v3354_v1 = vsel %vm3353_vm6, %v4047_v13, %v3350_v51 }
 0xeb6   :  { %v4053_v33 = vpop.eup %4052  ;;  %v3359_v54 = vsel %vm3356_vm7, %v3358_v17, %v3354_v1 }
 0xeb7   :  { %4056 = vrcp.f32 %v3506_v6  ;;  %v4055_v55 = vpop.eup %4054  ;;  %v3528_v27 = vmul.f32 %v4053_v33, %v3505_v38  ;;  %vm3533_vm8 = vweird.f32 %v4053_v33  ;;  %v3553_v36 = vand.u32 2147483648, %v3506_v6 }
 0xeb8   :  { %v3382_v23 = vmul.f32 %v4055_v55, %v3359_v54  ;;  %vm3534_vm12 = vmor %vm3532_vm11, %vm3533_vm8  ;;  %v3551_v3 = vand.u32 2147483647, %v3506_v6  ;;  %vm3547_vm15 = vweird.f32 %v3506_v6  ;;  %4058 = vpow2.f32 %v3730_v4 }
 0xeb9   :  { %v3529_v34 = vsub.f32 1.0, %v3528_v27  ;;  %v3554_v19 = vor.u32 1.1754944e-38, %v3553_v36  ;;  %v3381_v31 = vmul.f32 %v3359_v54, %v6091_v43 }
 0xeba   :  { %3384 = vrot.lane.b32.xlu1 %v3382_v23, %s4301_s3  ;;  %vm3552_vm1 = vcmp.eq.f32.partialorder %v3551_v3, 8.507059e+37 }
 0xebb   :  { %v3530_v59 = vmul.f32 %v4053_v33, %v3529_v34 }
 0xebd   :  { %v4057_v26 = vpop.eup %4056  ;;  %v3531_v60 = vadd.f32 %v4053_v33, %v3530_v59 }
 0xebe   :  { %v3543_v53 = vmul.f32 %v4057_v26, %v3506_v6  ;;  %vm3548_vm14 = vweird.f32 %v4057_v26  ;;  %v4059_v5 = vpop.eup %4058 }
 0xebf   :  { %v3535_v8 = vsel %vm3534_vm12, %v4053_v33, %v3531_v60  ;;  %vm3549_vm0 = vmor %vm3547_vm15, %vm3548_vm14  ;;  %v3364_v40 = vadd.f32 1.0, %v4059_v5 }
 0xec0   :  { %v3544_v15 = vsub.f32 1.0, %v3543_v53  ;;  %v3540_v7 = vsel %vm3537_vm13, %v3539_v11, %v3535_v8 }
 0xec1   :  { %3633 = vst [vmem:[%s6166_s10 + $0x8] sm:$0xff] %v3540_v7  ;;  %4060 = vrcp.f32 %v3364_v40  ;;  %v3376_v52 = vand.u32 2147483648, %v3364_v40  ;;  %vm3370_vm3 = vweird.f32 %v3364_v40  ;;  %v3374_v48 = vand.u32 2147483647, %v3364_v40 }
 0xec2   :  { %v3545_v37 = vmul.f32 %v4057_v26, %v3544_v15  ;;  %2186 = vrot.lane.b32.xlu1 %v6469_v62, %s4301_s3 }
 0xec3   :  { %v3377_v61 = vor.u32 1.1754944e-38, %v3376_v52  ;;  %vm3375_vm5 = vcmp.eq.f32.partialorder %v3374_v48, 8.507059e+37 }
 0xec4   :  { %v3546_v12 = vadd.f32 %v4057_v26, %v3545_v37 }
 0xec6   :  { %v3550_v24 = vsel %vm3549_vm0, %v4057_v26, %v3546_v12 }
 0xec7   :  { %v3555_v32 = vsel %vm3552_vm1, %v3554_v19, %v3550_v24  ;;  %v4061_v56 = vpop.eup %4060 }
 0xec8   :  { %3634 = vst [vmem:[%s6166_s10 + $0x10] sm:$0xff] %v3555_v32  ;;  %v3366_v2 = vmul.f32 %v4061_v56, %v3364_v40  ;;  %vm3371_vm2 = vweird.f32 %v4061_v56 }
 0xec9   :  { %vm3372_vm4 = vmor %vm3370_vm3, %vm3371_vm2 }
 0xeca   :  { %3261 = vrot.lane.b32.xlu1 %v6094_v49, %s4301_s3  ;;  %v3367_v0 = vsub.f32 1.0, %v3366_v2 }
 0xecc   :  { %v3368_v58 = vmul.f32 %v4061_v56, %v3367_v0 }
 0xece   :  { %v3369_v45 = vadd.f32 %v4061_v56, %v3368_v58 }
 0xed0   :  { %v3373_v49 = vsel %vm3372_vm4, %v4061_v56, %v3369_v45 }
 0xed1   :  { %v3378_v20 = vsel %vm3375_vm5, %v3377_v61, %v3373_v49 }
 0xf2c   :  { %v3385_v35 = vpop.permute.xlu1 %3384 }
 0xf2d   :  { %v3387_v47 = vadd.f32 %v3385_v35, %v3381_v31 }
 0xf2f   :  { %4062 = vtanh.f32 %v3387_v47 }
 0xf34   :  { %v2187_v63 = vpop.permute.xlu1 %2186 }
 0xf35   :  { %v4063_v46 = vpop.eup %4062  ;;  %2189 = vst.msk [vmem:[#allocation2 + $0x18] sm:$0x3] %vm958_vm10, %v2187_v63 }
 0xf36   :  { %v3389_v25 = vmul.f32 %v4063_v46, %v3378_v20 }
 0xf38   :  { %3391 = vrot.lane.b32.xlu2 %v3389_v25, %s4301_s3 }
 0xf3c   :  { %v3262_v43 = vpop.permute.xlu1 %3261  ;;  %v3398_v30 = vld [vmem:[#allocation2 + $0x18] sm:$0xff] }
 0xf3d   :  { %3264 = vst.msk [vmem:[#allocation2 + $0x30] sm:$0x3] %vm958_vm10, %v3262_v43  ;;  %3734 = vmatmul.msk.f32.gmra.mxu0 %vm157_vm9, %v3398_v30 }
 0xf44   :  { %v3401_v18 = vld [vmem:[#allocation2 + $0x30] sm:$0xff] }
 0xf45   :  { %3735 = vmatmul.msk.f32.gmra.mxu0 %vm157_vm9, %v3399_v9 }
 0xf4d   :  { %3736 = vmatmul.msk.f32.gmra.mxu0 %vm157_vm9, %v3400_v42 }
 0xf55   :  { %3737 = vmatmul.msk.f32.gmra.mxu0 %vm157_vm9, %v3401_v18 }
 0xf92   :  { %v3392_v13 = vpop.permute.xlu2 %3391 }
 0xf93   :  { %3394 = vst.msk [vmem:[#allocation2 + $0x38] sm:$0x3] %vm958_vm10, %v3392_v13 }
 0xf9a   :  { %v3402_v39 = vld [vmem:[#allocation2 + $0x38] sm:$0xff] }
 0xf9b   :  { %3738 = vmatmul.msk.f32.gmra.mxu0 %vm157_vm9, %v3402_v39 }
 0xfba   :  { %v3465_v28 = vpop.f32.mrf.mxu0 }
 0xfbb   :  { %v3466_v50 = vadd.f32 %v6105_v16, %v3465_v28 }
 0xfbd   :  { %v3742_v57 = vmul.f32 -1.442695, %v3466_v50 }
 0xfbf   :  { %4064 = vpow2.f32 %v3742_v57 }
 0xfc2   :  { %v3468_v38 = vpop.f32.mrf.mxu0 }
 0xfc3   :  { %v3469_v41 = vadd.f32 %v6105_v16, %v3468_v38 }
 0xfc5   :  { %v4065_v21 = vpop.eup %4064  ;;  %v3743_v14 = vmul.f32 -1.442695, %v3469_v41 }
 0xfc6   :  { %v3507_v22 = vadd.f32 1.0, %v4065_v21 }
 0xfc7   :  { %4066 = vpow2.f32 %v3743_v14 }
 0xfc8   :  { %4068 = vrcp.f32 %v3507_v22  ;;  %v3568_v54 = vand.u32 2147483648, %v3507_v22  ;;  %v3566_v29 = vand.u32 2147483647, %v3507_v22  ;;  %vm3562_vm10 = vweird.f32 %v3507_v22 }
 0xfca   :  { %v3471_v44 = vpop.f32.mrf.mxu0  ;;  %v3569_v11 = vor.u32 1.1754944e-38, %v3568_v54  ;;  %vm3567_vm7 = vcmp.eq.f32.partialorder %v3566_v29, 8.507059e+37 }
 0xfcb   :  { %v3472_v51 = vadd.f32 %v6105_v16, %v3471_v44 }
 0xfcd   :  { %v4067_v6 = vpop.eup %4066  ;;  %v3744_v1 = vmul.f32 -1.442695, %v3472_v51 }
 0xfce   :  { %v4069_v17 = vpop.eup %4068  ;;  %v3508_v33 = vadd.f32 1.0, %v4067_v6 }
 0xfcf   :  { %v3558_v55 = vmul.f32 %v4069_v17, %v3507_v22  ;;  %4070 = vpow2.f32 %v3744_v1  ;;  %vm3563_vm9 = vweird.f32 %v4069_v17 }
 0xfd0   :  { %4072 = vrcp.f32 %v3508_v33  ;;  %vm3564_vm6 = vmor %vm3562_vm10, %vm3563_vm9  ;;  %v3583_v3 = vand.u32 2147483648, %v3508_v33  ;;  %v3581_v12 = vand.u32 2147483647, %v3508_v33  ;;  %vm3577_vm11 = vweird.f32 %v3508_v33 }
 0xfd1   :  { %v3559_v27 = vsub.f32 1.0, %v3558_v55 }
 0xfd2   :  { %v3474_v23 = vpop.f32.mrf.mxu0  ;;  %v3584_v4 = vor.u32 1.1754944e-38, %v3583_v3  ;;  %vm3582_vm13 = vcmp.eq.f32.partialorder %v3581_v12, 8.507059e+37 }
 0xfd3   :  { %v3560_v34 = vmul.f32 %v4069_v17, %v3559_v27  ;;  %v3475_v59 = vadd.f32 %v6105_v16, %v3474_v23 }
 0xfd5   :  { %v4071_v10 = vpop.eup %4070  ;;  %v3561_v26 = vadd.f32 %v4069_v17, %v3560_v34  ;;  %v3745_v60 = vmul.f32 -1.442695, %v3475_v59 }
 0xfd6   :  { %v4073_v53 = vpop.eup %4072  ;;  %v3509_v8 = vadd.f32 1.0, %v4071_v10 }
 0xfd7   :  { %v3565_v15 = vsel %vm3564_vm6, %v4069_v17, %v3561_v26  ;;  %v3573_v7 = vmul.f32 %v4073_v53, %v3508_v33  ;;  %4074 = vpow2.f32 %v3745_v60  ;;  %vm3578_vm8 = vweird.f32 %v4073_v53 }
 0xfd8   :  { %v3570_v36 = vsel %vm3567_vm7, %v3569_v11, %v3565_v15  ;;  %4076 = vrcp.f32 %v3509_v8  ;;  %vm3579_vm12 = vmor %vm3577_vm11, %vm3578_vm8  ;;  %v3598_v58 = vand.u32 2147483648, %v3509_v8  ;;  %v3596_v35 = vand.u32 2147483647, %v3509_v8 }
 0xfd9   :  { %3635 = vst [vmem:[%s6166_s10 + $0x18] sm:$0xff] %v3570_v36  ;;  %v3574_v37 = vsub.f32 1.0, %v3573_v7  ;;  %vm3592_vm15 = vweird.f32 %v3509_v8 }
 0xfda   :  { %v3599_v52 = vor.u32 1.1754944e-38, %v3598_v58  ;;  %vm3597_vm1 = vcmp.eq.f32.partialorder %v3596_v35, 8.507059e+37 }
 0xfdb   :  { %v3575_v62 = vmul.f32 %v4073_v53, %v3574_v37 }
 0xfdd   :  { %v4075_v19 = vpop.eup %4074  ;;  %v3576_v24 = vadd.f32 %v4073_v53, %v3575_v62 }
 0xfde   :  { %v4077_v32 = vpop.eup %4076  ;;  %v3510_v5 = vadd.f32 1.0, %v4075_v19 }
 0xfdf   :  { %v3580_v40 = vsel %vm3579_vm12, %v4073_v53, %v3576_v24  ;;  %v3588_v56 = vmul.f32 %v4077_v32, %v3509_v8  ;;  %vm3593_vm14 = vweird.f32 %v4077_v32 }
 0xfe0   :  { %v3585_v2 = vsel %vm3582_vm13, %v3584_v4, %v3580_v40  ;;  %4078 = vrcp.f32 %v3510_v5  ;;  %vm3594_vm0 = vmor %vm3592_vm15, %vm3593_vm14  ;;  %v3613_v46 = vand.u32 2147483648, %v3510_v5  ;;  %v3611_v25 = vand.u32 2147483647, %v3510_v5 }
 0xfe1   :  { %3636 = vst [vmem:[%s6166_s10 + $0x20] sm:$0xff] %v3585_v2  ;;  %v3589_v0 = vsub.f32 1.0, %v3588_v56  ;;  %vm3607_vm3 = vweird.f32 %v3510_v5 }
 0xfe2   :  { %v3614_v30 = vor.u32 1.1754944e-38, %v3613_v46  ;;  %vm3612_vm5 = vcmp.eq.f32.partialorder %v3611_v25, 8.507059e+37 }
 0xfe3   :  { %v3590_v31 = vmul.f32 %v4077_v32, %v3589_v0 }
 0xfe5   :  { %v3591_v47 = vadd.f32 %v4077_v32, %v3590_v31 }
 0xfe6   :  { %v4079_v45 = vpop.eup %4078 }
 0xfe7   :  { %v3595_v48 = vsel %vm3594_vm0, %v4077_v32, %v3591_v47  ;;  %v3603_v49 = vmul.f32 %v4079_v45, %v3510_v5  ;;  %vm3608_vm2 = vweird.f32 %v4079_v45 }
 0xfe8   :  { %v3600_v61 = vsel %vm3597_vm1, %v3599_v52, %v3595_v48  ;;  %vm3609_vm4 = vmor %vm3607_vm3, %vm3608_vm2 }
 0xfe9   :  { %3637 = vst [vmem:[%s6166_s10 + $0x28] sm:$0xff] %v3600_v61  ;;  %v3604_v63 = vsub.f32 1.0, %v3603_v49 }
 0xfeb   :  { %v3605_v20 = vmul.f32 %v4079_v45, %v3604_v63 }
 0xfed   :  { %v3606_v43 = vadd.f32 %v4079_v45, %v3605_v20 }
 0xfef   :  { %v3610_v9 = vsel %vm3609_vm4, %v4079_v45, %v3606_v43 }
 0xff0   :  { %v3615_v42 = vsel %vm3612_vm5, %v3614_v30, %v3610_v9 }
 0xff1   :  { %3638 = vst [vmem:[%s6166_s10 + $0x30] sm:$0xff] %v3615_v42 }
0x1018   :  { %v3477_v18 = vpop.f32.mrf.mxu0 }
0x1019   :  { %v3478_v13 = vadd.f32 %v6105_v16, %v3477_v18 }
0x101b   :  { %v3746_v39 = vmul.f32 -1.442695, %v3478_v13 }
0x101d   :  { %4080 = vpow2.f32 %v3746_v39 }
0x1023   :  { %v4081_v28 = vpop.eup %4080 }
0x1024   :  { %v3511_v50 = vadd.f32 1.0, %v4081_v28 }
0x1026   :  { %4082 = vrcp.f32 %v3511_v50  ;;  %v3628_v21 = vand.u32 2147483648, %v3511_v50  ;;  %v3626_v22 = vand.u32 2147483647, %v3511_v50  ;;  %vm3622_vm10 = vweird.f32 %v3511_v50 }
0x1028   :  { %v3629_v51 = vor.u32 1.1754944e-38, %v3628_v21  ;;  %vm3627_vm7 = vcmp.eq.f32.partialorder %v3626_v22, 8.507059e+37 }
0x102c   :  { %v4083_v57 = vpop.eup %4082 }
0x102d   :  { %v3618_v38 = vmul.f32 %v4083_v57, %v3511_v50  ;;  %vm3623_vm9 = vweird.f32 %v4083_v57 }
0x102e   :  { %vm3624_vm6 = vmor %vm3622_vm10, %vm3623_vm9 }
0x102f   :  { %v3619_v41 = vsub.f32 1.0, %v3618_v38 }
0x1031   :  { %v3620_v14 = vmul.f32 %v4083_v57, %v3619_v41 }
0x1033   :  { %v3621_v44 = vadd.f32 %v4083_v57, %v3620_v14 }
0x1035   :  { %v3625_v6 = vsel %vm3624_vm6, %v4083_v57, %v3621_v44 }
0x1036   :  { %v3630_v1 = vsel %vm3627_vm7, %v3629_v51, %v3625_v6 }
0x1037   :  { %3639 = vst [vmem:[%s6166_s10 + $0x38] sm:$0xff] %v3630_v1 }
0x1038   :  { %3644 = vsyncpa [#allocation4], 1 }
0x1039   :  { %3645 = vsyncpa [#allocation6], 1 }
0x103a   :  { %3646 = vsyncpa [#allocation9], 1 }
0x103b   :  { %3647 = vsyncpa [#allocation12], 1 }
0x103c   :  { %3648 = vsyncpa [#allocation15], 1 }

</bundles_post_ra>
